<compile_context>
chip_gen: v5e
topology: v5e:2x2
jax: 0.10.0
libtpu: 0.0.40
codegen_flags: <defaults>
</compile_context>

<pallas_src>
import functools
import math

import jax
import jax.numpy as jnp
from jax.experimental import pallas as pl
from jax.experimental.pallas import tpu as pltpu


def _head_decode_kernel(x_ref, w_ref, c_ref, t_ref, y_ref, *, nx):
    # x_ref: (cin, tm) bf16   w_ref: (cin, cout) bf16   c_ref: (6, cout) f32
    # t_ref / y_ref: (na, tm, no) f32  -- channel-last output tiles.
    na, tm, no = t_ref.shape

    # Transpose pixels onto sublanes once (XLU; aligned dims), then the 1x1 conv
    # is a single MXU matmul with output channels on lanes.  Operand values are
    # exactly bf16, so f32 accumulation gives exact products.
    xt = x_ref[...].astype(jnp.float32).T                     # (tm, cin)
    t = jnp.dot(xt, w_ref[...].astype(jnp.float32),
                preferred_element_type=jnp.float32)           # (tm, cout)

    c = c_ref[...]
    bias  = c[0:1, :]   # conv bias
    sxy   = c[1:2, :]   # stride_x on j==0, stride_y on j==1, 0 elsewhere
    swh   = c[2:3, :]   # anchor_grid w/h on j==2/3, 0 elsewhere
    mconf = c[3:4, :]   # 1 on conf/class channels (j >= 4)
    mx    = c[4:5, :]   # 1 on j==0
    my    = c[5:6, :]   # 1 on j==1

    t = t + bias        # raw head output (pre-sigmoid), like PyTorch x[i]

    # TODO(synk): on v6e/v7x, compute the exp in bf16 once HBM traffic stops
    # being the roofline (EUP relief); kept f32 so the same kernel is exact on
    # v5e (no bf16 EUP path there).
    s = jax.nn.sigmoid(t)

    # Spatial grid offsets, float math only (int div/mod has no VPU path).
    # Exact while P < 2^24 pixels; the +0.5 guards floor against fp rounding
    # when 1/nx is not exactly representable.
    p = (pl.program_id(1) * tm
         + jax.lax.broadcasted_iota(jnp.int32, (tm, 1), 0)).astype(jnp.float32)
    gy = jnp.floor((p + 0.5) * (1.0 / nx))
    gx = p - gy * nx
    gadd = mx * gx + my * gy                                   # (tm, cout)

    s2 = s * 2.0
    # sxy / swh / gadd are already zero outside their channels -> fused decode.
    y = (s2 - 0.5 + gadd) * sxy + (s2 * s2) * swh + mconf * s

    # Per-anchor stores land directly in (bs, na, P, no) layout so everything
    # after the kernel is a free reshape (no post-kernel transpose pass).
    # The no-wide last dim (< 128) makes these masked stores; that is cheaper
    # than an extra full HBM read+write pass outside the kernel.
    for a in range(na):
        sl = slice(a * no, (a + 1) * no)
        t_ref[a, :, :] = t[:, sl]
        y_ref[a, :, :] = y[:, sl]


def _pick_tm(P, cap=512):
    """Lane-dense pixel tile size.

    Multiples of 128 (unmasked lane-dense x loads), capped at 512 so the
    double-buffered blocks stay well inside v5e's 16 MiB default scoped VMEM
    (and v7x's 32 MiB) even for cin=1024 levels, and chosen so there are >= 2
    pixel tiles whenever P >= 256 (keeps both v7x TensorCores busy at bs=1).
    P not divisible by 128 is handled by grid=pl.cdiv(P, tm) with a masked
    partial last tile.  Tiny levels (P <= 128) use the full extent.
    """
    if P <= 128:
        return P
    tm = min(cap, ((P + 1) // 2) // 128 * 128)
    return max(tm, 128)


def head_level(x_nchw, w, b, anchors_i, H_img, W_img, na, no):
    """One detection level: 1x1 conv + YOLO decode in a single Pallas kernel."""
    bs, cin, ny, nx = x_nchw.shape
    cout = na * no
    P = ny * nx
    tm = _pick_tm(P)
    n_pt = pl.cdiv(P, tm)

    # Free view: NCHW already has pixels contiguous in the last dims.
    # bf16 halves the input HBM read (ideally upstream already produces bf16).
    x_rows = x_nchw.reshape(bs, cin, P).astype(jnp.bfloat16)
    wt = w.T.astype(jnp.bfloat16)                       # (cin, cout), tiny

    # Fused per-channel decode constants (row meanings in the kernel).
    j = jnp.arange(cout) % no          # index within one anchor's `no` block
    a_idx = jnp.arange(cout) // no     # anchor index per output channel

    wh_img = jnp.array([W_img, H_img], jnp.float32)
    nxny = jnp.array([nx, ny], jnp.float32)
    anchor = anchors_i / wh_img * nxny
    stride = wh_img / nxny                              # (stride_x, stride_y)
    anchor_grid = anchor * stride                       # (na, 2)

    sxy = jnp.where(j == 0, stride[0], jnp.where(j == 1, stride[1], 0.0))
    swh = jnp.where(j == 2, anchor_grid[a_idx, 0],
                    jnp.where(j == 3, anchor_grid[a_idx, 1], 0.0))
    mconf = (j >= 4).astype(jnp.float32)
    mx = (j == 0).astype(jnp.float32)
    my = (j == 1).astype(jnp.float32)
    consts = jnp.stack([b, sxy, swh, mconf, mx, my], axis=0).astype(jnp.float32)

    cost = pl.CostEstimate(
        flops=2 * bs * P * cin * cout,
        transcendentals=bs * P * cout,
        bytes_accessed=(bs * cin * P * 2 + cin * cout * 2 + 6 * cout * 4
                        + 2 * bs * na * P * no * 4))

    t, y = pl.pallas_call(
        functools.partial(_head_decode_kernel, nx=nx),
        out_shape=(jax.ShapeDtypeStruct((bs, na, P, no), jnp.float32),
                   jax.ShapeDtypeStruct((bs, na, P, no), jnp.float32)),
        grid_spec=pltpu.PrefetchScalarGridSpec(
            num_scalar_prefetch=0,
            grid=(bs, n_pt),
            in_specs=[
                pl.BlockSpec((pl.Squeezed(), cin, tm), lambda bb, i: (bb, 0, i)),
                pl.BlockSpec((cin, cout), lambda bb, i: (0, 0)),
                pl.BlockSpec((6, cout), lambda bb, i: (0, 0)),
            ],
            out_specs=[
                pl.BlockSpec((pl.Squeezed(), na, tm, no),
                             lambda bb, i: (bb, 0, i, 0)),
                pl.BlockSpec((pl.Squeezed(), na, tm, no),
                             lambda bb, i: (bb, 0, i, 0)),
            ],
        ),
        compiler_params=pltpu.CompilerParams(
            dimension_semantics=("parallel", "parallel")),
        cost_estimate=cost,
    )(x_rows, wt, consts)

    # Only free reshapes remain (channel axis already last; pixel order is
    # row-major ny,nx, exactly matching the PyTorch permute).
    t5 = t.reshape(bs, na, ny, nx, no)        # raw head output, PyTorch layout
    z = y.reshape(bs, na * P, no)             # decoded rows, anchor-major
    return z, t5


@functools.partial(jax.jit, static_argnums=(3, 4, 5))
def yolov7_head_forward(xs, params, anchors, H_img, W_img, num_classes):
    """Eval-mode forward: returns (cat(z, 1), [x_i raw head outputs])."""
    na = anchors.shape[1]
    no = num_classes + 5
    zs, outs = [], []
    # NOTE: the PyTorch module loops `for i in range(self.na)` (not nl); with the
    # standard 3x3 anchor config na == nl == 3.  Reproduced faithfully here.
    for i in range(na):
        w, b = params[i]
        z, t5 = head_level(xs[i], w, b, anchors[i], H_img, W_img, na, no)
        zs.append(z)
        outs.append(t5)
    # TODO(synk): the concatenate is one extra pass over z only; it could be
    # removed entirely by aliasing a preallocated (bs, sum(na*P_i), no) buffer
    # into each level's pallas_call (input_output_aliases) when the per-level
    # row offsets divide that level's tm.
    return jnp.concatenate(zs, axis=1), outs


def init_params(key, out_channel_list, na, num_classes):
    """Synthetic init + the module's reset_parameters bias offsets.

    Weights are stored as (Cout, Cin) == squeezed Conv2d(k=1) weight layout.
    """
    no = num_classes + 5
    cout = na * no
    strides = [8, 16, 32]
    params = []
    for cin, s in zip(out_channel_list, strides):
        key, kw, kb = jax.random.split(key, 3)
        w = jax.random.normal(kw, (cout, cin), jnp.float32) * 0.02
        b = jax.random.normal(kb, (cout,), jnp.float32) * 0.01
        b = b.reshape(na, no)
        b = b.at[:, 4].add(math.log(8.0 / (640.0 / s) ** 2))
        # NOTE: matches the spec module exactly: b[:, 5:num_classes] (its quirk).
        b = b.at[:, 5:num_classes].add(math.log(0.6 / (num_classes - 0.99999)))
        params.append((w, b.reshape(-1)))
    return params


def reference_forward(xs, params, anchors, H_img, W_img, num_classes):
    """Pure-JAX mirror of the PyTorch eval forward (same bf16 quantization of
    x / w as the kernel, math in f32), for verification."""
    na = anchors.shape[1]
    no = num_classes + 5
    zs, outs = [], []
    for i in range(na):
        w, b = params[i]
        x = xs[i].astype(jnp.float32)                         # xs already bf16
        wq = w.astype(jnp.bfloat16).astype(jnp.float32)
        bs, cin, ny, nx = x.shape
        t = jnp.einsum("bchw,oc->bohw", x, wq) + b[None, :, None, None]
        t = t.reshape(bs, na, no, ny, nx).transpose(0, 1, 3, 4, 2)
        outs.append(t)
        wh_img = jnp.array([W_img, H_img], jnp.float32)
        nxny = jnp.array([nx, ny], jnp.float32)
        anchor = anchors[i] / wh_img * nxny
        stride = wh_img / nxny
        gy, gx = jnp.meshgrid(jnp.arange(ny, dtype=jnp.float32),
                              jnp.arange(nx, dtype=jnp.float32), indexing="ij")
        grid = jnp.stack([gx, gy], axis=-1).reshape(1, 1, ny, nx, 2)
        anchor_grid = (anchor * stride).reshape(1, na, 1, 1, 2)
        s = jax.nn.sigmoid(t)
        xy, wh, conf = s[..., :2], s[..., 2:4], s[..., 4:]
        xy = (xy * 2 - 0.5 + grid) * stride
        wh = (wh * 2) ** 2 * anchor_grid
        y = jnp.concatenate([xy, wh, conf], axis=-1)
        zs.append(y.reshape(bs, na * ny * nx, no))
    return jnp.concatenate(zs, axis=1), outs


if __name__ == "__main__":
    key = jax.random.PRNGKey(0)

    # small config
    bs = 2
    out_channel_list = [8, 16, 32]
    num_classes = 8
    anchors_list = [[10, 13, 16, 30, 33, 23],
                    [30, 61, 62, 45, 59, 119],
                    [116, 90, 156, 198, 373, 326]]
    anchors = jnp.array(anchors_list, jnp.float32).reshape(3, -1, 2)  # (nl, na, 2)
    na = anchors.shape[1]
    H_img, W_img = 128, 128  # feature maps at strides 8/16/32 -> 16, 8, 4

    params = init_params(key, out_channel_list, na, num_classes)

    xs = []
    for cin, s in zip(out_channel_list, [8, 16, 32]):
        key, kx = jax.random.split(key)
        xs.append(jax.random.normal(kx, (bs, cin, H_img // s, W_img // s),
                                    jnp.float32).astype(jnp.bfloat16))

    z, raw = yolov7_head_forward(xs, params, anchors, H_img, W_img, num_classes)
    jax.block_until_ready(z)
    for r in raw:
        jax.block_until_ready(r)

    # verify against pure-JAX reference (bf16 inputs -> slightly relaxed tol)
    z_ref, raw_ref = reference_forward(xs, params, anchors, H_img, W_img,
                                       num_classes)
    assert jnp.allclose(z, z_ref, rtol=2e-3, atol=2e-3), "decoded output mismatch"
    for a_, b_ in zip(raw, raw_ref):
        assert jnp.allclose(a_, b_, rtol=2e-3, atol=2e-3), "raw head output mismatch"

    print("KERNEL_OK")
</pallas_src>

<mosaic_0001>
module attributes {stable_mosaic.version = 11 : i64} {
  func.func @_head_decode_kernel(%arg0: i32, %arg1: i32, %arg2: memref<1x8x128xbf16, #tpu.memory_space<vmem>>, %arg3: memref<8x39xbf16, #tpu.memory_space<vmem>>, %arg4: memref<6x39xf32, #tpu.memory_space<vmem>>, %arg5: memref<1x3x128x13xf32, #tpu.memory_space<vmem>>, %arg6: memref<1x3x128x13xf32, #tpu.memory_space<vmem>>) attributes {dimension_semantics = [#tpu.dimension_semantics<parallel>, #tpu.dimension_semantics<parallel>], iteration_bounds = array<i64: 2, 2>, scalar_prefetch = 0 : i64, scratch_operands = 0 : i64, tpu.core_type = #tpu.core_type<tc>, window_params = [{transform_indices = @transform_0, window_bounds = array<i64: 1, 8, 128>}, {pipeline_mode = #tpu.pipeline_mode<synchronous>, transform_indices = @transform_1, window_bounds = array<i64: 8, 39>}, {pipeline_mode = #tpu.pipeline_mode<synchronous>, transform_indices = @transform_2, window_bounds = array<i64: 6, 39>}, {transform_indices = @transform_3, window_bounds = array<i64: 1, 3, 128, 13>}, {transform_indices = @transform_4, window_bounds = array<i64: 1, 3, 128, 13>}]} {
    %c0 = arith.constant 0 : index
    %c0_0 = arith.constant 0 : index
    %c0_1 = arith.constant 0 : index
    %0 = vector.load %arg2[%c0, %c0_0, %c0_1] : memref<1x8x128xbf16, #tpu.memory_space<vmem>>, vector<1x8x128xbf16>
    %1 = vector.shape_cast %0 : vector<1x8x128xbf16> to vector<8x128xbf16>
    %2 = arith.extf %1 : vector<8x128xbf16> to vector<8x128xf32>
    %3 = tpu.transpose %2, [1, 0] : vector<8x128xf32> -> vector<128x8xf32>
    %c0_2 = arith.constant 0 : index
    %c0_3 = arith.constant 0 : index
    %4 = vector.load %arg3[%c0_2, %c0_3] : memref<8x39xbf16, #tpu.memory_space<vmem>>, vector<8x39xbf16>
    %5 = arith.extf %4 : vector<8x39xbf16> to vector<8x39xf32>
    %cst = arith.constant dense<0.000000e+00> : vector<128x39xf32>
    %6 = tpu.matmul %3, %5, %cst {dimension_numbers = #tpu.dot_dimension_numbers<[1], [0], [0], [1], [0, 0, 1, 1], [], []>} : vector<128x8xf32>, vector<8x39xf32>, vector<128x39xf32> -> vector<128x39xf32>
    %c0_4 = arith.constant 0 : index
    %c0_5 = arith.constant 0 : index
    %7 = vector.load %arg4[%c0_4, %c0_5] : memref<6x39xf32, #tpu.memory_space<vmem>>, vector<6x39xf32>
    %8 = vector.extract_strided_slice %7 {offsets = [0, 0], sizes = [1, 39], strides = [1, 1]} : vector<6x39xf32> to vector<1x39xf32>
    %9 = vector.extract_strided_slice %7 {offsets = [1, 0], sizes = [1, 39], strides = [1, 1]} : vector<6x39xf32> to vector<1x39xf32>
    %10 = vector.extract_strided_slice %7 {offsets = [2, 0], sizes = [1, 39], strides = [1, 1]} : vector<6x39xf32> to vector<1x39xf32>
    %11 = vector.extract_strided_slice %7 {offsets = [3, 0], sizes = [1, 39], strides = [1, 1]} : vector<6x39xf32> to vector<1x39xf32>
    %12 = vector.extract_strided_slice %7 {offsets = [4, 0], sizes = [1, 39], strides = [1, 1]} : vector<6x39xf32> to vector<1x39xf32>
    %13 = vector.extract_strided_slice %7 {offsets = [5, 0], sizes = [1, 39], strides = [1, 1]} : vector<6x39xf32> to vector<1x39xf32>
    %14 = vector.broadcast %8 : vector<1x39xf32> to vector<128x39xf32>
    %15 = arith.addf %6, %14 : vector<128x39xf32>
    %16 = arith.negf %15 : vector<128x39xf32>
    %17 = math.exp %16 : vector<128x39xf32>
    %cst_6 = arith.constant 1.000000e+00 : f32
    %18 = vector.broadcast %cst_6 : f32 to vector<128x39xf32>
    %19 = arith.addf %18, %17 : vector<128x39xf32>
    %20 = arith.divf %18, %19 : vector<128x39xf32>
    %c128_i32 = arith.constant 128 : i32
    %21 = arith.muli %arg1, %c128_i32 : i32
    %22 = tpu.iota {dimensions = array<i32: 0>} : vector<128x1xi32>
    %23 = vector.broadcast %21 : i32 to vector<128x1xi32>
    %24 = arith.addi %23, %22 : vector<128x1xi32>
    %25 = arith.sitofp %24 : vector<128x1xi32> to vector<128x1xf32>
    %cst_7 = arith.constant 5.000000e-01 : f32
    %26 = vector.broadcast %cst_7 : f32 to vector<128x1xf32>
    %27 = arith.addf %25, %26 : vector<128x1xf32>
    %cst_8 = arith.constant 6.250000e-02 : f32
    %28 = vector.broadcast %cst_8 : f32 to vector<128x1xf32>
    %29 = arith.mulf %27, %28 : vector<128x1xf32>
    %30 = math.floor %29 : vector<128x1xf32>
    %cst_9 = arith.constant 1.600000e+01 : f32
    %31 = vector.broadcast %cst_9 : f32 to vector<128x1xf32>
    %32 = arith.mulf %30, %31 : vector<128x1xf32>
    %33 = arith.subf %25, %32 : vector<128x1xf32>
    %34 = vector.broadcast %12 : vector<1x39xf32> to vector<128x39xf32>
    %35 = vector.broadcast %33 : vector<128x1xf32> to vector<128x39xf32>
    %36 = arith.mulf %34, %35 : vector<128x39xf32>
    %37 = vector.broadcast %13 : vector<1x39xf32> to vector<128x39xf32>
    %38 = vector.broadcast %30 : vector<128x1xf32> to vector<128x39xf32>
    %39 = arith.mulf %37, %38 : vector<128x39xf32>
    %40 = arith.addf %36, %39 : vector<128x39xf32>
    %cst_10 = arith.constant 2.000000e+00 : f32
    %41 = vector.broadcast %cst_10 : f32 to vector<128x39xf32>
    %42 = arith.mulf %20, %41 : vector<128x39xf32>
    %cst_11 = arith.constant 5.000000e-01 : f32
    %43 = vector.broadcast %cst_11 : f32 to vector<128x39xf32>
    %44 = arith.subf %42, %43 : vector<128x39xf32>
    %45 = arith.addf %44, %40 : vector<128x39xf32>
    %46 = vector.broadcast %9 : vector<1x39xf32> to vector<128x39xf32>
    %47 = arith.mulf %45, %46 : vector<128x39xf32>
    %48 = arith.mulf %42, %42 : vector<128x39xf32>
    %49 = vector.broadcast %10 : vector<1x39xf32> to vector<128x39xf32>
    %50 = arith.mulf %48, %49 : vector<128x39xf32>
    %51 = arith.addf %47, %50 : vector<128x39xf32>
    %52 = vector.broadcast %11 : vector<1x39xf32> to vector<128x39xf32>
    %53 = arith.mulf %52, %20 : vector<128x39xf32>
    %54 = arith.addf %51, %53 : vector<128x39xf32>
    %55 = vector.extract_strided_slice %15 {offsets = [0, 0], sizes = [128, 13], strides = [1, 1]} : vector<128x39xf32> to vector<128x13xf32>
    %c0_12 = arith.constant 0 : index
    %c0_13 = arith.constant 0 : index
    %c0_14 = arith.constant 0 : index
    %c0_15 = arith.constant 0 : index
    %56 = vector.load %arg5[%c0_12, %c0_13, %c0_14, %c0_15] : memref<1x3x128x13xf32, #tpu.memory_space<vmem>>, vector<1x1x128x13xf32>
    %57 = vector.shape_cast %56 : vector<1x1x128x13xf32> to vector<128x13xf32>
    %58 = vector.shape_cast %55 : vector<128x13xf32> to vector<1x1x128x13xf32>
    tpu.vector_store %arg5[%c0_12, %c0_13, %c0_14, %c0_15], %58 {strides = array<i32>} : memref<1x3x128x13xf32, #tpu.memory_space<vmem>>, vector<1x1x128x13xf32>,
    %59 = vector.extract_strided_slice %54 {offsets = [0, 0], sizes = [128, 13], strides = [1, 1]} : vector<128x39xf32> to vector<128x13xf32>
    %c0_16 = arith.constant 0 : index
    %c0_17 = arith.constant 0 : index
    %c0_18 = arith.constant 0 : index
    %c0_19 = arith.constant 0 : index
    %60 = vector.load %arg6[%c0_16, %c0_17, %c0_18, %c0_19] : memref<1x3x128x13xf32, #tpu.memory_space<vmem>>, vector<1x1x128x13xf32>
    %61 = vector.shape_cast %60 : vector<1x1x128x13xf32> to vector<128x13xf32>
    %62 = vector.shape_cast %59 : vector<128x13xf32> to vector<1x1x128x13xf32>
    tpu.vector_store %arg6[%c0_16, %c0_17, %c0_18, %c0_19], %62 {strides = array<i32>} : memref<1x3x128x13xf32, #tpu.memory_space<vmem>>, vector<1x1x128x13xf32>,
    %63 = vector.extract_strided_slice %15 {offsets = [0, 13], sizes = [128, 13], strides = [1, 1]} : vector<128x39xf32> to vector<128x13xf32>
    %c0_20 = arith.constant 0 : index
    %c1 = arith.constant 1 : index
    %c0_21 = arith.constant 0 : index
    %c0_22 = arith.constant 0 : index
    %64 = vector.load %arg5[%c0_20, %c1, %c0_21, %c0_22] : memref<1x3x128x13xf32, #tpu.memory_space<vmem>>, vector<1x1x128x13xf32>
    %65 = vector.shape_cast %64 : vector<1x1x128x13xf32> to vector<128x13xf32>
    %66 = vector.shape_cast %63 : vector<128x13xf32> to vector<1x1x128x13xf32>
    tpu.vector_store %arg5[%c0_20, %c1, %c0_21, %c0_22], %66 {strides = array<i32>} : memref<1x3x128x13xf32, #tpu.memory_space<vmem>>, vector<1x1x128x13xf32>,
    %67 = vector.extract_strided_slice %54 {offsets = [0, 13], sizes = [128, 13], strides = [1, 1]} : vector<128x39xf32> to vector<128x13xf32>
    %c0_23 = arith.constant 0 : index
    %c1_24 = arith.constant 1 : index
    %c0_25 = arith.constant 0 : index
    %c0_26 = arith.constant 0 : index
    %68 = vector.load %arg6[%c0_23, %c1_24, %c0_25, %c0_26] : memref<1x3x128x13xf32, #tpu.memory_space<vmem>>, vector<1x1x128x13xf32>
    %69 = vector.shape_cast %68 : vector<1x1x128x13xf32> to vector<128x13xf32>
    %70 = vector.shape_cast %67 : vector<128x13xf32> to vector<1x1x128x13xf32>
    tpu.vector_store %arg6[%c0_23, %c1_24, %c0_25, %c0_26], %70 {strides = array<i32>} : memref<1x3x128x13xf32, #tpu.memory_space<vmem>>, vector<1x1x128x13xf32>,
    %71 = vector.extract_strided_slice %15 {offsets = [0, 26], sizes = [128, 13], strides = [1, 1]} : vector<128x39xf32> to vector<128x13xf32>
    %c0_27 = arith.constant 0 : index
    %c2 = arith.constant 2 : index
    %c0_28 = arith.constant 0 : index
    %c0_29 = arith.constant 0 : index
    %72 = vector.load %arg5[%c0_27, %c2, %c0_28, %c0_29] : memref<1x3x128x13xf32, #tpu.memory_space<vmem>>, vector<1x1x128x13xf32>
    %73 = vector.shape_cast %72 : vector<1x1x128x13xf32> to vector<128x13xf32>
    %74 = vector.shape_cast %71 : vector<128x13xf32> to vector<1x1x128x13xf32>
    tpu.vector_store %arg5[%c0_27, %c2, %c0_28, %c0_29], %74 {strides = array<i32>} : memref<1x3x128x13xf32, #tpu.memory_space<vmem>>, vector<1x1x128x13xf32>,
    %75 = vector.extract_strided_slice %54 {offsets = [0, 26], sizes = [128, 13], strides = [1, 1]} : vector<128x39xf32> to vector<128x13xf32>
    %c0_30 = arith.constant 0 : index
    %c2_31 = arith.constant 2 : index
    %c0_32 = arith.constant 0 : index
    %c0_33 = arith.constant 0 : index
    %76 = vector.load %arg6[%c0_30, %c2_31, %c0_32, %c0_33] : memref<1x3x128x13xf32, #tpu.memory_space<vmem>>, vector<1x1x128x13xf32>
    %77 = vector.shape_cast %76 : vector<1x1x128x13xf32> to vector<128x13xf32>
    %78 = vector.shape_cast %75 : vector<128x13xf32> to vector<1x1x128x13xf32>
    tpu.vector_store %arg6[%c0_30, %c2_31, %c0_32, %c0_33], %78 {strides = array<i32>} : memref<1x3x128x13xf32, #tpu.memory_space<vmem>>, vector<1x1x128x13xf32>,
    return
  }
  func.func @transform_0(%arg0: i32, %arg1: i32) -> (i32, i32, i32) {
    %c0_i32 = arith.constant 0 : i32
    %c0_i32_0 = arith.constant 0 : i32
    return %arg0, %c0_i32, %arg1 : i32, i32, i32
  }
  func.func @transform_1(%arg0: i32, %arg1: i32) -> (i32, i32) {
    %c0_i32 = arith.constant 0 : i32
    %c0_i32_0 = arith.constant 0 : i32
    %c0_i32_1 = arith.constant 0 : i32
    return %c0_i32, %c0_i32_0 : i32, i32
  }
  func.func @transform_2(%arg0: i32, %arg1: i32) -> (i32, i32) {
    %c0_i32 = arith.constant 0 : i32
    %c0_i32_0 = arith.constant 0 : i32
    %c0_i32_1 = arith.constant 0 : i32
    return %c0_i32, %c0_i32_0 : i32, i32
  }
  func.func @transform_3(%arg0: i32, %arg1: i32) -> (i32, i32, i32, i32) {
    %c0_i32 = arith.constant 0 : i32
    %c0_i32_0 = arith.constant 0 : i32
    %c0_i32_1 = arith.constant 0 : i32
    return %arg0, %c0_i32, %arg1, %c0_i32_0 : i32, i32, i32, i32
  }
  func.func @transform_4(%arg0: i32, %arg1: i32) -> (i32, i32, i32, i32) {
    %c0_i32 = arith.constant 0 : i32
    %c0_i32_0 = arith.constant 0 : i32
    %c0_i32_1 = arith.constant 0 : i32
    return %arg0, %c0_i32, %arg1, %c0_i32_0 : i32, i32, i32, i32
  }
}

module attributes {stable_mosaic.version = 11 : i64} {
  func.func @_head_decode_kernel(%arg0: i32, %arg1: i32, %arg2: memref<1x16x64xbf16, #tpu.memory_space<vmem>>, %arg3: memref<16x39xbf16, #tpu.memory_space<vmem>>, %arg4: memref<6x39xf32, #tpu.memory_space<vmem>>, %arg5: memref<1x3x64x13xf32, #tpu.memory_space<vmem>>, %arg6: memref<1x3x64x13xf32, #tpu.memory_space<vmem>>) attributes {dimension_semantics = [#tpu.dimension_semantics<parallel>, #tpu.dimension_semantics<parallel>], iteration_bounds = array<i64: 2, 1>, scalar_prefetch = 0 : i64, scratch_operands = 0 : i64, tpu.core_type = #tpu.core_type<tc>, window_params = [{transform_indices = @transform_0, window_bounds = array<i64: 1, 16, 64>}, {pipeline_mode = #tpu.pipeline_mode<synchronous>, transform_indices = @transform_1, window_bounds = array<i64: 16, 39>}, {pipeline_mode = #tpu.pipeline_mode<synchronous>, transform_indices = @transform_2, window_bounds = array<i64: 6, 39>}, {transform_indices = @transform_3, window_bounds = array<i64: 1, 3, 64, 13>}, {transform_indices = @transform_4, window_bounds = array<i64: 1, 3, 64, 13>}]} {
    %c0 = arith.constant 0 : index
    %c0_0 = arith.constant 0 : index
    %c0_1 = arith.constant 0 : index
    %0 = vector.load %arg2[%c0, %c0_0, %c0_1] : memref<1x16x64xbf16, #tpu.memory_space<vmem>>, vector<1x16x64xbf16>
    %1 = vector.shape_cast %0 : vector<1x16x64xbf16> to vector<16x64xbf16>
    %2 = arith.extf %1 : vector<16x64xbf16> to vector<16x64xf32>
    %3 = tpu.transpose %2, [1, 0] : vector<16x64xf32> -> vector<64x16xf32>
    %c0_2 = arith.constant 0 : index
    %c0_3 = arith.constant 0 : index
    %4 = vector.load %arg3[%c0_2, %c0_3] : memref<16x39xbf16, #tpu.memory_space<vmem>>, vector<16x39xbf16>
    %5 = arith.extf %4 : vector<16x39xbf16> to vector<16x39xf32>
    %cst = arith.constant dense<0.000000e+00> : vector<64x39xf32>
    %6 = tpu.matmul %3, %5, %cst {dimension_numbers = #tpu.dot_dimension_numbers<[1], [0], [0], [1], [0, 0, 1, 1], [], []>} : vector<64x16xf32>, vector<16x39xf32>, vector<64x39xf32> -> vector<64x39xf32>
    %c0_4 = arith.constant 0 : index
    %c0_5 = arith.constant 0 : index
    %7 = vector.load %arg4[%c0_4, %c0_5] : memref<6x39xf32, #tpu.memory_space<vmem>>, vector<6x39xf32>
    %8 = vector.extract_strided_slice %7 {offsets = [0, 0], sizes = [1, 39], strides = [1, 1]} : vector<6x39xf32> to vector<1x39xf32>
    %9 = vector.extract_strided_slice %7 {offsets = [1, 0], sizes = [1, 39], strides = [1, 1]} : vector<6x39xf32> to vector<1x39xf32>
    %10 = vector.extract_strided_slice %7 {offsets = [2, 0], sizes = [1, 39], strides = [1, 1]} : vector<6x39xf32> to vector<1x39xf32>
    %11 = vector.extract_strided_slice %7 {offsets = [3, 0], sizes = [1, 39], strides = [1, 1]} : vector<6x39xf32> to vector<1x39xf32>
    %12 = vector.extract_strided_slice %7 {offsets = [4, 0], sizes = [1, 39], strides = [1, 1]} : vector<6x39xf32> to vector<1x39xf32>
    %13 = vector.extract_strided_slice %7 {offsets = [5, 0], sizes = [1, 39], strides = [1, 1]} : vector<6x39xf32> to vector<1x39xf32>
    %14 = vector.broadcast %8 : vector<1x39xf32> to vector<64x39xf32>
    %15 = arith.addf %6, %14 : vector<64x39xf32>
    %16 = arith.negf %15 : vector<64x39xf32>
    %17 = math.exp %16 : vector<64x39xf32>
    %cst_6 = arith.constant 1.000000e+00 : f32
    %18 = vector.broadcast %cst_6 : f32 to vector<64x39xf32>
    %19 = arith.addf %18, %17 : vector<64x39xf32>
    %20 = arith.divf %18, %19 : vector<64x39xf32>
    %c64_i32 = arith.constant 64 : i32
    %21 = arith.muli %arg1, %c64_i32 : i32
    %22 = tpu.iota {dimensions = array<i32: 0>} : vector<64x1xi32>
    %23 = vector.broadcast %21 : i32 to vector<64x1xi32>
    %24 = arith.addi %23, %22 : vector<64x1xi32>
    %25 = arith.sitofp %24 : vector<64x1xi32> to vector<64x1xf32>
    %cst_7 = arith.constant 5.000000e-01 : f32
    %26 = vector.broadcast %cst_7 : f32 to vector<64x1xf32>
    %27 = arith.addf %25, %26 : vector<64x1xf32>
    %cst_8 = arith.constant 1.250000e-01 : f32
    %28 = vector.broadcast %cst_8 : f32 to vector<64x1xf32>
    %29 = arith.mulf %27, %28 : vector<64x1xf32>
    %30 = math.floor %29 : vector<64x1xf32>
    %cst_9 = arith.constant 8.000000e+00 : f32
    %31 = vector.broadcast %cst_9 : f32 to vector<64x1xf32>
    %32 = arith.mulf %30, %31 : vector<64x1xf32>
    %33 = arith.subf %25, %32 : vector<64x1xf32>
    %34 = vector.broadcast %12 : vector<1x39xf32> to vector<64x39xf32>
    %35 = vector.broadcast %33 : vector<64x1xf32> to vector<64x39xf32>
    %36 = arith.mulf %34, %35 : vector<64x39xf32>
    %37 = vector.broadcast %13 : vector<1x39xf32> to vector<64x39xf32>
    %38 = vector.broadcast %30 : vector<64x1xf32> to vector<64x39xf32>
    %39 = arith.mulf %37, %38 : vector<64x39xf32>
    %40 = arith.addf %36, %39 : vector<64x39xf32>
    %cst_10 = arith.constant 2.000000e+00 : f32
    %41 = vector.broadcast %cst_10 : f32 to vector<64x39xf32>
    %42 = arith.mulf %20, %41 : vector<64x39xf32>
    %cst_11 = arith.constant 5.000000e-01 : f32
    %43 = vector.broadcast %cst_11 : f32 to vector<64x39xf32>
    %44 = arith.subf %42, %43 : vector<64x39xf32>
    %45 = arith.addf %44, %40 : vector<64x39xf32>
    %46 = vector.broadcast %9 : vector<1x39xf32> to vector<64x39xf32>
    %47 = arith.mulf %45, %46 : vector<64x39xf32>
    %48 = arith.mulf %42, %42 : vector<64x39xf32>
    %49 = vector.broadcast %10 : vector<1x39xf32> to vector<64x39xf32>
    %50 = arith.mulf %48, %49 : vector<64x39xf32>
    %51 = arith.addf %47, %50 : vector<64x39xf32>
    %52 = vector.broadcast %11 : vector<1x39xf32> to vector<64x39xf32>
    %53 = arith.mulf %52, %20 : vector<64x39xf32>
    %54 = arith.addf %51, %53 : vector<64x39xf32>
    %55 = vector.extract_strided_slice %15 {offsets = [0, 0], sizes = [64, 13], strides = [1, 1]} : vector<64x39xf32> to vector<64x13xf32>
    %c0_12 = arith.constant 0 : index
    %c0_13 = arith.constant 0 : index
    %c0_14 = arith.constant 0 : index
    %c0_15 = arith.constant 0 : index
    %56 = vector.load %arg5[%c0_12, %c0_13, %c0_14, %c0_15] : memref<1x3x64x13xf32, #tpu.memory_space<vmem>>, vector<1x1x64x13xf32>
    %57 = vector.shape_cast %56 : vector<1x1x64x13xf32> to vector<64x13xf32>
    %58 = vector.shape_cast %55 : vector<64x13xf32> to vector<1x1x64x13xf32>
    tpu.vector_store %arg5[%c0_12, %c0_13, %c0_14, %c0_15], %58 {strides = array<i32>} : memref<1x3x64x13xf32, #tpu.memory_space<vmem>>, vector<1x1x64x13xf32>,
    %59 = vector.extract_strided_slice %54 {offsets = [0, 0], sizes = [64, 13], strides = [1, 1]} : vector<64x39xf32> to vector<64x13xf32>
    %c0_16 = arith.constant 0 : index
    %c0_17 = arith.constant 0 : index
    %c0_18 = arith.constant 0 : index
    %c0_19 = arith.constant 0 : index
    %60 = vector.load %arg6[%c0_16, %c0_17, %c0_18, %c0_19] : memref<1x3x64x13xf32, #tpu.memory_space<vmem>>, vector<1x1x64x13xf32>
    %61 = vector.shape_cast %60 : vector<1x1x64x13xf32> to vector<64x13xf32>
    %62 = vector.shape_cast %59 : vector<64x13xf32> to vector<1x1x64x13xf32>
    tpu.vector_store %arg6[%c0_16, %c0_17, %c0_18, %c0_19], %62 {strides = array<i32>} : memref<1x3x64x13xf32, #tpu.memory_space<vmem>>, vector<1x1x64x13xf32>,
    %63 = vector.extract_strided_slice %15 {offsets = [0, 13], sizes = [64, 13], strides = [1, 1]} : vector<64x39xf32> to vector<64x13xf32>
    %c0_20 = arith.constant 0 : index
    %c1 = arith.constant 1 : index
    %c0_21 = arith.constant 0 : index
    %c0_22 = arith.constant 0 : index
    %64 = vector.load %arg5[%c0_20, %c1, %c0_21, %c0_22] : memref<1x3x64x13xf32, #tpu.memory_space<vmem>>, vector<1x1x64x13xf32>
    %65 = vector.shape_cast %64 : vector<1x1x64x13xf32> to vector<64x13xf32>
    %66 = vector.shape_cast %63 : vector<64x13xf32> to vector<1x1x64x13xf32>
    tpu.vector_store %arg5[%c0_20, %c1, %c0_21, %c0_22], %66 {strides = array<i32>} : memref<1x3x64x13xf32, #tpu.memory_space<vmem>>, vector<1x1x64x13xf32>,
    %67 = vector.extract_strided_slice %54 {offsets = [0, 13], sizes = [64, 13], strides = [1, 1]} : vector<64x39xf32> to vector<64x13xf32>
    %c0_23 = arith.constant 0 : index
    %c1_24 = arith.constant 1 : index
    %c0_25 = arith.constant 0 : index
    %c0_26 = arith.constant 0 : index
    %68 = vector.load %arg6[%c0_23, %c1_24, %c0_25, %c0_26] : memref<1x3x64x13xf32, #tpu.memory_space<vmem>>, vector<1x1x64x13xf32>
    %69 = vector.shape_cast %68 : vector<1x1x64x13xf32> to vector<64x13xf32>
    %70 = vector.shape_cast %67 : vector<64x13xf32> to vector<1x1x64x13xf32>
    tpu.vector_store %arg6[%c0_23, %c1_24, %c0_25, %c0_26], %70 {strides = array<i32>} : memref<1x3x64x13xf32, #tpu.memory_space<vmem>>, vector<1x1x64x13xf32>,
    %71 = vector.extract_strided_slice %15 {offsets = [0, 26], sizes = [64, 13], strides = [1, 1]} : vector<64x39xf32> to vector<64x13xf32>
    %c0_27 = arith.constant 0 : index
    %c2 = arith.constant 2 : index
    %c0_28 = arith.constant 0 : index
    %c0_29 = arith.constant 0 : index
    %72 = vector.load %arg5[%c0_27, %c2, %c0_28, %c0_29] : memref<1x3x64x13xf32, #tpu.memory_space<vmem>>, vector<1x1x64x13xf32>
    %73 = vector.shape_cast %72 : vector<1x1x64x13xf32> to vector<64x13xf32>
    %74 = vector.shape_cast %71 : vector<64x13xf32> to vector<1x1x64x13xf32>
    tpu.vector_store %arg5[%c0_27, %c2, %c0_28, %c0_29], %74 {strides = array<i32>} : memref<1x3x64x13xf32, #tpu.memory_space<vmem>>, vector<1x1x64x13xf32>,
    %75 = vector.extract_strided_slice %54 {offsets = [0, 26], sizes = [64, 13], strides = [1, 1]} : vector<64x39xf32> to vector<64x13xf32>
    %c0_30 = arith.constant 0 : index
    %c2_31 = arith.constant 2 : index
    %c0_32 = arith.constant 0 : index
    %c0_33 = arith.constant 0 : index
    %76 = vector.load %arg6[%c0_30, %c2_31, %c0_32, %c0_33] : memref<1x3x64x13xf32, #tpu.memory_space<vmem>>, vector<1x1x64x13xf32>
    %77 = vector.shape_cast %76 : vector<1x1x64x13xf32> to vector<64x13xf32>
    %78 = vector.shape_cast %75 : vector<64x13xf32> to vector<1x1x64x13xf32>
    tpu.vector_store %arg6[%c0_30, %c2_31, %c0_32, %c0_33], %78 {strides = array<i32>} : memref<1x3x64x13xf32, #tpu.memory_space<vmem>>, vector<1x1x64x13xf32>,
    return
  }
  func.func @transform_0(%arg0: i32, %arg1: i32) -> (i32, i32, i32) {
    %c0_i32 = arith.constant 0 : i32
    %c0_i32_0 = arith.constant 0 : i32
    return %arg0, %c0_i32, %arg1 : i32, i32, i32
  }
  func.func @transform_1(%arg0: i32, %arg1: i32) -> (i32, i32) {
    %c0_i32 = arith.constant 0 : i32
    %c0_i32_0 = arith.constant 0 : i32
    %c0_i32_1 = arith.constant 0 : i32
    return %c0_i32, %c0_i32_0 : i32, i32
  }
  func.func @transform_2(%arg0: i32, %arg1: i32) -> (i32, i32) {
    %c0_i32 = arith.constant 0 : i32
    %c0_i32_0 = arith.constant 0 : i32
    %c0_i32_1 = arith.constant 0 : i32
    return %c0_i32, %c0_i32_0 : i32, i32
  }
  func.func @transform_3(%arg0: i32, %arg1: i32) -> (i32, i32, i32, i32) {
    %c0_i32 = arith.constant 0 : i32
    %c0_i32_0 = arith.constant 0 : i32
    %c0_i32_1 = arith.constant 0 : i32
    return %arg0, %c0_i32, %arg1, %c0_i32_0 : i32, i32, i32, i32
  }
  func.func @transform_4(%arg0: i32, %arg1: i32) -> (i32, i32, i32, i32) {
    %c0_i32 = arith.constant 0 : i32
    %c0_i32_0 = arith.constant 0 : i32
    %c0_i32_1 = arith.constant 0 : i32
    return %arg0, %c0_i32, %arg1, %c0_i32_0 : i32, i32, i32, i32
  }
}

module attributes {stable_mosaic.version = 11 : i64} {
  func.func @_head_decode_kernel(%arg0: i32, %arg1: i32, %arg2: memref<1x32x16xbf16, #tpu.memory_space<vmem>>, %arg3: memref<32x39xbf16, #tpu.memory_space<vmem>>, %arg4: memref<6x39xf32, #tpu.memory_space<vmem>>, %arg5: memref<1x3x16x13xf32, #tpu.memory_space<vmem>>, %arg6: memref<1x3x16x13xf32, #tpu.memory_space<vmem>>) attributes {dimension_semantics = [#tpu.dimension_semantics<parallel>, #tpu.dimension_semantics<parallel>], iteration_bounds = array<i64: 2, 1>, scalar_prefetch = 0 : i64, scratch_operands = 0 : i64, tpu.core_type = #tpu.core_type<tc>, window_params = [{transform_indices = @transform_0, window_bounds = array<i64: 1, 32, 16>}, {pipeline_mode = #tpu.pipeline_mode<synchronous>, transform_indices = @transform_1, window_bounds = array<i64: 32, 39>}, {pipeline_mode = #tpu.pipeline_mode<synchronous>, transform_indices = @transform_2, window_bounds = array<i64: 6, 39>}, {transform_indices = @transform_3, window_bounds = array<i64: 1, 3, 16, 13>}, {transform_indices = @transform_4, window_bounds = array<i64: 1, 3, 16, 13>}]} {
    %c0 = arith.constant 0 : index
    %c0_0 = arith.constant 0 : index
    %c0_1 = arith.constant 0 : index
    %0 = vector.load %arg2[%c0, %c0_0, %c0_1] : memref<1x32x16xbf16, #tpu.memory_space<vmem>>, vector<1x32x16xbf16>
    %1 = vector.shape_cast %0 : vector<1x32x16xbf16> to vector<32x16xbf16>
    %2 = arith.extf %1 : vector<32x16xbf16> to vector<32x16xf32>
    %3 = tpu.transpose %2, [1, 0] : vector<32x16xf32> -> vector<16x32xf32>
    %c0_2 = arith.constant 0 : index
    %c0_3 = arith.constant 0 : index
    %4 = vector.load %arg3[%c0_2, %c0_3] : memref<32x39xbf16, #tpu.memory_space<vmem>>, vector<32x39xbf16>
    %5 = arith.extf %4 : vector<32x39xbf16> to vector<32x39xf32>
    %cst = arith.constant dense<0.000000e+00> : vector<16x39xf32>
    %6 = tpu.matmul %3, %5, %cst {dimension_numbers = #tpu.dot_dimension_numbers<[1], [0], [0], [1], [0, 0, 1, 1], [], []>} : vector<16x32xf32>, vector<32x39xf32>, vector<16x39xf32> -> vector<16x39xf32>
    %c0_4 = arith.constant 0 : index
    %c0_5 = arith.constant 0 : index
    %7 = vector.load %arg4[%c0_4, %c0_5] : memref<6x39xf32, #tpu.memory_space<vmem>>, vector<6x39xf32>
    %8 = vector.extract_strided_slice %7 {offsets = [0, 0], sizes = [1, 39], strides = [1, 1]} : vector<6x39xf32> to vector<1x39xf32>
    %9 = vector.extract_strided_slice %7 {offsets = [1, 0], sizes = [1, 39], strides = [1, 1]} : vector<6x39xf32> to vector<1x39xf32>
    %10 = vector.extract_strided_slice %7 {offsets = [2, 0], sizes = [1, 39], strides = [1, 1]} : vector<6x39xf32> to vector<1x39xf32>
    %11 = vector.extract_strided_slice %7 {offsets = [3, 0], sizes = [1, 39], strides = [1, 1]} : vector<6x39xf32> to vector<1x39xf32>
    %12 = vector.extract_strided_slice %7 {offsets = [4, 0], sizes = [1, 39], strides = [1, 1]} : vector<6x39xf32> to vector<1x39xf32>
    %13 = vector.extract_strided_slice %7 {offsets = [5, 0], sizes = [1, 39], strides = [1, 1]} : vector<6x39xf32> to vector<1x39xf32>
    %14 = vector.broadcast %8 : vector<1x39xf32> to vector<16x39xf32>
    %15 = arith.addf %6, %14 : vector<16x39xf32>
    %16 = arith.negf %15 : vector<16x39xf32>
    %17 = math.exp %16 : vector<16x39xf32>
    %cst_6 = arith.constant 1.000000e+00 : f32
    %18 = vector.broadcast %cst_6 : f32 to vector<16x39xf32>
    %19 = arith.addf %18, %17 : vector<16x39xf32>
    %20 = arith.divf %18, %19 : vector<16x39xf32>
    %c16_i32 = arith.constant 16 : i32
    %21 = arith.muli %arg1, %c16_i32 : i32
    %22 = tpu.iota {dimensions = array<i32: 0>} : vector<16x1xi32>
    %23 = vector.broadcast %21 : i32 to vector<16x1xi32>
    %24 = arith.addi %23, %22 : vector<16x1xi32>
    %25 = arith.sitofp %24 : vector<16x1xi32> to vector<16x1xf32>
    %cst_7 = arith.constant 5.000000e-01 : f32
    %26 = vector.broadcast %cst_7 : f32 to vector<16x1xf32>
    %27 = arith.addf %25, %26 : vector<16x1xf32>
    %cst_8 = arith.constant 2.500000e-01 : f32
    %28 = vector.broadcast %cst_8 : f32 to vector<16x1xf32>
    %29 = arith.mulf %27, %28 : vector<16x1xf32>
    %30 = math.floor %29 : vector<16x1xf32>
    %cst_9 = arith.constant 4.000000e+00 : f32
    %31 = vector.broadcast %cst_9 : f32 to vector<16x1xf32>
    %32 = arith.mulf %30, %31 : vector<16x1xf32>
    %33 = arith.subf %25, %32 : vector<16x1xf32>
    %34 = vector.broadcast %12 : vector<1x39xf32> to vector<16x39xf32>
    %35 = vector.broadcast %33 : vector<16x1xf32> to vector<16x39xf32>
    %36 = arith.mulf %34, %35 : vector<16x39xf32>
    %37 = vector.broadcast %13 : vector<1x39xf32> to vector<16x39xf32>
    %38 = vector.broadcast %30 : vector<16x1xf32> to vector<16x39xf32>
    %39 = arith.mulf %37, %38 : vector<16x39xf32>
    %40 = arith.addf %36, %39 : vector<16x39xf32>
    %cst_10 = arith.constant 2.000000e+00 : f32
    %41 = vector.broadcast %cst_10 : f32 to vector<16x39xf32>
    %42 = arith.mulf %20, %41 : vector<16x39xf32>
    %cst_11 = arith.constant 5.000000e-01 : f32
    %43 = vector.broadcast %cst_11 : f32 to vector<16x39xf32>
    %44 = arith.subf %42, %43 : vector<16x39xf32>
    %45 = arith.addf %44, %40 : vector<16x39xf32>
    %46 = vector.broadcast %9 : vector<1x39xf32> to vector<16x39xf32>
    %47 = arith.mulf %45, %46 : vector<16x39xf32>
    %48 = arith.mulf %42, %42 : vector<16x39xf32>
    %49 = vector.broadcast %10 : vector<1x39xf32> to vector<16x39xf32>
    %50 = arith.mulf %48, %49 : vector<16x39xf32>
    %51 = arith.addf %47, %50 : vector<16x39xf32>
    %52 = vector.broadcast %11 : vector<1x39xf32> to vector<16x39xf32>
    %53 = arith.mulf %52, %20 : vector<16x39xf32>
    %54 = arith.addf %51, %53 : vector<16x39xf32>
    %55 = vector.extract_strided_slice %15 {offsets = [0, 0], sizes = [16, 13], strides = [1, 1]} : vector<16x39xf32> to vector<16x13xf32>
    %c0_12 = arith.constant 0 : index
    %c0_13 = arith.constant 0 : index
    %c0_14 = arith.constant 0 : index
    %c0_15 = arith.constant 0 : index
    %56 = vector.load %arg5[%c0_12, %c0_13, %c0_14, %c0_15] : memref<1x3x16x13xf32, #tpu.memory_space<vmem>>, vector<1x1x16x13xf32>
    %57 = vector.shape_cast %56 : vector<1x1x16x13xf32> to vector<16x13xf32>
    %58 = vector.shape_cast %55 : vector<16x13xf32> to vector<1x1x16x13xf32>
    tpu.vector_store %arg5[%c0_12, %c0_13, %c0_14, %c0_15], %58 {strides = array<i32>} : memref<1x3x16x13xf32, #tpu.memory_space<vmem>>, vector<1x1x16x13xf32>,
    %59 = vector.extract_strided_slice %54 {offsets = [0, 0], sizes = [16, 13], strides = [1, 1]} : vector<16x39xf32> to vector<16x13xf32>
    %c0_16 = arith.constant 0 : index
    %c0_17 = arith.constant 0 : index
    %c0_18 = arith.constant 0 : index
    %c0_19 = arith.constant 0 : index
    %60 = vector.load %arg6[%c0_16, %c0_17, %c0_18, %c0_19] : memref<1x3x16x13xf32, #tpu.memory_space<vmem>>, vector<1x1x16x13xf32>
    %61 = vector.shape_cast %60 : vector<1x1x16x13xf32> to vector<16x13xf32>
    %62 = vector.shape_cast %59 : vector<16x13xf32> to vector<1x1x16x13xf32>
    tpu.vector_store %arg6[%c0_16, %c0_17, %c0_18, %c0_19], %62 {strides = array<i32>} : memref<1x3x16x13xf32, #tpu.memory_space<vmem>>, vector<1x1x16x13xf32>,
    %63 = vector.extract_strided_slice %15 {offsets = [0, 13], sizes = [16, 13], strides = [1, 1]} : vector<16x39xf32> to vector<16x13xf32>
    %c0_20 = arith.constant 0 : index
    %c1 = arith.constant 1 : index
    %c0_21 = arith.constant 0 : index
    %c0_22 = arith.constant 0 : index
    %64 = vector.load %arg5[%c0_20, %c1, %c0_21, %c0_22] : memref<1x3x16x13xf32, #tpu.memory_space<vmem>>, vector<1x1x16x13xf32>
    %65 = vector.shape_cast %64 : vector<1x1x16x13xf32> to vector<16x13xf32>
    %66 = vector.shape_cast %63 : vector<16x13xf32> to vector<1x1x16x13xf32>
    tpu.vector_store %arg5[%c0_20, %c1, %c0_21, %c0_22], %66 {strides = array<i32>} : memref<1x3x16x13xf32, #tpu.memory_space<vmem>>, vector<1x1x16x13xf32>,
    %67 = vector.extract_strided_slice %54 {offsets = [0, 13], sizes = [16, 13], strides = [1, 1]} : vector<16x39xf32> to vector<16x13xf32>
    %c0_23 = arith.constant 0 : index
    %c1_24 = arith.constant 1 : index
    %c0_25 = arith.constant 0 : index
    %c0_26 = arith.constant 0 : index
    %68 = vector.load %arg6[%c0_23, %c1_24, %c0_25, %c0_26] : memref<1x3x16x13xf32, #tpu.memory_space<vmem>>, vector<1x1x16x13xf32>
    %69 = vector.shape_cast %68 : vector<1x1x16x13xf32> to vector<16x13xf32>
    %70 = vector.shape_cast %67 : vector<16x13xf32> to vector<1x1x16x13xf32>
    tpu.vector_store %arg6[%c0_23, %c1_24, %c0_25, %c0_26], %70 {strides = array<i32>} : memref<1x3x16x13xf32, #tpu.memory_space<vmem>>, vector<1x1x16x13xf32>,
    %71 = vector.extract_strided_slice %15 {offsets = [0, 26], sizes = [16, 13], strides = [1, 1]} : vector<16x39xf32> to vector<16x13xf32>
    %c0_27 = arith.constant 0 : index
    %c2 = arith.constant 2 : index
    %c0_28 = arith.constant 0 : index
    %c0_29 = arith.constant 0 : index
    %72 = vector.load %arg5[%c0_27, %c2, %c0_28, %c0_29] : memref<1x3x16x13xf32, #tpu.memory_space<vmem>>, vector<1x1x16x13xf32>
    %73 = vector.shape_cast %72 : vector<1x1x16x13xf32> to vector<16x13xf32>
    %74 = vector.shape_cast %71 : vector<16x13xf32> to vector<1x1x16x13xf32>
    tpu.vector_store %arg5[%c0_27, %c2, %c0_28, %c0_29], %74 {strides = array<i32>} : memref<1x3x16x13xf32, #tpu.memory_space<vmem>>, vector<1x1x16x13xf32>,
    %75 = vector.extract_strided_slice %54 {offsets = [0, 26], sizes = [16, 13], strides = [1, 1]} : vector<16x39xf32> to vector<16x13xf32>
    %c0_30 = arith.constant 0 : index
    %c2_31 = arith.constant 2 : index
    %c0_32 = arith.constant 0 : index
    %c0_33 = arith.constant 0 : index
    %76 = vector.load %arg6[%c0_30, %c2_31, %c0_32, %c0_33] : memref<1x3x16x13xf32, #tpu.memory_space<vmem>>, vector<1x1x16x13xf32>
    %77 = vector.shape_cast %76 : vector<1x1x16x13xf32> to vector<16x13xf32>
    %78 = vector.shape_cast %75 : vector<16x13xf32> to vector<1x1x16x13xf32>
    tpu.vector_store %arg6[%c0_30, %c2_31, %c0_32, %c0_33], %78 {strides = array<i32>} : memref<1x3x16x13xf32, #tpu.memory_space<vmem>>, vector<1x1x16x13xf32>,
    return
  }
  func.func @transform_0(%arg0: i32, %arg1: i32) -> (i32, i32, i32) {
    %c0_i32 = arith.constant 0 : i32
    %c0_i32_0 = arith.constant 0 : i32
    return %arg0, %c0_i32, %arg1 : i32, i32, i32
  }
  func.func @transform_1(%arg0: i32, %arg1: i32) -> (i32, i32) {
    %c0_i32 = arith.constant 0 : i32
    %c0_i32_0 = arith.constant 0 : i32
    %c0_i32_1 = arith.constant 0 : i32
    return %c0_i32, %c0_i32_0 : i32, i32
  }
  func.func @transform_2(%arg0: i32, %arg1: i32) -> (i32, i32) {
    %c0_i32 = arith.constant 0 : i32
    %c0_i32_0 = arith.constant 0 : i32
    %c0_i32_1 = arith.constant 0 : i32
    return %c0_i32, %c0_i32_0 : i32, i32
  }
  func.func @transform_3(%arg0: i32, %arg1: i32) -> (i32, i32, i32, i32) {
    %c0_i32 = arith.constant 0 : i32
    %c0_i32_0 = arith.constant 0 : i32
    %c0_i32_1 = arith.constant 0 : i32
    return %arg0, %c0_i32, %arg1, %c0_i32_0 : i32, i32, i32, i32
  }
  func.func @transform_4(%arg0: i32, %arg1: i32) -> (i32, i32, i32, i32) {
    %c0_i32 = arith.constant 0 : i32
    %c0_i32_0 = arith.constant 0 : i32
    %c0_i32_1 = arith.constant 0 : i32
    return %arg0, %c0_i32, %arg1, %c0_i32_0 : i32, i32, i32, i32
  }
}

</mosaic_0001>

<bundles_post_ra>
// kernel: yolov7_head_forward.4
= control target key start
LH: loop header
LB: loop body
LE: loop exit
PB: predicated region body
PF: predicated region fallthrough
CT: control target
= control target key end

     0   :  { %10 = vsyncpa [#allocation3], 0  ;;  %s1771_s0 = inlined_call_operand.vmem [shape: bf16[2,16,64], index: 0, kind: input, shape index: {}]   ;;  %s1772_s1 = inlined_call_operand.vmem [shape: bf16[16,39], index: 1, kind: input, shape index: {}]   ;;  %s1773_s2 = inlined_call_operand.vmem [shape: f32[6,39], index: 2, kind: input, shape index: {}]   ;;  %s1774_s3 = inlined_call_operand.hbm [shape: f32[2,3,64,13], index: 3, kind: output, shape index: {0}]   ;;  %s1775_s4 = inlined_call_operand.vmem [shape: f32[2,3,64,13], index: 4, kind: output, shape index: {1}]  }
   0x1   :  { %12 = vsyncpa [#allocation3 + $0x1], 0  ;;  %s1272_s15 = smov 0   ;;  %s1274_s16 = smov 0  }
   0x2   :  { %s1276_s17 = smov 0   ;;  %s1278_s18 = smov 0  }
   0x3   :  { %s1280_s19 = smov 0   ;;  %s1282_s20 = smov 0  }
   0x4 LB: > { %s986_s21 = sadd.s32 4294967295, %s1241_s20   ;;  %s987_s22 = sadd.s32 4294967294, %s1241_s20   ;;  %s1241_s20 = sphi %s1282_s20, %s18_s20   ;;  %s1237_s19 = sphi %s1280_s19, %s1784_s19   ;;  %s1233_s18 = sphi %s1278_s18, %s1783_s18   ;;  %s1229_s17 = sphi %s1276_s17, %s1782_s17   ;;  %s1225_s16 = sphi %s1274_s16, %s1781_s16   ;;  %s1221_s15 = sphi %s1272_s15, %s1780_s15  }
   0x5   : > { %s30_s23 = sadd.s32 1, %s1237_s19  ;;  %s109_s24 = sadd.s32 1, %s1229_s17 }
   0x6   : > { %p32_p0 = scmp.ge.s32.totalorder %s30_s23, 2  ;;  %p119_p1 = scmp.ne.s32.totalorder %s1229_s17, %s1225_s16 }
   0x7   : > { %p120_p2 = scmp.eq.s32.totalorder %s986_s21, 1  ;;  %p125_p3 = scmp.ne.s32.totalorder %s1225_s16, %s1221_s15 }
   0x8   : > { %s1786_s23 = smov (%p32_p0, %s30_s23), 0  ;;  %p126_p5 = scmp.eq.s32.totalorder %s987_s22, 1 }
   0x9   : > { %p1312_p4 = por %p120_p2, %p119_p1  ;;  %s104_s26 = ssub.s32 %s1237_s19, %s1786_s23 }
   0xa   : > { %p990_p6 = scmp.ge.s32.totalorder %s1241_s20, 1  ;;  %p107_p7 = scmp.eq.s32.totalorder %s104_s26, 0 }
   0xb   : > { %p1319_p8 = por %p126_p5, %p125_p3  ;;  %p189_p9 = scmp.lt.s32.totalorder %s1241_s20, 3 }
   0xc   : > { %s1325_s28 = scalar_select %p107_p7, %s1229_s17, %s109_s24  }
   0xd   : > { %p190_p10 = pnand %p990_p6, %p189_p9 }
   0xe   : > { %p227_p11 = scmp.lt.s32.totalorder (!%p190_p10), %s1233_s18, 1  ;;  %s213_s10 = sand.u32 (!%p190_p10), 1, %s1225_s16  }
   0xf   : > { %193 = sbr.rel (%p190_p10) target bundleno = 570 (0x23a), region = 32  ;;  %s1243_s21 = smov (!%p190_p10), 115  }
  0x10   : > { %s1068_s13 = smul.u32 (!%p190_p10), 192, %s213_s10  ;;  %s1244_s22 = smov (!%p190_p10), 102  }
  0x12   : > { %s1365_s14 = scalar_lea.vmem (!%p190_p10), [#allocation2], %s1068_s13 }
  0x14   : > { %v1059_v0 = vld [vmem:[%s1772_s1] sm:$0xff]   ;;  %s1332_s5 = scalar_select %p227_p11, %s1233_s18, 1  ;;  %vm288_vm0 = vcmask 130048   ;;  %v507_v14 = vlaneseq  ;;  %vm674_vm1 = vcmask 105472  }
  0x15   : > { %v1061_v1 = vunpack.c.h.bf16 %v1059_v0  ;;  %v1060_v2 = vunpack.c.l.bf16 %v1059_v0  ;;  %v1350_v15 = vld [vmem:[%s1773_s2] sm:$0x3f] }
  0x16   : > { %s1053_s6 = sshll.u32 %s1332_s5, 3  ;;  %v1355_v16 = vperm.slane %v1350_v15, 0  ;;  %v1357_v17 = vshrl.u32 %v507_v14, 7  ;;  %v1402_v51 = vperm.slane %v1350_v15, 4  ;;  %v1405_v52 = vperm.slane %v1350_v15, 5  ;;  %s1069_s24 = smul.u32 192, %s1332_s5 }
  0x17   : > { %327 = vmatpush.msra.mxu0 %v1061_v1  ;;  %1062 = vmatpush.msra.mxu1 %v1061_v1  ;;  %s234_s9 = scalar_lea.vmem %s1771_s0, %s1053_s6  ;;  %s1070_s5 = smul.u32 192, %s1233_s18 }
  0x18   : > { %1063 = vmatpush.msra.mxu2 %v1061_v1  ;;  %1064 = vmatpush.msra.mxu3 %v1061_v1  ;;  %v1055_v3 = vld [vmem:[%s234_s9] sm:$0xff]   ;;  %v509_v19 = vadd.s32 8, %v1357_v17  ;;  %v525_v21 = vcvt.s32.f32 %v1357_v17  ;;  %v1373_v27 = vadd.s32 16, %v1357_v17  ;;  %v1381_v36 = vadd.s32 24, %v1357_v17  ;;  %s1467_s30 = scalar_lea.vmem %s1775_s4, %s1069_s24  ;;  %s863_s9 = sshll.u32 %s1365_s14, 4  ;;  %s864_s9 = int_to_ptr.vmem [resolvable:$true] %s863_s9 }
  0x19   : > { %328 = vmatpush.msra.mxu0 %v1060_v2  ;;  %1065 = vmatpush.msra.mxu1 %v1060_v2  ;;  %v1056_v4 = vunpack.c.l.bf16 %v1055_v3  ;;  %v1057_v5 = vunpack.c.h.bf16 %v1055_v3  ;;  %v1428_v14 = vadd.s32 32, %v1357_v17  ;;  %s862_s8 = scalar_lea.hbm %s1774_s3, %s1070_s5  ;;  %s840_s18 = scalar_lea.sflag [#allocation3], %s213_s10 }
  0x1a   : > { %1066 = vmatpush.msra.mxu2 %v1060_v2  ;;  %1067 = vmatpush.msra.mxu3 %v1060_v2  ;;  %v526_v23 = vcvt.s32.f32 %v509_v19  ;;  %v533_v24 = vadd.f32 0.5, %v525_v21  ;;  %v527_v34 = vcvt.s32.f32 %v1373_v27  ;;  %v528_v42 = vcvt.s32.f32 %v1381_v36  ;;  %s865_s11 = sshll.u32 %s862_s8, 4  ;;  %s1183_s24 = scalar_lea.hbm %s1774_s3, 384  ;;  %s866_s11 = int_to_ptr.hbm [resolvable:$true] %s865_s11 }
  0x1b   : > { %250 = vxpose.xlu0.b32.start [1/2] (short) (narrow) %v1056_v4, 64  ;;  %s1177_s12 = sshra.s32 %s866_s11, 4  ;;  %s1178_s12 = int_to_ptr.hbm [resolvable:$true] %s1177_s12 }
  0x1c   : > { %v534_v26 = vadd.f32 0.5, %v526_v23  ;;  %v541_v29 = vmul.f32 0.125, %v533_v24  ;;  %v535_v39 = vadd.f32 0.5, %v527_v34  ;;  %v536_v53 = vadd.f32 0.5, %v528_v42  ;;  %s1179_s13 = scalar_lea.hbm %s1178_s12, 192  ;;  %p1184_p1 = scmp.lt.s32.totalorder %s1178_s12, %s1774_s3 }
  0x1d   : > { %p1180_p12 = scmp.ne.s32.totalorder %s1178_s12, %s1179_s13  ;;  %p1185_p2 = scmp.lt.s32.totalorder %s1183_s24, %s1179_s13 }
  0x1e   : > { %v542_v33 = vmul.f32 0.125, %v534_v26  ;;  %v549_v35 = vfloor.f32 %v541_v29  ;;  %v1398_v48 = vmul.f32 0.125, %v535_v39  ;;  %v1413_v0 = vmul.f32 0.125, %v536_v53 }
  0x1f   : > { %p1181_p13 = pnand %p1180_p12, %p1312_p4  ;;  %p1186_p3 = por %p1185_p2, %p1184_p1 }
  0x20   : > { %v550_v38 = vfloor.f32 %v542_v33  ;;  %v557_v41 = vmul.f32 8.0, %v549_v35  ;;  %v551_v58 = vfloor.f32 %v1398_v48  ;;  %v583_v63 = vmul.f32 %v1405_v52, %v549_v35 }
  0x21   : > { %v529_v35 = vcvt.s32.f32 %v1428_v14  ;;  %p1182_p0 = pneg %p1181_p13 }
  0x22   : > { %v558_v47 = vmul.f32 8.0, %v550_v38  ;;  %v565_v50 = vsub.f32 %v525_v21, %v557_v41  ;;  %v584_v4 = vmul.f32 %v1405_v52, %v550_v38  ;;  %v1431_v21 = vperm.slane %v1350_v15, 2 }
  0x23   : > { %251 = vxpose.xlu0.b32.end [2/2] (short) (narrow) %v1057_v5, 64  ;;  %v585_v38 = vmul.f32 %v1405_v52, %v551_v58  ;;  %p1187_p5 = pnand %p1186_p3, %p1182_p0 }
  0x24   : > { %v566_v57 = vsub.f32 %v526_v23, %v558_v47  ;;  %v574_v62 = vmul.f32 %v1402_v51, %v565_v50  ;;  %v1434_v23 = vperm.slane %v1350_v15, 1  ;;  %v537_v50 = vadd.f32 0.5, %v529_v35 }
  0xbf   : > { %v266_v6 = vpop.trf.xlu0 }
  0xc0   : > { %994 = vmatmul.msk.f32.vlgmr.msra.gmra.mxu0 %vm288_vm0, %v266_v6 }
  0xc7   : > { %v267_v7 = vpop.trf.xlu0 }
  0xc8   : > { %995 = vmatmul.msk.f32.gmra.mxu0 %vm288_vm0, %v267_v7 }
  0xcf   : > { %v268_v8 = vpop.trf.xlu0 }
  0xd0   : > { %996 = vmatmul.msk.f32.vlgmr.msra.gmra.mxu1 %vm288_vm0, %v268_v8  ;;  %v575_v8 = vmul.f32 %v1402_v51, %v566_v57 }
  0xd7   : > { %v269_v9 = vpop.trf.xlu0 }
  0xd8   : > { %997 = vmatmul.msk.f32.gmra.mxu1 %vm288_vm0, %v269_v9  ;;  %v559_v9 = vmul.f32 8.0, %v551_v58 }
  0xda   : > { %v567_v26 = vsub.f32 %v527_v34, %v559_v9 }
  0xdf   : > { %v270_v10 = vpop.trf.xlu0 }
  0xe0   : > { %998 = vmatmul.msk.f32.vlgmr.msra.gmra.mxu2 %vm288_vm0, %v270_v10 }
  0xe7   : > { %v271_v11 = vpop.trf.xlu0 }
  0xe8   : > { %999 = vmatmul.msk.f32.gmra.mxu2 %vm288_vm0, %v271_v11 }
  0xef   : > { %v272_v12 = vpop.trf.xlu0 }
  0xf0   : > { %1000 = vmatmul.msk.f32.vlgmr.msra.gmra.mxu3 %vm288_vm0, %v272_v12 }
  0xf7   : > { %v273_v13 = vpop.trf.xlu0 }
  0xf8   : > { %1001 = vmatmul.msk.f32.gmra.mxu3 %vm288_vm0, %v273_v13  ;;  %v552_v13 = vfloor.f32 %v1413_v0 }
  0xfa   : > { %v560_v33 = vmul.f32 8.0, %v552_v13 }
 0x13d   : > { %v330_v18 = vpop.f32.mrf.mxu0 }
 0x13e   : > { %v1361_v20 = vadd.f32 %v330_v18, %v1355_v16  ;;  %v591_v18 = vadd.f32 %v583_v63, %v574_v62 }
 0x140   : > { %v1002_v22 = vmul.f32 -1.442695, %v1361_v20  ;;  %675 = vst.msk [vmem:[%s1365_s14] sm:$0xff] %vm674_vm1, %v1361_v20  ;;  %699 = vrot.lane.b32.xlu1 %v1361_v20, %s1243_s21 }
 0x142   : > { %1131 = vpow2.f32 %v1002_v22 }
 0x145   : > { %v333_v25 = vpop.f32.mrf.mxu0 }
 0x146   : > { %v334_v28 = vadd.f32 %v333_v25, %v1355_v16 }
 0x148   : > { %v1132_v30 = vpop.eup %1131  ;;  %v1003_v31 = vmul.f32 -1.442695, %v334_v28  ;;  %676 = vst.msk [vmem:[%s1365_s14 + $0x8] sm:$0xff] %vm674_vm1, %v334_v28  ;;  %701 = vrot.lane.b32.xlu1 %v334_v28, %s1243_s21 }
 0x149   : > { %v378_v32 = vadd.f32 1.0, %v1132_v30 }
 0x14a   : > { %1133 = vpow2.f32 %v1003_v31  ;;  %v1441_v31 = vperm.slane %v1350_v15, 3 }
 0x14b   : > { %1135 = vrcp.f32 %v378_v32  ;;  %v397_v56 = vand.u32 2147483648, %v378_v32  ;;  %v395_v61 = vand.u32 2147483647, %v378_v32  ;;  %vm391_vm3 = vweird.f32 %v378_v32 }
 0x14d   : > { %v336_v37 = vpop.f32.mrf.mxu1  ;;  %v398_v7 = vor.u32 1.1754944e-38, %v397_v56  ;;  %vm396_vm5 = vcmp.eq.f32.partialorder %v395_v61, 8.507059e+37 }
 0x14e   : > { %v1386_v40 = vadd.f32 %v336_v37, %v1355_v16 }
 0x150   : > { %v1134_v43 = vpop.eup %1133  ;;  %v1004_v44 = vmul.f32 -1.442695, %v1386_v40  ;;  %677 = vst.msk [vmem:[%s1365_s14 + $0x10] sm:$0xff] %vm674_vm1, %v1386_v40  ;;  %775 = vrot.lane.b32.xlu1 %v334_v28, %s1244_s22  ;;  %703 = vrot.lane.b32.xlu2 %v1386_v40, %s1243_s21 }
 0x151   : > { %v1136_v45 = vpop.eup %1135  ;;  %v1396_v46 = vadd.f32 1.0, %v1134_v43  ;;  %v576_v43 = vmul.f32 %v1402_v51, %v567_v26 }
 0x152   : > { %1137 = vpow2.f32 %v1004_v44  ;;  %v387_v49 = vmul.f32 %v1136_v45, %v378_v32  ;;  %vm392_vm2 = vweird.f32 %v1136_v45  ;;  %v592_v32 = vadd.f32 %v584_v4, %v575_v8 }
 0x153   : > { %1139 = vrcp.f32 %v1396_v46  ;;  %vm393_vm4 = vmor %vm391_vm3, %vm392_vm2  ;;  %v410_v24 = vand.u32 2147483647, %v1396_v46  ;;  %v412_v25 = vand.u32 2147483648, %v1396_v46  ;;  %vm406_vm7 = vweird.f32 %v1396_v46 }
 0x154   : > { %v388_v54 = vsub.f32 1.0, %v387_v49  ;;  %v568_v49 = vsub.f32 %v528_v42, %v560_v33  ;;  %v1472_v42 = vadd.s32 40, %v1357_v17 }
 0x155   : > { %v339_v55 = vpop.f32.mrf.mxu1  ;;  %vm411_vm9 = vcmp.eq.f32.partialorder %v410_v24, 8.507059e+37  ;;  %v413_v41 = vor.u32 1.1754944e-38, %v412_v25 }
 0x156   : > { %v340_v59 = vadd.f32 %v339_v55, %v1355_v16  ;;  %v389_v60 = vmul.f32 %v1136_v45, %v388_v54  ;;  %v577_v4 = vmul.f32 %v1402_v51, %v568_v49  ;;  %v530_v9 = vcvt.s32.f32 %v1472_v42 }
 0x158   : > { %v1138_v1 = vpop.eup %1137  ;;  %v1005_v2 = vmul.f32 -1.442695, %v340_v59  ;;  %678 = vst.msk [vmem:[%s1365_s14 + $0x18] sm:$0xff] %vm674_vm1, %v340_v59  ;;  %779 = vrot.lane.b32.xlu1 %v340_v59, %s1244_s22  ;;  %705 = vrot.lane.b32.xlu2 %v340_v59, %s1243_s21  ;;  %v390_v3 = vadd.f32 %v1136_v45, %v389_v60 }
 0x159   : > { %v1140_v5 = vpop.eup %1139  ;;  %v1420_v6 = vadd.f32 1.0, %v1138_v1  ;;  %v593_v1 = vadd.f32 %v585_v38, %v576_v43 }
 0x15a   : > { %1141 = vpow2.f32 %v1005_v2  ;;  %v394_v10 = vsel %vm393_vm4, %v1136_v45, %v390_v3  ;;  %v402_v11 = vmul.f32 %v1140_v5, %v1396_v46  ;;  %vm407_vm6 = vweird.f32 %v1140_v5 }
 0x15b   : > { %1143 = vrcp.f32 %v1420_v6  ;;  %v399_v12 = vsel %vm396_vm5, %v398_v7, %v394_v10  ;;  %vm408_vm8 = vmor %vm406_vm7, %vm407_vm6  ;;  %v425_v58 = vand.u32 2147483647, %v1420_v6  ;;  %v427_v36 = vand.u32 2147483648, %v1420_v6 }
 0x15c   : > { %v599_v19 = vmul.f32 2.0, %v399_v12  ;;  %v403_v22 = vsub.f32 1.0, %v402_v11  ;;  %v658_v55 = vmul.f32 %v1441_v31, %v399_v12  ;;  %v1479_v2 = vmul.f32 0.125, %v537_v50 }
 0x15d   : > { %vm421_vm11 = vweird.f32 %v1420_v6  ;;  %vm426_vm12 = vcmp.eq.f32.partialorder %v425_v58, 8.507059e+37  ;;  %v428_v11 = vor.u32 1.1754944e-38, %v427_v36 }
 0x15e   : > { %v1010_v28 = vadd.f32 -0.5, %v599_v19  ;;  %v632_v29 = vmul.f32 %v599_v19, %v599_v19  ;;  %v404_v30 = vmul.f32 %v1140_v5, %v403_v22 }
 0x160   : > { %v1142_v37 = vpop.eup %1141  ;;  %773 = vrot.lane.b32.xlu2 %v1361_v20, %s1244_s22  ;;  %v615_v27 = vadd.f32 %v1010_v28, %v591_v18  ;;  %v405_v34 = vadd.f32 %v1140_v5, %v404_v30  ;;  %v641_v45 = vmul.f32 %v1431_v21, %v632_v29  ;;  %v538_v30 = vadd.f32 0.5, %v530_v9 }
 0x161   : > { %v1144_v39 = vpop.eup %1143  ;;  %v1451_v15 = vadd.f32 1.0, %v1142_v37 }
 0x162   : > { %v624_v44 = vmul.f32 %v1434_v23, %v615_v27  ;;  %v409_v20 = vsel %vm408_vm8, %v1140_v5, %v405_v34  ;;  %v417_v47 = vmul.f32 %v1144_v39, %v1420_v6  ;;  %vm422_vm10 = vweird.f32 %v1144_v39 }
 0x163   : > { %1145 = vrcp.f32 %v1451_v15  ;;  %v342_v46 = vpop.f32.mrf.mxu2  ;;  %v414_v48 = vsel %vm411_vm9, %v413_v41, %v409_v20  ;;  %v586_v5 = vmul.f32 %v1405_v52, %v552_v13  ;;  %vm423_vm13 = vmor %vm421_vm11, %vm422_vm10  ;;  %v442_v19 = vand.u32 2147483648, %v1451_v15 }
 0x164   : > { %v343_v53 = vadd.f32 %v342_v46, %v1355_v16  ;;  %v649_v54 = vadd.f32 %v641_v45, %v624_v44  ;;  %v600_v56 = vmul.f32 2.0, %v414_v48  ;;  %v418_v57 = vsub.f32 1.0, %v417_v47 }
 0x165   : > { %v659_v13 = vmul.f32 %v1441_v31, %v414_v48  ;;  %v553_v6 = vfloor.f32 %v1479_v2  ;;  %v440_v29 = vand.u32 2147483647, %v1451_v15  ;;  %vm436_vm15 = vweird.f32 %v1451_v15 }
 0x166   : > { %v1006_v59 = vmul.f32 -1.442695, %v343_v53  ;;  %679 = vst.msk [vmem:[%s1365_s14 + $0x20] sm:$0xff] %vm674_vm1, %v343_v53  ;;  %707 = vrot.lane.b32.xlu0 %v343_v53, %s1243_s21  ;;  %v1477_v60 = vadd.f32 %v658_v55, %v649_v54  ;;  %v1011_v61 = vadd.f32 -0.5, %v600_v56  ;;  %v633_v62 = vmul.f32 %v600_v56, %v600_v56 }
 0x167   : > { %v419_v63 = vmul.f32 %v1144_v39, %v418_v57  ;;  %v443_v44 = vor.u32 1.1754944e-38, %v442_v19  ;;  %v561_v45 = vmul.f32 8.0, %v553_v6  ;;  %v1519_v47 = vmul.f32 0.125, %v538_v30 }
 0x168   : > { %1147 = vpow2.f32 %v1006_v59  ;;  %777 = vrot.lane.b32.xlu2 %v1386_v40, %s1244_s22  ;;  %683 = vst.msk [vmem:[%s1467_s30] sm:$0xff] %vm674_vm1, %v1477_v60  ;;  %v616_v3 = vadd.f32 %v1011_v61, %v592_v32  ;;  %v642_v40 = vmul.f32 %v1431_v21, %v633_v62  ;;  %v1504_v32 = vadd.s32 48, %v1357_v17 }
 0x169   : > { %v1146_v7 = vpop.eup %1145  ;;  %v420_v8 = vadd.f32 %v1144_v39, %v419_v63  ;;  %vm441_vm2 = vcmp.eq.f32.partialorder %v440_v29, 8.507059e+37  ;;  %v594_v55 = vadd.f32 %v586_v5, %v577_v4  ;;  %v569_v57 = vsub.f32 %v529_v35, %v561_v45 }
 0x16a   : > { %v625_v10 = vmul.f32 %v1434_v23, %v616_v3  ;;  %v432_v12 = vmul.f32 %v1146_v7, %v1451_v15  ;;  %vm437_vm14 = vweird.f32 %v1146_v7  ;;  %v531_v46 = vcvt.s32.f32 %v1504_v32 }
 0x16b   : > { %v345_v0 = vpop.f32.mrf.mxu2  ;;  %v424_v18 = vsel %vm423_vm13, %v1144_v39, %v420_v8  ;;  %vm438_vm0 = vmor %vm436_vm15, %vm437_vm14  ;;  %v554_v59 = vfloor.f32 %v1519_v47  ;;  %v1543_v4 = vadd.s32 56, %v1357_v17  ;;  %v587_v8 = vmul.f32 %v1405_v52, %v553_v6 }
 0x16c   : > { %v346_v22 = vadd.f32 %v345_v0, %v1355_v16  ;;  %v650_v24 = vadd.f32 %v642_v40, %v625_v10  ;;  %v429_v25 = vsel %vm426_vm12, %v428_v11, %v424_v18  ;;  %v433_v26 = vsub.f32 1.0, %v432_v12 }
 0x16d   : > { %v601_v28 = vmul.f32 2.0, %v429_v25  ;;  %v660_v36 = vmul.f32 %v1441_v31, %v429_v25  ;;  %v539_v61 = vadd.f32 0.5, %v531_v46  ;;  %v578_v10 = vmul.f32 %v1402_v51, %v569_v57 }
 0x16e   : > { %v1148_v33 = vpop.eup %1147  ;;  %v1007_v37 = vmul.f32 -1.442695, %v346_v22  ;;  %680 = vst.msk [vmem:[%s1365_s14 + $0x28] sm:$0xff] %vm674_vm1, %v346_v22  ;;  %709 = vrot.lane.b32.xlu1 %v346_v22, %s1243_s21  ;;  %v1509_v27 = vadd.f32 %v659_v13, %v650_v24  ;;  %v434_v34 = vmul.f32 %v1146_v7, %v433_v26  ;;  %v562_v40 = vmul.f32 8.0, %v554_v59 }
 0x16f   : > { %v1511_v38 = vadd.f32 1.0, %v1148_v33  ;;  %v1012_v39 = vadd.f32 -0.5, %v601_v28  ;;  %v634_v41 = vmul.f32 %v601_v28, %v601_v28  ;;  %v1554_v11 = vmul.f32 0.125, %v539_v61 }
 0x170   : > { %1149 = vpow2.f32 %v1007_v37  ;;  %781 = vrot.lane.b32.xlu2 %v343_v53, %s1244_s22  ;;  %684 = vst.msk [vmem:[%s1467_s30 + $0x8] sm:$0xff] %vm674_vm1, %v1509_v27  ;;  %v435_v43 = vadd.f32 %v1146_v7, %v434_v34  ;;  %v595_v28 = vadd.f32 %v587_v8, %v578_v10  ;;  %v570_v29 = vsub.f32 %v530_v9, %v562_v40 }
 0x171   : > { %1151 = vrcp.f32 %v1511_v38  ;;  %v617_v20 = vadd.f32 %v1012_v39, %v593_v1  ;;  %v643_v50 = vmul.f32 %v1431_v21, %v634_v41  ;;  %v455_v19 = vand.u32 2147483647, %v1511_v38 }
 0x172   : > { %v439_v48 = vsel %vm438_vm0, %v1146_v7, %v435_v43  ;;  %v457_v6 = vand.u32 2147483648, %v1511_v38  ;;  %v555_v30 = vfloor.f32 %v1554_v11  ;;  %vm451_vm4 = vweird.f32 %v1511_v38 }
 0x173   : > { %v348_v15 = vpop.f32.mrf.mxu3  ;;  %v626_v49 = vmul.f32 %v1434_v23, %v617_v20  ;;  %v444_v53 = vsel %vm441_vm2, %v443_v44, %v439_v48  ;;  %v588_v41 = vmul.f32 %v1405_v52, %v554_v59  ;;  %vm456_vm6 = vcmp.eq.f32.partialorder %v455_v19, 8.507059e+37 }
 0x174   : > { %v1525_v54 = vadd.f32 %v348_v15, %v1355_v16  ;;  %v602_v56 = vmul.f32 2.0, %v444_v53  ;;  %v661_v18 = vmul.f32 %v1441_v31, %v444_v53  ;;  %v458_v9 = vor.u32 1.1754944e-38, %v457_v6 }
 0x175   : > { %v651_v58 = vadd.f32 %v643_v50, %v626_v49  ;;  %v579_v20 = vmul.f32 %v1402_v51, %v570_v29  ;;  %v563_v47 = vmul.f32 8.0, %v555_v30 }
 0x176   : > { %v1150_v62 = vpop.eup %1149  ;;  %v1008_v63 = vmul.f32 -1.442695, %v1525_v54  ;;  %681 = vst.msk [vmem:[%s1365_s14 + $0x30] sm:$0xff] %vm674_vm1, %v1525_v54  ;;  %783 = vrot.lane.b32.xlu1 %v346_v22, %s1244_s22  ;;  %v1013_v1 = vadd.f32 -0.5, %v602_v56  ;;  %v635_v14 = vmul.f32 %v602_v56, %v602_v56  ;;  %v532_v22 = vcvt.s32.f32 %v1543_v4 }
 0x177   : > { %v1152_v35 = vpop.eup %1151  ;;  %v1538_v2 = vadd.f32 1.0, %v1150_v62  ;;  %v1540_v3 = vadd.f32 %v660_v36, %v651_v58  ;;  %v596_v57 = vadd.f32 %v588_v41, %v579_v20  ;;  %v571_v58 = vsub.f32 %v531_v46, %v563_v47 }
 0x178   : > { %1153 = vpow2.f32 %v1008_v63  ;;  %740 = vrot.lane.b32.xlu2 %v1477_v60, %s1243_s21  ;;  %v618_v5 = vadd.f32 %v1013_v1, %v594_v55  ;;  %v447_v7 = vmul.f32 %v1152_v35, %v1511_v38  ;;  %v644_v12 = vmul.f32 %v1431_v21, %v635_v14 }
 0x179   : > { %1155 = vrcp.f32 %v1538_v2  ;;  %685 = vst.msk [vmem:[%s1467_s30 + $0x10] sm:$0xff] %vm674_vm1, %v1540_v3  ;;  %vm452_vm3 = vweird.f32 %v1152_v35  ;;  %v540_v43 = vadd.f32 0.5, %v532_v22  ;;  %v470_v49 = vand.u32 2147483647, %v1538_v2 }
 0x17a   : > { %v627_v17 = vmul.f32 %v1434_v23, %v618_v5  ;;  %v448_v0 = vsub.f32 1.0, %v447_v7  ;;  %vm453_vm5 = vmor %vm451_vm4, %vm452_vm3  ;;  %v472_v50 = vand.u32 2147483648, %v1538_v2  ;;  %vm466_vm8 = vweird.f32 %v1538_v2 }
 0x17b   : > { %v351_v13 = vpop.f32.mrf.mxu3  ;;  %vm471_vm9 = vcmp.eq.f32.partialorder %v470_v49, 8.507059e+37 }
 0x17c   : > { %v1563_v24 = vadd.f32 %v351_v13, %v1355_v16  ;;  %v652_v25 = vadd.f32 %v644_v12, %v627_v17  ;;  %v449_v26 = vmul.f32 %v1152_v35, %v448_v0  ;;  %v473_v62 = vor.u32 1.1754944e-38, %v472_v50 }
 0x17d   : > { %v580_v17 = vmul.f32 %v1402_v51, %v571_v58  ;;  %v589_v12 = vmul.f32 %v1405_v52, %v555_v30 }
 0x17e   : > { %v1154_v33 = vpop.eup %1153  ;;  %v1009_v37 = vmul.f32 -1.442695, %v1563_v24  ;;  %682 = vst.msk [vmem:[%s1365_s14 + $0x38] sm:$0xff] %vm674_vm1, %v1563_v24  ;;  %742 = vrot.lane.b32.xlu1 %v1509_v27, %s1243_s21  ;;  %v1574_v16 = vadd.f32 %v661_v18, %v652_v25  ;;  %v450_v34 = vadd.f32 %v1152_v35, %v449_v26 }
 0x17f   : > { %v1156_v39 = vpop.eup %1155  ;;  %v1577_v42 = vadd.f32 1.0, %v1154_v33  ;;  %v597_v33 = vadd.f32 %v589_v12, %v580_v17 }
 0x180   : > { %1157 = vpow2.f32 %v1009_v37  ;;  %806 = vrot.lane.b32.xlu2 %v1477_v60, %s1244_s22  ;;  %686 = vst.msk [vmem:[%s1467_s30 + $0x18] sm:$0xff] %vm674_vm1, %v1574_v16  ;;  %v454_v44 = vsel %vm453_vm5, %v1152_v35, %v450_v34  ;;  %v462_v38 = vmul.f32 %v1156_v39, %v1538_v2  ;;  %v1592_v60 = vmul.f32 0.125, %v540_v43 }
 0x181   : > { %1159 = vrcp.f32 %v1577_v42  ;;  %v459_v45 = vsel %vm456_vm6, %v458_v9, %v454_v44  ;;  %vm467_vm7 = vweird.f32 %v1156_v39  ;;  %vm481_vm11 = vweird.f32 %v1577_v42 }
 0x182   : > { %v603_v48 = vmul.f32 2.0, %v459_v45  ;;  %v463_v15 = vsub.f32 1.0, %v462_v38  ;;  %vm468_vm10 = vmor %vm466_vm8, %vm467_vm7  ;;  %v485_v14 = vand.u32 2147483647, %v1577_v42  ;;  %v556_v35 = vfloor.f32 %v1592_v60 }
 0x183   : > { %v662_v5 = vmul.f32 %v1441_v31, %v459_v45  ;;  %v487_v8 = vand.u32 2147483648, %v1577_v42 }
 0x184   : > { %v1014_v53 = vadd.f32 -0.5, %v603_v48  ;;  %v636_v55 = vmul.f32 %v603_v48, %v603_v48  ;;  %v464_v56 = vmul.f32 %v1156_v39, %v463_v15  ;;  %v564_v0 = vmul.f32 8.0, %v556_v35 }
 0x185   : > { %v488_v26 = vor.u32 1.1754944e-38, %v487_v8  ;;  %vm486_vm14 = vcmp.eq.f32.partialorder %v485_v14, 8.507059e+37  ;;  %v590_v50 = vmul.f32 %v1405_v52, %v556_v35 }
 0x186   : > { %v1158_v36 = vpop.eup %1157  ;;  %808 = vrot.lane.b32.xlu1 %v1509_v27, %s1244_s22  ;;  %v619_v59 = vadd.f32 %v1014_v53, %v595_v28  ;;  %v465_v61 = vadd.f32 %v1156_v39, %v464_v56  ;;  %v645_v27 = vmul.f32 %v1431_v21, %v636_v55  ;;  %v572_v37 = vsub.f32 %v532_v22, %v564_v0 }
 0x187   : > { %v1160_v63 = vpop.eup %1159  ;;  %v385_v1 = vadd.f32 1.0, %v1158_v36 }
 0x188   : > { %711 = vrot.lane.b32.xlu2 %v1525_v54, %s1243_s21  ;;  %v628_v32 = vmul.f32 %v1434_v23, %v619_v59  ;;  %v469_v46 = vsel %vm468_vm10, %v1156_v39, %v465_v61  ;;  %v477_v2 = vmul.f32 %v1160_v63, %v1577_v42  ;;  %vm482_vm12 = vweird.f32 %v1160_v63 }
 0x189   : > { %1161 = vrcp.f32 %v385_v1  ;;  %v474_v7 = vsel %vm471_vm9, %v473_v62, %v469_v46  ;;  %vm1615_vm13 = vmor %vm481_vm11, %vm482_vm12  ;;  %vm496_vm15 = vweird.f32 %v385_v1  ;;  %v500_v44 = vand.u32 2147483647, %v385_v1 }
 0x18a   : > { %v653_v10 = vadd.f32 %v645_v27, %v628_v32  ;;  %v604_v40 = vmul.f32 2.0, %v474_v7  ;;  %v478_v11 = vsub.f32 1.0, %v477_v2  ;;  %v663_v41 = vmul.f32 %v1441_v31, %v474_v7 }
 0x18b   : > { %v502_v38 = vand.u32 2147483648, %v385_v1  ;;  %v581_v49 = vmul.f32 %v1402_v51, %v572_v37  ;;  %vm501_vm3 = vcmp.eq.f32.partialorder %v500_v44, 8.507059e+37 }
 0x18c   : > { %v1611_v13 = vadd.f32 %v662_v5, %v653_v10  ;;  %v1015_v18 = vadd.f32 -0.5, %v604_v40  ;;  %v637_v19 = vmul.f32 %v604_v40, %v604_v40  ;;  %v479_v6 = vmul.f32 %v1160_v63, %v478_v11 }
 0x18d   : > { %v503_v15 = vor.u32 1.1754944e-38, %v502_v38 }
 0x18e   : > { %713 = vrot.lane.b32.xlu1 %v1563_v24, %s1243_s21  ;;  %687 = vst.msk [vmem:[%s1467_s30 + $0x20] sm:$0xff] %vm674_vm1, %v1611_v13  ;;  %v620_v28 = vadd.f32 %v1015_v18, %v596_v57  ;;  %v480_v29 = vadd.f32 %v1160_v63, %v479_v6  ;;  %v646_v39 = vmul.f32 %v1431_v21, %v637_v19 }
 0x18f   : > { %v1162_v30 = vpop.eup %1161 }
 0x190   : > { %785 = vrot.lane.b32.xlu2 %v1525_v54, %s1244_s22  ;;  %v629_v34 = vmul.f32 %v1434_v23, %v620_v28  ;;  %v484_v42 = vsel %vm1615_vm13, %v1160_v63, %v480_v29  ;;  %v492_v9 = vmul.f32 %v1162_v30, %v385_v1  ;;  %vm497_vm0 = vweird.f32 %v1162_v30 }
 0x191   : > { %v489_v43 = vsel %vm486_vm14, %v488_v26, %v484_v42  ;;  %vm498_vm2 = vmor %vm496_vm15, %vm497_vm0 }
 0x192   : > { %v654_v45 = vadd.f32 %v646_v39, %v629_v34  ;;  %v605_v4 = vmul.f32 2.0, %v489_v43  ;;  %v493_v22 = vsub.f32 1.0, %v492_v9  ;;  %v664_v52 = vmul.f32 %v1441_v31, %v489_v43 }
 0x194   : > { %v671_v20 = vadd.f32 %v663_v41, %v654_v45  ;;  %v1016_v54 = vadd.f32 -0.5, %v605_v4  ;;  %v638_v47 = vmul.f32 %v605_v4, %v605_v4  ;;  %v494_v48 = vmul.f32 %v1162_v30, %v493_v22 }
 0x196   : > { %787 = vrot.lane.b32.xlu1 %v1563_v24, %s1244_s22  ;;  %688 = vst.msk [vmem:[%s1467_s30 + $0x28] sm:$0xff] %vm674_vm1, %v671_v20  ;;  %v621_v60 = vadd.f32 %v1016_v54, %v597_v33  ;;  %v647_v53 = vmul.f32 %v1431_v21, %v638_v47  ;;  %v495_v55 = vadd.f32 %v1162_v30, %v494_v48 }
 0x197   : > { %v598_v24 = vadd.f32 %v590_v50, %v581_v49 }
 0x198   : > { %744 = vrot.lane.b32.xlu2 %v1540_v3, %s1243_s21  ;;  %v630_v56 = vmul.f32 %v1434_v23, %v621_v60  ;;  %v499_v57 = vsel %vm498_vm2, %v1162_v30, %v495_v55 }
 0x199   : > { %v504_v51 = vsel %vm501_vm3, %v503_v15, %v499_v57 }
 0x19a   : > { %v655_v58 = vadd.f32 %v647_v53, %v630_v56  ;;  %v606_v36 = vmul.f32 2.0, %v504_v51  ;;  %v665_v32 = vmul.f32 %v1441_v31, %v504_v51 }
 0x19c   : > { %v672_v59 = vadd.f32 %v664_v52, %v655_v58  ;;  %v1017_v61 = vadd.f32 -0.5, %v606_v36  ;;  %v639_v62 = vmul.f32 %v606_v36, %v606_v36 }
 0x19e   : > { %746 = vrot.lane.b32.xlu1 %v1574_v16, %s1243_s21  ;;  %689 = vst.msk [vmem:[%s1467_s30 + $0x30] sm:$0xff] %vm674_vm1, %v672_v59  ;;  %v622_v63 = vadd.f32 %v1017_v61, %v598_v24  ;;  %v648_v1 = vmul.f32 %v1431_v21, %v639_v62 }
 0x1a0   : > { %810 = vrot.lane.b32.xlu2 %v1540_v3, %s1244_s22  ;;  %v631_v14 = vmul.f32 %v1434_v23, %v622_v63 }
 0x1a2   : > { %v656_v35 = vadd.f32 %v648_v1, %v631_v14 }
 0x1a4   : > { %v673_v27 = vadd.f32 %v665_v32, %v656_v35 }
 0x1a6   : > { %812 = vrot.lane.b32.xlu1 %v1574_v16, %s1244_s22  ;;  %690 = vst.msk [vmem:[%s1467_s30 + $0x38] sm:$0xff] %vm674_vm1, %v673_v27 }
 0x1a8   : > { %748 = vrot.lane.b32.xlu2 %v1611_v13, %s1243_s21 }
 0x1aa   : > { %v704_v21 = vpop.permute.xlu2 %703 }
 0x1ab   : > { %1020 = vst.msk [vmem:[%s1365_s14 + $0x50] sm:$0xff] %vm674_vm1, %v704_v21 }
 0x1ae   : > { %750 = vrot.lane.b32.xlu1 %v671_v20, %s1243_s21 }
 0x1b0   : > { %814 = vrot.lane.b32.xlu2 %v1611_v13, %s1244_s22 }
 0x1b2   : > { %v700_v23 = vpop.permute.xlu1 %699  ;;  %v706_v31 = vpop.permute.xlu2 %705 }
 0x1b3   : > { %1018 = vst.msk [vmem:[%s1365_s14 + $0x40] sm:$0xff] %vm674_vm1, %v700_v23 }
 0x1b4   : > { %1021 = vst.msk [vmem:[%s1365_s14 + $0x58] sm:$0xff] %vm674_vm1, %v706_v31 }
 0x1b6   : > { %816 = vrot.lane.b32.xlu1 %v671_v20, %s1244_s22 }
 0x1b8   : > { %752 = vrot.lane.b32.xlu2 %v672_v59, %s1243_s21 }
 0x1ba   : > { %v702_v3 = vpop.permute.xlu1 %701  ;;  %v774_v16 = vpop.permute.xlu2 %773 }
 0x1bb   : > { %1019 = vst.msk [vmem:[%s1365_s14 + $0x48] sm:$0xff] %vm674_vm1, %v702_v3 }
 0x1bc   : > { %1034 = vst.msk [vmem:[%s1365_s14 + $0x80] sm:$0xff] %vm674_vm1, %v774_v16 }
 0x1be   : > { %754 = vrot.lane.b32.xlu1 %v673_v27, %s1243_s21 }
 0x1c0   : > { %818 = vrot.lane.b32.xlu2 %v672_v59, %s1244_s22 }
 0x1c2   : > { %v776_v46 = vpop.permute.xlu1 %775  ;;  %v778_v2 = vpop.permute.xlu2 %777 }
 0x1c3   : > { %1035 = vst.msk [vmem:[%s1365_s14 + $0x88] sm:$0xff] %vm674_vm1, %v776_v46 }
 0x1c4   : > { %1036 = vst.msk [vmem:[%s1365_s14 + $0x90] sm:$0xff] %vm674_vm1, %v778_v2 }
 0x1c6   : > { %820 = vrot.lane.b32.xlu1 %v673_v27, %s1244_s22 }
 0x1ca   : > { %v780_v5 = vpop.permute.xlu1 %779  ;;  %v782_v7 = vpop.permute.xlu2 %781 }
 0x1cb   : > { %1037 = vst.msk [vmem:[%s1365_s14 + $0x98] sm:$0xff] %vm674_vm1, %v780_v5 }
 0x1cc   : > { %1038 = vst.msk [vmem:[%s1365_s14 + $0xa0] sm:$0xff] %vm674_vm1, %v782_v7 }
 0x1d2   : > { %v741_v8 = vpop.permute.xlu2 %740 }
 0x1d3   : > { %1026 = vst.msk [vmem:[%s1467_s30 + $0x40] sm:$0xff] %vm674_vm1, %v741_v8 }
 0x1d8   : > { %v708_v10 = vpop.permute.xlu0 %707 }
 0x1d9   : > { %1022 = vst.msk [vmem:[%s1365_s14 + $0x60] sm:$0xff] %vm674_vm1, %v708_v10 }
 0x1da   : > { %v807_v40 = vpop.permute.xlu2 %806 }
 0x1db   : > { %1042 = vst.msk [vmem:[%s1467_s30 + $0x80] sm:$0xff] %vm674_vm1, %v807_v40 }
 0x1e0   : > { %v710_v11 = vpop.permute.xlu1 %709 }
 0x1e1   : > { %1023 = vst.msk [vmem:[%s1365_s14 + $0x68] sm:$0xff] %vm674_vm1, %v710_v11 }
 0x1e2   : > { %v712_v17 = vpop.permute.xlu2 %711 }
 0x1e3   : > { %1024 = vst.msk [vmem:[%s1365_s14 + $0x70] sm:$0xff] %vm674_vm1, %v712_v17 }
 0x1e8   : > { %v784_v12 = vpop.permute.xlu1 %783 }
 0x1e9   : > { %1039 = vst.msk [vmem:[%s1365_s14 + $0xa8] sm:$0xff] %vm674_vm1, %v784_v12 }
 0x1ea   : > { %v786_v0 = vpop.permute.xlu2 %785 }
 0x1eb   : > { %1040 = vst.msk [vmem:[%s1365_s14 + $0xb0] sm:$0xff] %vm674_vm1, %v786_v0 }
 0x1f0   : > { %v743_v13 = vpop.permute.xlu1 %742 }
 0x1f1   : > { %1027 = vst.msk [vmem:[%s1467_s30 + $0x48] sm:$0xff] %vm674_vm1, %v743_v13 }
 0x1f2   : > { %v745_v18 = vpop.permute.xlu2 %744 }
 0x1f3   : > { %1028 = vst.msk [vmem:[%s1467_s30 + $0x50] sm:$0xff] %vm674_vm1, %v745_v18 }
 0x1f8   : > { %v809_v19 = vpop.permute.xlu1 %808 }
 0x1f9   : > { %1043 = vst.msk [vmem:[%s1467_s30 + $0x88] sm:$0xff] %vm674_vm1, %v809_v19 }
 0x1fa   : > { %v811_v6 = vpop.permute.xlu2 %810 }
 0x1fb   : > { %1044 = vst.msk [vmem:[%s1467_s30 + $0x90] sm:$0xff] %vm674_vm1, %v811_v6 }
 0x200   : > { %v714_v25 = vpop.permute.xlu1 %713 }
 0x201   : > { %1025 = vst.msk [vmem:[%s1365_s14 + $0x78] sm:$0xff] %vm674_vm1, %v714_v25 }
 0x202   : > { %v749_v26 = vpop.permute.xlu2 %748 }
 0x203   : > { %1030 = vst.msk [vmem:[%s1467_s30 + $0x60] sm:$0xff] %vm674_vm1, %v749_v26 }
 0x208   : > { %v788_v28 = vpop.permute.xlu1 %787 }
 0x209   : > { %1041 = vst.msk [vmem:[%s1365_s14 + $0xb8] sm:$0xff] %vm674_vm1, %v788_v28 }
 0x20a   : > { %v815_v29 = vpop.permute.xlu2 %814 }
 0x20b   : > { %1190 = shalt.err (!%p1187_p5)
}
 0x20c   : > { %s1245_s10 = smov 128   ;;  %s1246_s14 = smov 8   ;;  %1046 = vst.msk [vmem:[%s1467_s30 + $0xa0] sm:$0xff] %vm674_vm1, %v815_v29 }
 0x20d   : > { %1071 = dma.vmem_to_hbm [thread:$0]  (%p1312_p4), %s864_s9, 3072, %s866_s11, %s840_s18, %s1245_s10, %s1245_s10, %s1246_s14  }
 0x210   : > { %v747_v30 = vpop.permute.xlu1 %746 }
 0x211   : > { %1029 = vst.msk [vmem:[%s1467_s30 + $0x58] sm:$0xff] %vm674_vm1, %v747_v30 }
 0x212   : > { %v753_v33 = vpop.permute.xlu2 %752 }
 0x213   : > { %1032 = vst.msk [vmem:[%s1467_s30 + $0x70] sm:$0xff] %vm674_vm1, %v753_v33 }
 0x218   : > { %v813_v37 = vpop.permute.xlu1 %812 }
 0x219   : > { %1045 = vst.msk [vmem:[%s1467_s30 + $0x98] sm:$0xff] %vm674_vm1, %v813_v37 }
 0x21a   : > { %v819_v34 = vpop.permute.xlu2 %818 }
 0x21b   : > { %1048 = vst.msk [vmem:[%s1467_s30 + $0xb0] sm:$0xff] %vm674_vm1, %v819_v34 }
 0x220   : > { %v751_v39 = vpop.permute.xlu1 %750 }
 0x221   : > { %1031 = vst.msk [vmem:[%s1467_s30 + $0x68] sm:$0xff] %vm674_vm1, %v751_v39 }
 0x228   : > { %v817_v42 = vpop.permute.xlu1 %816 }
 0x229   : > { %1047 = vst.msk [vmem:[%s1467_s30 + $0xa8] sm:$0xff] %vm674_vm1, %v817_v42 }
 0x230   : > { %v755_v9 = vpop.permute.xlu1 %754 }
 0x231   : > { %1033 = vst.msk [vmem:[%s1467_s30 + $0x78] sm:$0xff] %vm674_vm1, %v755_v9 }
 0x238   : > { %v821_v41 = vpop.permute.xlu1 %820 }
 0x239   : > { %1049 = vst.msk [vmem:[%s1467_s30 + $0xb8] sm:$0xff] %vm674_vm1, %v821_v41 }
 0x23a PF: > { %p1077_p4 = scmp.ge.s32.totalorder %s1241_s20, 2  ;;  %s884_s25 = sand.u32 1, %s1221_s15  }
 0x23b   : > { %s885_s5 = scalar_lea.sflag [#allocation3], %s884_s25 }
 0x23c   : > { %p1074_p6 = pnand %p1077_p4, %p1319_p8 }
 0x23e   : > { %p1075_p7 = pneg %p1074_p6 }
 0x240   : > { %1216 = dma.done.wait (%p1075_p7), %s885_s5, 3072  }
 0x241   : > { %1218 = vsyncadd (%p1075_p7), %s885_s5, 4294964224  ;;  %s18_s20 = sadd.s32 1, %s1241_s20   ;;  %s1780_s15 = smov %s1225_s16 }
 0x242   : > { %p15_p9 = scmp.ge.s32.totalorder %s18_s20, 4   ;;  %s1781_s16 = smov %s1229_s17 }
 0x243   : > { %s1782_s17 = smov %s1325_s28  ;;  %s1783_s18 = smov %s1237_s19 }
 0x244   : > { %s1784_s19 = smov %s1786_s23  ;;  %17 = sbr.rel (!%p15_p9) target bundleno = 4 (0x4), region = 83 }
 0x249   :  { %903 = vsyncpa [#allocation3], 1 }
 0x24a   :  { %905 = vsyncpa [#allocation3 + $0x1], 1 }

// kernel: yolov7_head_forward.3
= control target key start
LH: loop header
LB: loop body
LE: loop exit
PB: predicated region body
PF: predicated region fallthrough
CT: control target
= control target key end

     0   :  { %s2243_s15 = smov 0   ;;  %s2245_s16 = smov 0   ;;  %s3409_s0 = inlined_call_operand.vmem [shape: bf16[2,8,256], index: 0, kind: input, shape index: {}]   ;;  %s3410_s1 = inlined_call_operand.vmem [shape: bf16[8,39], index: 1, kind: input, shape index: {}]   ;;  %s3411_s2 = inlined_call_operand.vmem [shape: f32[6,39], index: 2, kind: input, shape index: {}]   ;;  %s3412_s3 = inlined_call_operand.vmem [shape: f32[2,3,256,13], index: 3, kind: output, shape index: {0}]   ;;  %s3413_s4 = inlined_call_operand.vmem [shape: f32[2,3,256,13], index: 4, kind: output, shape index: {1}]  }
   0x1   :  { %s2247_s17 = smov 0   ;;  %s2249_s18 = smov 0  }
   0x2   :  { %s2251_s19 = smov 0   ;;  %s2253_s20 = smov 0  }
   0x3   :  { %s2255_s21 = smov 0  }
   0x4 LB: > { %s24_s22 = sadd.s32 1, %s2206_s19  ;;  %s27_s23 = sadd.s32 1, %s2210_s20  ;;  %s2214_s21 = sphi %s2255_s21, %s15_s21   ;;  %s2210_s20 = sphi %s2253_s20, %s3450_s20   ;;  %s2206_s19 = sphi %s2251_s19, %s3449_s19   ;;  %s2202_s18 = sphi %s2249_s18, %s3448_s18   ;;  %s2198_s17 = sphi %s2247_s17, %s3447_s17   ;;  %s2194_s16 = sphi %s2245_s16, %s3446_s16   ;;  %s2190_s15 = sphi %s2243_s15, %s3445_s15  }
   0x5   : > { %p25_p0 = scmp.ge.s32.totalorder %s24_s22, 2  ;;  %s1905_s24 = sadd.s32 4294967295, %s2214_s21  }
   0x6   : > { %p116_p1 = scmp.ne.s32.totalorder %s2194_s16, %s2190_s15  ;;  %p117_p2 = scmp.eq.s32.totalorder %s1905_s24, 3 }
   0x7   : > { %s3452_s22 = smov (%p25_p0, %s24_s22), 0  ;;  %s3454_s23 = smov (!%p25_p0, %s27_s23), %s2210_s20 }
   0x8   : > { %s102_s25 = ssub.s32 %s2206_s19, %s3452_s22  ;;  %p29_p3 = scmp.ge.s32.totalorder %s3454_s23, 2 }
   0x9   : > { %p1909_p4 = scmp.ge.s32.totalorder %s2214_s21, 1  ;;  %p2289_p5 = por %p117_p2, %p116_p1 }
   0xa   : > { %p186_p6 = scmp.lt.s32.totalorder %s2214_s21, 5  ;;  %s3456_s23 = smov (%p29_p3, %s3454_s23), 0 }
   0xb   : > { %s101_s27 = ssub.s32 %s2210_s20, %s3456_s23  ;;  %s106_s29 = sadd.s32 1, %s2194_s16 }
   0xc   : > { %p187_p7 = pnand %p1909_p4, %p186_p6  ;;  %s103_s28 = sor.u32 %s102_s25, %s101_s27 }
   0xd   : > { %p104_p8 = scmp.eq.s32.totalorder %s103_s28, 0  ;;  %p218_p9 = scmp.lt.s32.totalorder (!%p187_p7), %s2202_s18, 1 }
   0xe   : > { %190 = sbr.rel (%p187_p7) target bundleno = 739 (0x2e3), region = 32  ;;  %p220_p10 = scmp.lt.s32.totalorder (!%p187_p7), %s2198_s17, 1 }
   0xf   : > { %s2300_s30 = scalar_select %p104_p8, %s2194_s16, %s106_s29  }
  0x10   : > { %s1944_s24 = sshll.u32 (!%p187_p7), %s2198_s17, 7  ;;  %s209_s25 = sand.u32 (!%p187_p7), 1, %s2190_s15  }
  0x11   : > { %s2341_s29 = smul.u32 (!%p187_p7), 384, %s209_s25  ;;  %s2216_s5 = smov (!%p187_p7), 102  }
  0x12   : > { %s2217_s6 = smov (!%p187_p7), 115  }
  0x13   : > { %v262_v0 = vld [vmem:[%s3410_s1] sm:$0xf]  ;;  %s219_s7 = scalar_select %p218_p9, %s2202_s18, 1  ;;  %vm266_vm0 = vcmask 64512   ;;  %v685_v18 = vlaneseq  ;;  %v2329_v20 = vstv %s1944_s24  ;;  %vm1012_vm1 = vcmask 105472  }
  0x14   : > { %v263_v1 = vunpack.c.l.bf16 %v262_v0  ;;  %s221_s8 = scalar_select %p220_p10, %s2198_s17, 1  ;;  %v2338_v23 = vld [vmem:[%s3411_s2] sm:$0x3f] }
  0x15   : > { %s1910_s9 = sshll.u32 %s219_s7, 1  ;;  %v2327_v19 = vshrl.u32 %v685_v18, 7  ;;  %v2344_v27 = vperm.slane %v2338_v23, 0  ;;  %s2349_s15 = scalar_lea.vmem [#allocation2], %s2341_s29  ;;  %v2370_v56 = vperm.slane %v2338_v23, 4  ;;  %v2373_v57 = vperm.slane %v2338_v23, 5 }
  0x16   : > { %330 = vmatpush.msra.mxu0 %v263_v1  ;;  %2031 = vmatpush.msra.mxu1 %v263_v1  ;;  %s223_s10 = sadd.s32 %s1910_s9, %s221_s8  ;;  %s2490_s7 = scalar_lea.vmem [#allocation3], %s2341_s29 }
  0x17   : > { %2032 = vmatpush.msra.mxu2 %v263_v1  ;;  %2033 = vmatpush.msra.mxu3 %v263_v1  ;;  %s1911_s11 = sshll.u32 %s223_s10, 2  ;;  %v703_v21 = vadd.s32 %v2329_v20, %v2327_v19  ;;  %v687_v22 = vadd.s32 8, %v2327_v19  ;;  %v688_v32 = vadd.s32 16, %v2327_v19  ;;  %v689_v44 = vadd.s32 24, %v2327_v19  ;;  %s2025_s8 = sshll.u32 (%p2289_p5), %s2198_s17, 4 }
  0x18   : > { %s225_s14 = scalar_lea.vmem %s3409_s0, %s1911_s11  ;;  %v690_v0 = vadd.s32 32, %v2327_v19  ;;  %s2035_s9 = smul.u32 (%p2289_p5), 96, %s2202_s18 }
  0x19   : > { %v228_v2 = vld [vmem:[%s225_s14] sm:$0xf]  ;;  %v704_v24 = vadd.s32 %v2329_v20, %v687_v22  ;;  %v719_v25 = vcvt.s32.f32 %v703_v21  ;;  %v705_v35 = vadd.s32 %v2329_v20, %v688_v32  ;;  %v706_v49 = vadd.s32 %v2329_v20, %v689_v44 }
  0x1a   : > { %v229_v3 = vunpack.c.l.bf16 %v228_v2  ;;  %v2402_v22 = vperm.slane %v2338_v23, 1  ;;  %v691_v32 = vadd.s32 40, %v2327_v19  ;;  %s1350_s10 = sadd.s32 (%p2289_p5), %s2035_s9, %s2025_s8 }
  0x1b   : > { %v720_v26 = vcvt.s32.f32 %v704_v24  ;;  %v735_v28 = vadd.f32 0.5, %v719_v25  ;;  %v721_v37 = vcvt.s32.f32 %v705_v35  ;;  %v722_v52 = vcvt.s32.f32 %v706_v49  ;;  %s2026_s11 = sshll.u32 (%p2289_p5), %s1350_s10, 3 }
  0x1c   : > { %230 = vxpose.xlu0.b32.start.end [1/1] (short) %v229_v3, 128  ;;  %v2405_v24 = vperm.slane %v2338_v23, 2  ;;  %s3187_s14 = scalar_lea.vmem (%p2289_p5), %s3412_s3, %s2026_s11 }
  0x1d   : > { %v736_v30 = vadd.f32 0.5, %v720_v26  ;;  %v751_v34 = vmul.f32 0.0625, %v735_v28  ;;  %v737_v40 = vadd.f32 0.5, %v721_v37  ;;  %v738_v58 = vadd.f32 0.5, %v722_v52 }
  0x1f   : > { %v752_v36 = vmul.f32 0.0625, %v736_v30  ;;  %v767_v39 = vfloor.f32 %v751_v34  ;;  %v2359_v45 = vmul.f32 0.0625, %v737_v40  ;;  %v2377_v62 = vmul.f32 0.0625, %v738_v58 }
  0x21   : > { %v768_v42 = vfloor.f32 %v752_v36  ;;  %v783_v48 = vmul.f32 16.0, %v767_v39  ;;  %v769_v53 = vfloor.f32 %v2359_v45 }
  0x23   : > { %v784_v51 = vmul.f32 16.0, %v768_v42  ;;  %v799_v55 = vsub.f32 %v719_v25, %v783_v48  ;;  %v785_v63 = vmul.f32 16.0, %v769_v53 }
  0x25   : > { %v800_v60 = vsub.f32 %v720_v26, %v784_v51  ;;  %v816_v3 = vmul.f32 %v2370_v56, %v799_v55 }
  0xc0   : > { %v246_v4 = vpop.trf.xlu0 }
  0xc1   : > { %1912 = vmatmul.msk.f32.vlgmr.msra.gmra.mxu0 %vm266_vm0, %v246_v4  ;;  %v833_v4 = vmul.f32 %v2373_v57, %v767_v39  ;;  %v835_v39 = vmul.f32 %v2373_v57, %v769_v53 }
  0xc3   : > { %v849_v21 = vadd.f32 %v833_v4, %v816_v3 }
  0xc8   : > { %v247_v5 = vpop.trf.xlu0 }
  0xc9   : > { %1913 = vmatmul.msk.f32.gmra.mxu0 %vm266_vm0, %v247_v5  ;;  %v770_v5 = vfloor.f32 %v2377_v62 }
  0xd0   : > { %v248_v6 = vpop.trf.xlu0 }
  0xd1   : > { %1914 = vmatmul.msk.f32.gmra.mxu0 %vm266_vm0, %v248_v6 }
  0xd8   : > { %v249_v7 = vpop.trf.xlu0 }
  0xd9   : > { %1915 = vmatmul.msk.f32.gmra.mxu0 %vm266_vm0, %v249_v7 }
  0xe0   : > { %v250_v8 = vpop.trf.xlu0 }
  0xe1   : > { %1916 = vmatmul.msk.f32.vlgmr.msra.gmra.mxu1 %vm266_vm0, %v250_v8  ;;  %v817_v8 = vmul.f32 %v2370_v56, %v800_v60 }
  0xe8   : > { %v251_v9 = vpop.trf.xlu0 }
  0xe9   : > { %1917 = vmatmul.msk.f32.gmra.mxu1 %vm266_vm0, %v251_v9  ;;  %v834_v9 = vmul.f32 %v2373_v57, %v768_v42 }
  0xeb   : > { %v2407_v25 = vadd.f32 %v834_v9, %v817_v8 }
  0xf0   : > { %v252_v10 = vpop.trf.xlu0 }
  0xf1   : > { %1918 = vmatmul.msk.f32.gmra.mxu1 %vm266_vm0, %v252_v10  ;;  %v2392_v10 = vadd.s32 %v2329_v20, %v690_v0 }
  0xf8   : > { %v253_v11 = vpop.trf.xlu0 }
  0xf9   : > { %1919 = vmatmul.msk.f32.gmra.mxu1 %vm266_vm0, %v253_v11 }
 0x100   : > { %v254_v12 = vpop.trf.xlu0 }
 0x101   : > { %1920 = vmatmul.msk.f32.vlgmr.msra.gmra.mxu2 %vm266_vm0, %v254_v12  ;;  %v2397_v12 = vperm.slane %v2338_v23, 3 }
 0x108   : > { %v255_v13 = vpop.trf.xlu0 }
 0x109   : > { %1921 = vmatmul.msk.f32.gmra.mxu2 %vm266_vm0, %v255_v13  ;;  %v801_v13 = vsub.f32 %v721_v37, %v785_v63 }
 0x10b   : > { %v818_v30 = vmul.f32 %v2370_v56, %v801_v13 }
 0x110   : > { %v256_v14 = vpop.trf.xlu0 }
 0x111   : > { %1922 = vmatmul.msk.f32.gmra.mxu2 %vm266_vm0, %v256_v14 }
 0x118   : > { %v257_v15 = vpop.trf.xlu0 }
 0x119   : > { %1923 = vmatmul.msk.f32.gmra.mxu2 %vm266_vm0, %v257_v15 }
 0x120   : > { %v258_v16 = vpop.trf.xlu0 }
 0x121   : > { %1924 = vmatmul.msk.f32.vlgmr.msra.gmra.mxu3 %vm266_vm0, %v258_v16  ;;  %v786_v16 = vmul.f32 16.0, %v770_v5 }
 0x123   : > { %v802_v36 = vsub.f32 %v722_v52, %v786_v16  ;;  %v2436_v52 = vadd.f32 %v835_v39, %v818_v30 }
 0x125   : > { %v819_v49 = vmul.f32 %v2370_v56, %v802_v36 }
 0x128   : > { %v259_v17 = vpop.trf.xlu0 }
 0x129   : > { %1925 = vmatmul.msk.f32.gmra.mxu3 %vm266_vm0, %v259_v17  ;;  %v723_v17 = vcvt.s32.f32 %v2392_v10 }
 0x130   : > { %v260_v38 = vpop.trf.xlu0 }
 0x131   : > { %1926 = vmatmul.msk.f32.gmra.mxu3 %vm266_vm0, %v260_v38 }
 0x138   : > { %v261_v54 = vpop.trf.xlu0 }
 0x139   : > { %1927 = vmatmul.msk.f32.gmra.mxu3 %vm266_vm0, %v261_v54 }
 0x13e   : > { %v332_v29 = vpop.f32.mrf.mxu0 }
 0x13f   : > { %v333_v31 = vadd.f32 %v332_v29, %v2344_v27 }
 0x141   : > { %v1928_v33 = vmul.f32 -1.442695, %v333_v31  ;;  %1013 = vst.msk [vmem:[%s2349_s15] sm:$0xff] %vm1012_vm1, %v333_v31  ;;  %1207 = vrot.lane.b32.xlu2 %v333_v31, %s2216_s5  ;;  %1061 = vrot.lane.b32.xlu0 %v333_v31, %s2217_s6  ;;  %v739_v31 = vadd.f32 0.5, %v723_v17 }
 0x143   : > { %2096 = vpow2.f32 %v1928_v33  ;;  %v2424_v40 = vmul.f32 0.0625, %v739_v31 }
 0x145   : > { %v771_v53 = vfloor.f32 %v2424_v40 }
 0x146   : > { %v335_v41 = vpop.f32.mrf.mxu0 }
 0x147   : > { %v336_v43 = vadd.f32 %v335_v41, %v2344_v27  ;;  %v2427_v41 = vadd.s32 %v2329_v20, %v691_v32  ;;  %v837_v39 = vmul.f32 %v2373_v57, %v771_v53 }
 0x149   : > { %v2097_v46 = vpop.eup %2096  ;;  %v1929_v47 = vmul.f32 -1.442695, %v336_v43  ;;  %1014 = vst.msk [vmem:[%s2349_s15 + $0x8] sm:$0xff] %vm1012_vm1, %v336_v43  ;;  %1063 = vrot.lane.b32.xlu1 %v336_v43, %s2217_s6  ;;  %v724_v54 = vcvt.s32.f32 %v2427_v41 }
 0x14a   : > { %v2365_v50 = vadd.f32 1.0, %v2097_v46 }
 0x14b   : > { %2098 = vpow2.f32 %v1929_v47  ;;  %v740_v63 = vadd.f32 0.5, %v724_v54 }
 0x14c   : > { %2100 = vrcp.f32 %v2365_v50  ;;  %v455_v15 = vand.u32 2147483648, %v2365_v50  ;;  %v453_v29 = vand.u32 2147483647, %v2365_v50  ;;  %vm449_vm3 = vweird.f32 %v2365_v50 }
 0x14e   : > { %v338_v59 = vpop.f32.mrf.mxu0  ;;  %v456_v35 = vor.u32 1.1754944e-38, %v455_v15  ;;  %vm454_vm5 = vcmp.eq.f32.partialorder %v453_v29, 8.507059e+37 }
 0x14f   : > { %v339_v61 = vadd.f32 %v338_v59, %v2344_v27 }
 0x151   : > { %v2099_v1 = vpop.eup %2098  ;;  %v1930_v2 = vmul.f32 -1.442695, %v339_v61  ;;  %1015 = vst.msk [vmem:[%s2349_s15 + $0x10] sm:$0xff] %vm1012_vm1, %v339_v61  ;;  %1209 = vrot.lane.b32.xlu1 %v336_v43, %s2216_s5  ;;  %1211 = vrot.lane.b32.xlu2 %v339_v61, %s2216_s5 }
 0x152   : > { %v2101_v6 = vpop.eup %2100  ;;  %v2387_v7 = vadd.f32 1.0, %v2099_v1 }
 0x153   : > { %2102 = vpow2.f32 %v1930_v2  ;;  %v445_v11 = vmul.f32 %v2101_v6, %v2365_v50  ;;  %vm450_vm2 = vweird.f32 %v2101_v6  ;;  %v836_v50 = vmul.f32 %v2373_v57, %v770_v5 }
 0x154   : > { %2104 = vrcp.f32 %v2387_v7  ;;  %vm451_vm4 = vmor %vm449_vm3, %vm450_vm2  ;;  %v468_v45 = vand.u32 2147483647, %v2387_v7  ;;  %v470_v46 = vand.u32 2147483648, %v2387_v7  ;;  %vm464_vm6 = vweird.f32 %v2387_v7 }
 0x155   : > { %v446_v14 = vsub.f32 1.0, %v445_v11  ;;  %v2452_v4 = vadd.f32 %v836_v50, %v819_v49  ;;  %v787_v11 = vmul.f32 16.0, %v771_v53 }
 0x156   : > { %v341_v18 = vpop.f32.mrf.mxu0  ;;  %vm2441_vm8 = vcmp.eq.f32.partialorder %v468_v45, 8.507059e+37  ;;  %v471_v62 = vor.u32 1.1754944e-38, %v470_v46 }
 0x157   : > { %v342_v26 = vadd.f32 %v341_v18, %v2344_v27  ;;  %v447_v28 = vmul.f32 %v2101_v6, %v446_v14  ;;  %v2465_v18 = vmul.f32 0.0625, %v740_v63 }
 0x159   : > { %v2103_v33 = vpop.eup %2102  ;;  %v1931_v23 = vmul.f32 -1.442695, %v342_v26  ;;  %1016 = vst.msk [vmem:[%s2349_s15 + $0x18] sm:$0xff] %vm1012_vm1, %v342_v26  ;;  %1065 = vrot.lane.b32.xlu1 %v339_v61, %s2217_s6  ;;  %1067 = vrot.lane.b32.xlu2 %v342_v26, %s2217_s6  ;;  %v448_v34 = vadd.f32 %v2101_v6, %v447_v28  ;;  %v772_v40 = vfloor.f32 %v2465_v18 }
 0x15a   : > { %v2105_v37 = vpop.eup %2104  ;;  %v2420_v38 = vadd.f32 1.0, %v2103_v33  ;;  %v803_v33 = vsub.f32 %v723_v17, %v787_v11 }
 0x15b   : > { %2106 = vpow2.f32 %v1931_v23  ;;  %v452_v42 = vsel %vm451_vm4, %v2101_v6, %v448_v34  ;;  %v460_v43 = vmul.f32 %v2105_v37, %v2387_v7  ;;  %vm465_vm7 = vweird.f32 %v2105_v37 }
 0x15c   : > { %2108 = vrcp.f32 %v2420_v38  ;;  %v457_v44 = vsel %vm454_vm5, %v456_v35, %v452_v42  ;;  %v483_v3 = vand.u32 2147483647, %v2420_v38  ;;  %v485_v9 = vand.u32 2147483648, %v2420_v38  ;;  %vm466_vm9 = vmor %vm464_vm6, %vm465_vm7 }
 0x15d   : > { %v865_v47 = vmul.f32 2.0, %v457_v44  ;;  %v461_v48 = vsub.f32 1.0, %v460_v43  ;;  %vm479_vm10 = vweird.f32 %v2420_v38  ;;  %v820_v49 = vmul.f32 %v2370_v56, %v803_v33 }
 0x15e   : > { %v344_v51 = vpop.f32.mrf.mxu1  ;;  %vm2470_vm11 = vcmp.eq.f32.partialorder %v483_v3, 8.507059e+37  ;;  %v486_v32 = vor.u32 1.1754944e-38, %v485_v9 }
 0x15f   : > { %v345_v55 = vadd.f32 %v344_v51, %v2344_v27  ;;  %v1945_v58 = vadd.f32 -0.5, %v865_v47  ;;  %v930_v59 = vmul.f32 %v865_v47, %v865_v47  ;;  %v462_v60 = vmul.f32 %v2105_v37, %v461_v48 }
 0x161   : > { %v2107_v0 = vpop.eup %2106  ;;  %v1932_v1 = vmul.f32 -1.442695, %v345_v55  ;;  %1017 = vst.msk [vmem:[%s2349_s15 + $0x20] sm:$0xff] %vm1012_vm1, %v345_v55  ;;  %1213 = vrot.lane.b32.xlu1 %v342_v26, %s2216_s5  ;;  %1069 = vrot.lane.b32.xlu2 %v345_v55, %s2217_s6  ;;  %v897_v2 = vadd.f32 %v1945_v58, %v849_v21  ;;  %v463_v8 = vadd.f32 %v2105_v37, %v462_v60 }
 0x162   : > { %v2109_v5 = vpop.eup %2108  ;;  %v2454_v6 = vadd.f32 1.0, %v2107_v0  ;;  %v947_v14 = vmul.f32 %v2405_v24, %v930_v59  ;;  %v980_v26 = vmul.f32 %v2397_v12, %v457_v44  ;;  %v692_v44 = vadd.s32 48, %v2327_v19 }
 0x163   : > { %2110 = vpow2.f32 %v1932_v1  ;;  %v914_v13 = vmul.f32 %v2402_v22, %v897_v2  ;;  %v475_v15 = vmul.f32 %v2109_v5, %v2420_v38  ;;  %v467_v16 = vsel %vm466_vm9, %v2105_v37, %v463_v8 }
 0x164   : > { %2112 = vrcp.f32 %v2454_v6  ;;  %v472_v28 = vsel %vm2441_vm8, %v471_v62, %v467_v16  ;;  %vm480_vm12 = vweird.f32 %v2109_v5  ;;  %v498_v17 = vand.u32 2147483647, %v2454_v6 }
 0x165   : > { %v963_v21 = vadd.f32 %v947_v14, %v914_v13  ;;  %v476_v29 = vsub.f32 1.0, %v475_v15  ;;  %v866_v7 = vmul.f32 2.0, %v472_v28  ;;  %vm481_vm13 = vmor %vm479_vm10, %vm480_vm12  ;;  %vm494_vm14 = vweird.f32 %v2454_v6 }
 0x166   : > { %v347_v30 = vpop.f32.mrf.mxu1  ;;  %v500_v48 = vand.u32 2147483648, %v2454_v6  ;;  %v981_v58 = vmul.f32 %v2397_v12, %v472_v28  ;;  %vm2511_vm15 = vcmp.eq.f32.partialorder %v498_v17, 8.507059e+37  ;;  %v2515_v1 = vadd.f32 %v837_v39, %v820_v49 }
 0x167   : > { %v348_v23 = vadd.f32 %v347_v30, %v2344_v27  ;;  %v2477_v34 = vadd.f32 %v980_v26, %v963_v21  ;;  %v477_v35 = vmul.f32 %v2109_v5, %v476_v29  ;;  %v1946_v36 = vadd.f32 -0.5, %v866_v7 }
 0x168   : > { %v931_v37 = vmul.f32 %v866_v7, %v866_v7  ;;  %v501_v0 = vor.u32 1.1754944e-38, %v500_v48  ;;  %v2518_v2 = vadd.s32 %v2329_v20, %v692_v44  ;;  %v693_v14 = vadd.s32 56, %v2327_v19 }
 0x169   : > { %v2111_v42 = vpop.eup %2110  ;;  %v1933_v43 = vmul.f32 -1.442695, %v348_v23  ;;  %1018 = vst.msk [vmem:[%s2349_s15 + $0x28] sm:$0xff] %vm1012_vm1, %v348_v23  ;;  %1215 = vrot.lane.b32.xlu2 %v345_v55, %s2216_s5  ;;  %1071 = vrot.lane.b32.xlu1 %v348_v23, %s2217_s6  ;;  %v478_v10 = vadd.f32 %v2109_v5, %v477_v35  ;;  %v898_v47 = vadd.f32 %v1946_v36, %v2407_v25  ;;  %v788_v55 = vmul.f32 16.0, %v772_v40 }
 0x16a   : > { %v2113_v45 = vpop.eup %2112  ;;  %v2487_v46 = vadd.f32 1.0, %v2111_v42  ;;  %1029 = vst.msk [vmem:[%s2490_s7] sm:$0xff] %vm1012_vm1, %v2477_v34  ;;  %v948_v50 = vmul.f32 %v2405_v24, %v931_v37  ;;  %v725_v7 = vcvt.s32.f32 %v2518_v2  ;;  %v838_v35 = vmul.f32 %v2373_v57, %v772_v40 }
 0x16b   : > { %2114 = vpow2.f32 %v1933_v43  ;;  %v482_v51 = vsel %vm481_vm13, %v2109_v5, %v478_v10  ;;  %v490_v53 = vmul.f32 %v2113_v45, %v2454_v6  ;;  %v915_v25 = vmul.f32 %v2402_v22, %v898_v47 }
 0x16c   : > { %2116 = vrcp.f32 %v2487_v46  ;;  %v487_v38 = vsel %vm2470_vm11, %v486_v32, %v482_v51  ;;  %vm495_vm0 = vweird.f32 %v2113_v45  ;;  %v804_v13 = vsub.f32 %v724_v54, %v788_v55 }
 0x16d   : > { %v867_v59 = vmul.f32 2.0, %v487_v38  ;;  %v491_v60 = vsub.f32 1.0, %v490_v53  ;;  %v964_v63 = vadd.f32 %v948_v50, %v915_v25  ;;  %v982_v26 = vmul.f32 %v2397_v12, %v487_v38  ;;  %vm496_vm3 = vmor %vm494_vm14, %vm495_vm0 }
 0x16e   : > { %v350_v62 = vpop.f32.mrf.mxu1  ;;  %vm509_vm2 = vweird.f32 %v2487_v46  ;;  %v513_v41 = vand.u32 2147483647, %v2487_v46  ;;  %v515_v30 = vand.u32 2147483648, %v2487_v46  ;;  %v741_v17 = vadd.f32 0.5, %v725_v7 }
 0x16f   : > { %v2521_v3 = vadd.f32 %v350_v62, %v2344_v27  ;;  %v1947_v5 = vadd.f32 -0.5, %v867_v59  ;;  %v932_v8 = vmul.f32 %v867_v59, %v867_v59  ;;  %v492_v9 = vmul.f32 %v2113_v45, %v491_v60 }
 0x170   : > { %v2523_v11 = vadd.f32 %v981_v58, %v964_v63  ;;  %vm2559_vm4 = vcmp.eq.f32.partialorder %v513_v41, 8.507059e+37  ;;  %v516_v10 = vor.u32 1.1754944e-38, %v515_v30  ;;  %v2566_v18 = vadd.s32 %v2329_v20, %v693_v14 }
 0x171   : > { %v2115_v15 = vpop.eup %2114  ;;  %v1934_v16 = vmul.f32 -1.442695, %v2521_v3  ;;  %1019 = vst.msk [vmem:[%s2349_s15 + $0x30] sm:$0xff] %vm1012_vm1, %v2521_v3  ;;  %1142 = vrot.lane.b32.xlu2 %v2477_v34, %s2217_s6  ;;  %1217 = vrot.lane.b32.xlu1 %v348_v23, %s2216_s5  ;;  %v899_v21 = vadd.f32 %v1947_v5, %v2436_v52  ;;  %v493_v29 = vadd.f32 %v2113_v45, %v492_v9  ;;  %v757_v50 = vmul.f32 0.0625, %v741_v17 }
 0x172   : > { %v2117_v54 = vpop.eup %2116  ;;  %v2539_v28 = vadd.f32 1.0, %v2115_v15  ;;  %1030 = vst.msk [vmem:[%s2490_s7 + $0x8] sm:$0xff] %vm1012_vm1, %v2523_v11  ;;  %v949_v31 = vmul.f32 %v2405_v24, %v932_v8  ;;  %v821_v23 = vmul.f32 %v2370_v56, %v804_v13  ;;  %v726_v63 = vcvt.s32.f32 %v2566_v18 }
 0x173   : > { %2118 = vpow2.f32 %v1934_v16  ;;  %v916_v52 = vmul.f32 %v2402_v22, %v899_v21  ;;  %v505_v32 = vmul.f32 %v2117_v54, %v2487_v46  ;;  %v497_v33 = vsel %vm496_vm3, %v2113_v45, %v493_v29 }
 0x174   : > { %2120 = vrcp.f32 %v2539_v28  ;;  %v502_v37 = vsel %vm2511_vm15, %v501_v0, %v497_v33  ;;  %vm510_vm5 = vweird.f32 %v2117_v54  ;;  %v2573_v49 = vadd.f32 %v838_v35, %v821_v23 }
 0x175   : > { %v965_v36 = vadd.f32 %v949_v31, %v916_v52  ;;  %v506_v39 = vsub.f32 1.0, %v505_v32  ;;  %v868_v43 = vmul.f32 2.0, %v502_v37  ;;  %vm524_vm6 = vweird.f32 %v2539_v28  ;;  %vm511_vm7 = vmor %vm509_vm2, %vm510_vm5 }
 0x176   : > { %v353_v6 = vpop.f32.mrf.mxu1  ;;  %v528_v38 = vand.u32 2147483647, %v2539_v28  ;;  %v773_v60 = vfloor.f32 %v757_v50  ;;  %v983_v46 = vmul.f32 %v2397_v12, %v502_v37  ;;  %v742_v52 = vadd.f32 0.5, %v726_v63 }
 0x177   : > { %v2569_v40 = vadd.f32 %v353_v6, %v2344_v27  ;;  %v2571_v44 = vadd.f32 %v982_v26, %v965_v36  ;;  %v507_v45 = vmul.f32 %v2117_v54, %v506_v39  ;;  %v1948_v47 = vadd.f32 -0.5, %v868_v43 }
 0x178   : > { %v933_v48 = vmul.f32 %v868_v43, %v868_v43  ;;  %vm2603_vm8 = vcmp.eq.f32.partialorder %v528_v38, 8.507059e+37  ;;  %v789_v21 = vmul.f32 16.0, %v773_v60  ;;  %v694_v17 = vadd.s32 64, %v2327_v19 }
 0x179   : > { %v2119_v51 = vpop.eup %2118  ;;  %v1935_v53 = vmul.f32 -1.442695, %v2569_v40  ;;  %1020 = vst.msk [vmem:[%s2349_s15 + $0x38] sm:$0xff] %vm1012_vm1, %v2569_v40  ;;  %1272 = vrot.lane.b32.xlu2 %v2477_v34, %s2216_s5  ;;  %1144 = vrot.lane.b32.xlu1 %v2523_v11, %s2217_s6  ;;  %v508_v25 = vadd.f32 %v2117_v54, %v507_v45  ;;  %v900_v59 = vadd.f32 %v1948_v47, %v2452_v4  ;;  %v530_v34 = vand.u32 2147483648, %v2539_v28 }
 0x17a   : > { %v2121_v55 = vpop.eup %2120  ;;  %v2585_v58 = vadd.f32 1.0, %v2119_v51  ;;  %1031 = vst.msk [vmem:[%s2490_s7 + $0x10] sm:$0xff] %vm1012_vm1, %v2571_v44  ;;  %v950_v5 = vmul.f32 %v2405_v24, %v933_v48  ;;  %v805_v30 = vsub.f32 %v725_v7, %v789_v21  ;;  %v758_v7 = vmul.f32 0.0625, %v742_v52 }
 0x17b   : > { %2122 = vpow2.f32 %v1935_v53  ;;  %v512_v61 = vsel %vm511_vm7, %v2117_v54, %v508_v25  ;;  %v520_v62 = vmul.f32 %v2121_v55, %v2539_v28  ;;  %v917_v0 = vmul.f32 %v2402_v22, %v900_v59 }
 0x17c   : > { %2124 = vrcp.f32 %v2585_v58  ;;  %v517_v4 = vsel %vm2559_vm4, %v516_v10, %v512_v61  ;;  %v531_v15 = vor.u32 1.1754944e-38, %v530_v34  ;;  %v543_v16 = vand.u32 2147483647, %v2585_v58 }
 0x17d   : > { %v869_v8 = vmul.f32 2.0, %v517_v4  ;;  %v521_v9 = vsub.f32 1.0, %v520_v62  ;;  %v966_v14 = vadd.f32 %v950_v5, %v917_v0  ;;  %vm525_vm9 = vweird.f32 %v2121_v55 }
 0x17e   : > { %vm539_vm10 = vweird.f32 %v2585_v58  ;;  %v984_v33 = vmul.f32 %v2397_v12, %v517_v4  ;;  %v545_v35 = vand.u32 2147483648, %v2585_v58  ;;  %vm526_vm11 = vmor %vm524_vm6, %vm525_vm9  ;;  %vm2630_vm12 = vcmp.eq.f32.partialorder %v543_v16, 8.507059e+37 }
 0x17f   : > { %v1949_v26 = vadd.f32 -0.5, %v869_v8  ;;  %v934_v41 = vmul.f32 %v869_v8, %v869_v8  ;;  %v522_v54 = vmul.f32 %v2121_v55, %v521_v9  ;;  %v2608_v29 = vadd.f32 %v983_v46, %v966_v14 }
 0x180   : > { %v822_v10 = vmul.f32 %v2370_v56, %v805_v30  ;;  %v695_v50 = vadd.s32 72, %v2327_v19  ;;  %v774_v25 = vfloor.f32 %v758_v7  ;;  %v546_v61 = vor.u32 1.1754944e-38, %v545_v35 }
 0x181   : > { %v2123_v31 = vpop.eup %2122  ;;  %1274 = vrot.lane.b32.xlu1 %v2523_v11, %s2216_s5  ;;  %1073 = vrot.lane.b32.xlu2 %v2521_v3, %s2217_s6  ;;  %v901_v32 = vadd.f32 %v1949_v26, %v2515_v1  ;;  %v523_v23 = vadd.f32 %v2121_v55, %v522_v54  ;;  %1032 = vst.msk [vmem:[%s2490_s7 + $0x18] sm:$0xff] %vm1012_vm1, %v2608_v29 }
 0x182   : > { %v2125_v36 = vpop.eup %2124  ;;  %v2622_v2 = vadd.f32 1.0, %v2123_v31  ;;  %v839_v1 = vmul.f32 %v2373_v57, %v773_v60  ;;  %v951_v39 = vmul.f32 %v2405_v24, %v934_v41  ;;  %v790_v0 = vmul.f32 16.0, %v774_v25 }
 0x183   : > { %v918_v37 = vmul.f32 %v2402_v22, %v901_v32  ;;  %v527_v42 = vsel %vm526_vm11, %v2121_v55, %v523_v23  ;;  %v535_v6 = vmul.f32 %v2125_v36, %v2585_v58  ;;  %vm540_vm13 = vweird.f32 %v2125_v36 }
 0x184   : > { %2126 = vrcp.f32 %v2622_v2  ;;  %v356_v43 = vpop.f32.mrf.mxu2  ;;  %v532_v28 = vsel %vm2603_vm8, %v531_v15, %v527_v42  ;;  %v558_v53 = vand.u32 2147483647, %v2622_v2  ;;  %v855_v62 = vadd.f32 %v839_v1, %v822_v10  ;;  %vm2666_vm14 = vmor %vm539_vm10, %vm540_vm13 }
 0x185   : > { %v2644_v45 = vadd.f32 %v356_v43, %v2344_v27  ;;  %v967_v47 = vadd.f32 %v951_v39, %v918_v37  ;;  %v870_v48 = vmul.f32 2.0, %v532_v28  ;;  %v536_v51 = vsub.f32 1.0, %v535_v6 }
 0x186   : > { %v985_v4 = vmul.f32 %v2397_v12, %v532_v28  ;;  %vm554_vm15 = vweird.f32 %v2622_v2  ;;  %vm2671_vm0 = vcmp.eq.f32.partialorder %v558_v53, 8.507059e+37  ;;  %v560_v13 = vand.u32 2147483648, %v2622_v2 }
 0x187   : > { %v1936_v38 = vmul.f32 -1.442695, %v2644_v45  ;;  %1021 = vst.msk [vmem:[%s2349_s15 + $0x40] sm:$0xff] %vm1012_vm1, %v2644_v45  ;;  %v2652_v55 = vadd.f32 %v984_v33, %v967_v47  ;;  %v1950_v59 = vadd.f32 -0.5, %v870_v48  ;;  %v935_v34 = vmul.f32 %v870_v48, %v870_v48 }
 0x188   : > { %v537_v60 = vmul.f32 %v2125_v36, %v536_v51  ;;  %v2681_v16 = vadd.s32 %v2329_v20, %v695_v50  ;;  %v806_v41 = vsub.f32 %v726_v63, %v790_v0  ;;  %v561_v23 = vor.u32 1.1754944e-38, %v560_v13 }
 0x189   : > { %1219 = vrot.lane.b32.xlu2 %v2521_v3, %s2216_s5  ;;  %1075 = vrot.lane.b32.xlu1 %v2569_v40, %s2217_s6  ;;  %2128 = vpow2.f32 %v1936_v38  ;;  %1033 = vst.msk [vmem:[%s2490_s7 + $0x20] sm:$0xff] %vm1012_vm1, %v2652_v55  ;;  %v902_v5 = vadd.f32 %v1950_v59, %v2573_v49  ;;  %v711_v49 = vadd.s32 %v2329_v20, %v694_v17 }
 0x18a   : > { %v2127_v3 = vpop.eup %2126  ;;  %v538_v8 = vadd.f32 %v2125_v36, %v537_v60  ;;  %v952_v58 = vmul.f32 %v2405_v24, %v935_v34  ;;  %v840_v35 = vmul.f32 %v2373_v57, %v774_v25  ;;  %v728_v37 = vcvt.s32.f32 %v2681_v16 }
 0x18b   : > { %v919_v14 = vmul.f32 %v2402_v22, %v902_v5  ;;  %v550_v15 = vmul.f32 %v2127_v3, %v2622_v2  ;;  %vm555_vm2 = vweird.f32 %v2127_v3  ;;  %v727_v54 = vcvt.s32.f32 %v711_v49 }
 0x18c   : > { %v359_v21 = vpop.f32.mrf.mxu2  ;;  %v542_v26 = vsel %vm2666_vm14, %v2125_v36, %v538_v8  ;;  %vm2705_vm3 = vmor %vm554_vm15, %vm555_vm2  ;;  %v823_v10 = vmul.f32 %v2370_v56, %v806_v41  ;;  %v744_v2 = vadd.f32 0.5, %v728_v37 }
 0x18d   : > { %v2688_v30 = vadd.f32 %v359_v21, %v2344_v27  ;;  %v968_v52 = vadd.f32 %v952_v58, %v919_v14  ;;  %v547_v31 = vsel %vm2630_vm12, %v546_v61, %v542_v26  ;;  %v551_v32 = vsub.f32 1.0, %v550_v15 }
 0x18e   : > { %v871_v33 = vmul.f32 2.0, %v547_v31  ;;  %v743_v1 = vadd.f32 0.5, %v727_v54  ;;  %v760_v25 = vmul.f32 0.0625, %v744_v2  ;;  %v856_v59 = vadd.f32 %v840_v35, %v823_v10 }
 0x18f   : > { %v2129_v36 = vpop.eup %2128  ;;  %v1937_v7 = vmul.f32 -1.442695, %v2688_v30  ;;  %1022 = vst.msk [vmem:[%s2349_s15 + $0x48] sm:$0xff] %vm1012_vm1, %v2688_v30  ;;  %v2697_v18 = vadd.f32 %v985_v4, %v968_v52  ;;  %v552_v63 = vmul.f32 %v2127_v3, %v551_v32  ;;  %v986_v61 = vmul.f32 %v2397_v12, %v547_v31 }
 0x190   : > { %v2700_v11 = vadd.f32 1.0, %v2129_v36  ;;  %v1951_v39 = vadd.f32 -0.5, %v871_v33  ;;  %v936_v42 = vmul.f32 %v871_v33, %v871_v33  ;;  %v759_v43 = vmul.f32 0.0625, %v743_v1 }
 0x191   : > { %1146 = vrot.lane.b32.xlu2 %v2571_v44, %s2217_s6  ;;  %1221 = vrot.lane.b32.xlu1 %v2569_v40, %s2216_s5  ;;  %2130 = vpow2.f32 %v1937_v7  ;;  %1034 = vst.msk [vmem:[%s2490_s7 + $0x28] sm:$0xff] %vm1012_vm1, %v2697_v18  ;;  %v553_v28 = vadd.f32 %v2127_v3, %v552_v63  ;;  %v776_v14 = vfloor.f32 %v760_v25  ;;  %v696_v35 = vadd.s32 80, %v2327_v19 }
 0x192   : > { %2132 = vrcp.f32 %v2700_v11  ;;  %v903_v17 = vadd.f32 %v1951_v39, %v855_v62  ;;  %v953_v47 = vmul.f32 %v2405_v24, %v936_v42  ;;  %v775_v40 = vfloor.f32 %v759_v43 }
 0x193   : > { %v557_v48 = vsel %vm2705_vm3, %v2127_v3, %v553_v28  ;;  %v573_v3 = vand.u32 2147483647, %v2700_v11  ;;  %vm569_vm4 = vweird.f32 %v2700_v11  ;;  %v575_v26 = vand.u32 2147483648, %v2700_v11 }
 0x194   : > { %v362_v50 = vpop.f32.mrf.mxu2  ;;  %v920_v51 = vmul.f32 %v2402_v22, %v903_v17  ;;  %v562_v53 = vsel %vm2671_vm0, %v561_v23, %v557_v48  ;;  %v791_v62 = vmul.f32 16.0, %v775_v40  ;;  %v841_v33 = vmul.f32 %v2373_v57, %v775_v40 }
 0x195   : > { %v2727_v38 = vadd.f32 %v362_v50, %v2344_v27  ;;  %v872_v34 = vmul.f32 2.0, %v562_v53  ;;  %v792_v23 = vmul.f32 16.0, %v776_v14  ;;  %vm2761_vm6 = vcmp.eq.f32.partialorder %v573_v3, 8.507059e+37 }
 0x196   : > { %v969_v60 = vadd.f32 %v953_v47, %v920_v51  ;;  %v807_v49 = vsub.f32 %v727_v54, %v791_v62  ;;  %v987_v54 = vmul.f32 %v2397_v12, %v562_v53  ;;  %v576_v42 = vor.u32 1.1754944e-38, %v575_v26 }
 0x197   : > { %v2131_v0 = vpop.eup %2130  ;;  %v1938_v5 = vmul.f32 -1.442695, %v2727_v38  ;;  %1023 = vst.msk [vmem:[%s2349_s15 + $0x50] sm:$0xff] %vm1012_vm1, %v2727_v38  ;;  %v1952_v4 = vadd.f32 -0.5, %v872_v34  ;;  %v937_v46 = vmul.f32 %v872_v34, %v872_v34  ;;  %v808_v6 = vsub.f32 %v728_v37, %v792_v23 }
 0x198   : > { %v2133_v8 = vpop.eup %2132  ;;  %v2735_v9 = vadd.f32 1.0, %v2131_v0  ;;  %v2737_v13 = vadd.f32 %v986_v61, %v969_v60  ;;  %v824_v32 = vmul.f32 %v2370_v56, %v807_v49  ;;  %v713_v43 = vadd.s32 %v2329_v20, %v696_v35 }
 0x199   : > { %1276 = vrot.lane.b32.xlu2 %v2571_v44, %s2216_s5  ;;  %1148 = vrot.lane.b32.xlu1 %v2608_v29, %s2217_s6  ;;  %2134 = vpow2.f32 %v1938_v5  ;;  %v904_v58 = vadd.f32 %v1952_v4, %v856_v59  ;;  %v954_v15 = vmul.f32 %v2405_v24, %v937_v46  ;;  %v565_v21 = vmul.f32 %v2133_v8, %v2700_v11 }
 0x19a   : > { %2136 = vrcp.f32 %v2735_v9  ;;  %1035 = vst.msk [vmem:[%s2490_s7 + $0x30] sm:$0xff] %vm1012_vm1, %v2737_v13  ;;  %vm570_vm5 = vweird.f32 %v2133_v8  ;;  %vm584_vm8 = vweird.f32 %v2735_v9  ;;  %v588_v17 = vand.u32 2147483647, %v2735_v9 }
 0x19b   : > { %v1208_v41 = vpop.permute.xlu2 %1207  ;;  %v921_v44 = vmul.f32 %v2402_v22, %v904_v58  ;;  %v566_v52 = vsub.f32 1.0, %v565_v21  ;;  %vm2767_vm7 = vmor %vm569_vm4, %vm570_vm5  ;;  %v857_v40 = vadd.f32 %v841_v33, %v824_v32  ;;  %v842_v16 = vmul.f32 %v2373_v57, %v776_v14 }
 0x19c   : > { %1993 = vst.msk [vmem:[%s2349_s15 + $0x100] sm:$0xff] %vm1012_vm1, %v1208_v41  ;;  %v365_v31 = vpop.f32.mrf.mxu2  ;;  %v729_v37 = vcvt.s32.f32 %v713_v43  ;;  %v590_v53 = vand.u32 2147483648, %v2735_v9  ;;  %v697_v61 = vadd.s32 88, %v2327_v19  ;;  %vm2801_vm10 = vcmp.eq.f32.partialorder %v588_v17, 8.507059e+37 }
 0x19d   : > { %v2759_v1 = vadd.f32 %v365_v31, %v2344_v27  ;;  %v970_v36 = vadd.f32 %v954_v15, %v921_v44  ;;  %v567_v7 = vmul.f32 %v2133_v8, %v566_v52 }
 0x19e   : > { %v745_v59 = vadd.f32 0.5, %v729_v37  ;;  %v591_v3 = vor.u32 1.1754944e-38, %v590_v53  ;;  %v2813_v15 = vadd.s32 %v2329_v20, %v697_v61 }
 0x19f   : > { %v2135_v28 = vpop.eup %2134  ;;  %v1939_v10 = vmul.f32 -1.442695, %v2759_v1  ;;  %1024 = vst.msk [vmem:[%s2349_s15 + $0x58] sm:$0xff] %vm1012_vm1, %v2759_v1  ;;  %v2779_v11 = vadd.f32 %v987_v54, %v970_v36  ;;  %v568_v2 = vadd.f32 %v2133_v8, %v567_v7 }
 0x1a0   : > { %v2137_v47 = vpop.eup %2136  ;;  %v2782_v48 = vadd.f32 1.0, %v2135_v28  ;;  %v761_v0 = vmul.f32 0.0625, %v745_v59  ;;  %v730_v32 = vcvt.s32.f32 %v2813_v15 }
 0x1a1   : > { %1278 = vrot.lane.b32.xlu1 %v2608_v29, %s2216_s5  ;;  %1077 = vrot.lane.b32.xlu2 %v2644_v45, %s2217_s6  ;;  %2138 = vpow2.f32 %v1939_v10  ;;  %1036 = vst.msk [vmem:[%s2490_s7 + $0x38] sm:$0xff] %vm1012_vm1, %v2779_v11  ;;  %v572_v50 = vsel %vm2767_vm7, %v2133_v8, %v568_v2  ;;  %v580_v51 = vmul.f32 %v2137_v47, %v2735_v9  ;;  %vm585_vm9 = vweird.f32 %v2137_v47 }
 0x1a2   : > { %2140 = vrcp.f32 %v2782_v48  ;;  %v577_v25 = vsel %vm2761_vm6, %v576_v42, %v572_v50  ;;  %v825_v29 = vmul.f32 %v2370_v56, %v808_v6  ;;  %vm2808_vm11 = vmor %vm584_vm8, %vm585_vm9  ;;  %v777_v58 = vfloor.f32 %v761_v0 }
 0x1a3   : > { %v873_v34 = vmul.f32 2.0, %v577_v25  ;;  %v581_v60 = vsub.f32 1.0, %v580_v51  ;;  %v988_v8 = vmul.f32 %v2397_v12, %v577_v25  ;;  %v605_v54 = vand.u32 2147483648, %v2782_v48 }
 0x1a4   : > { %v858_v14 = vadd.f32 %v842_v16, %v825_v29  ;;  %vm599_vm12 = vweird.f32 %v2782_v48  ;;  %v793_v9 = vmul.f32 16.0, %v777_v58  ;;  %v368_v33 = vpop.f32.mrf.mxu3  ;;  %v603_v7 = vand.u32 2147483647, %v2782_v48 }
 0x1a5   : > { %v1953_v5 = vadd.f32 -0.5, %v873_v34  ;;  %v938_v4 = vmul.f32 %v873_v34, %v873_v34  ;;  %v582_v46 = vmul.f32 %v2137_v47, %v581_v60  ;;  %v2832_v63 = vadd.f32 %v368_v33, %v2344_v27 }
 0x1a6   : > { %v809_v39 = vsub.f32 %v729_v37, %v793_v9  ;;  %v843_v17 = vmul.f32 %v2373_v57, %v777_v58  ;;  %v606_v53 = vor.u32 1.1754944e-38, %v605_v54  ;;  %vm604_vm15 = vcmp.eq.f32.partialorder %v603_v7, 8.507059e+37 }
 0x1a7   : > { %v2139_v21 = vpop.eup %2138  ;;  %v905_v26 = vadd.f32 %v1953_v5, %v857_v40  ;;  %v955_v41 = vmul.f32 %v2405_v24, %v938_v4  ;;  %v583_v44 = vadd.f32 %v2137_v47, %v582_v46  ;;  %v1940_v10 = vmul.f32 -1.442695, %v2832_v63  ;;  %1025 = vst.msk [vmem:[%s2349_s15 + $0x60] sm:$0xff] %vm1012_vm1, %v2832_v63 }
 0x1a8   : > { %v2141_v52 = vpop.eup %2140  ;;  %v2817_v31 = vadd.f32 1.0, %v2139_v21  ;;  %v826_v2 = vmul.f32 %v2370_v56, %v809_v39 }
 0x1a9   : > { %1223 = vrot.lane.b32.xlu2 %v2644_v45, %s2216_s5  ;;  %1079 = vrot.lane.b32.xlu1 %v2688_v30, %s2217_s6  ;;  %v922_v23 = vmul.f32 %v2402_v22, %v905_v26  ;;  %v587_v35 = vsel %vm2808_vm11, %v2137_v47, %v583_v44  ;;  %v595_v36 = vmul.f32 %v2141_v52, %v2782_v48  ;;  %vm600_vm13 = vweird.f32 %v2141_v52 }
 0x1aa   : > { %2142 = vrcp.f32 %v2817_v31  ;;  %v592_v45 = vsel %vm2801_vm10, %v591_v3, %v587_v35  ;;  %v746_v47 = vadd.f32 0.5, %v730_v32  ;;  %vm2850_vm14 = vmor %vm599_vm12, %vm600_vm13  ;;  %v859_v61 = vadd.f32 %v843_v17, %v826_v2 }
 0x1ab   : > { %v1212_v42 = vpop.permute.xlu2 %1211  ;;  %v971_v6 = vadd.f32 %v955_v41, %v922_v23  ;;  %v874_v43 = vmul.f32 2.0, %v592_v45  ;;  %v596_v28 = vsub.f32 1.0, %v595_v36  ;;  %2144 = vpow2.f32 %v1940_v10 }
 0x1ac   : > { %1995 = vst.msk [vmem:[%s2349_s15 + $0x110] sm:$0xff] %vm1012_vm1, %v1212_v42  ;;  %v989_v60 = vmul.f32 %v2397_v12, %v592_v45  ;;  %v762_v62 = vmul.f32 0.0625, %v746_v47  ;;  %v371_v48 = vpop.f32.mrf.mxu3  ;;  %vm614_vm0 = vweird.f32 %v2817_v31  ;;  %v620_v26 = vand.u32 2147483648, %v2817_v31 }
 0x1ad   : > { %v2846_v40 = vadd.f32 %v988_v8, %v971_v6  ;;  %v1954_v16 = vadd.f32 -0.5, %v874_v43  ;;  %v939_v37 = vmul.f32 %v874_v43, %v874_v43  ;;  %v597_v50 = vmul.f32 %v2141_v52, %v596_v28 }
 0x1ae   : > { %v2868_v46 = vadd.f32 %v371_v48, %v2344_v27  ;;  %v778_v8 = vfloor.f32 %v762_v62  ;;  %v618_v54 = vand.u32 2147483647, %v2817_v31  ;;  %v621_v6 = vor.u32 1.1754944e-38, %v620_v26 }
 0x1af   : > { %1037 = vst.msk [vmem:[%s2490_s7 + $0x40] sm:$0xff] %vm1012_vm1, %v2846_v40  ;;  %v906_v25 = vadd.f32 %v1954_v16, %v858_v14  ;;  %v956_v29 = vmul.f32 %v2405_v24, %v939_v37  ;;  %v598_v59 = vadd.f32 %v2141_v52, %v597_v50  ;;  %v698_v2 = vadd.s32 96, %v2327_v19 }
 0x1b0   : > { %v2143_v34 = vpop.eup %2142  ;;  %v1941_v44 = vmul.f32 -1.442695, %v2868_v46  ;;  %1026 = vst.msk [vmem:[%s2349_s15 + $0x68] sm:$0xff] %vm1012_vm1, %v2868_v46  ;;  %vm619_vm4 = vcmp.eq.f32.partialorder %v618_v54, 8.507059e+37 }
 0x1b1   : > { %1150 = vrot.lane.b32.xlu2 %v2652_v55, %s2217_s6  ;;  %1225 = vrot.lane.b32.xlu1 %v2688_v30, %s2216_s5  ;;  %v923_v0 = vmul.f32 %v2402_v22, %v906_v25  ;;  %v602_v5 = vsel %vm2850_vm14, %v2141_v52, %v598_v59  ;;  %v610_v4 = vmul.f32 %v2143_v34, %v2817_v31  ;;  %v2145_v41 = vpop.eup %2144  ;;  %vm615_vm2 = vweird.f32 %v2143_v34 }
 0x1b2   : > { %v607_v3 = vsel %vm604_vm15, %v606_v53, %v602_v5  ;;  %v794_v52 = vmul.f32 16.0, %v778_v8  ;;  %v2878_v9 = vadd.f32 1.0, %v2145_v41  ;;  %2146 = vpow2.f32 %v1941_v44  ;;  %vm2895_vm3 = vmor %vm614_vm0, %vm615_vm2 }
 0x1b3   : > { %v1068_v49 = vpop.permute.xlu2 %1067  ;;  %v1062_v14 = vpop.permute.xlu0 %1061  ;;  %v972_v30 = vadd.f32 %v956_v29, %v923_v0  ;;  %v875_v58 = vmul.f32 2.0, %v607_v3  ;;  %v611_v21 = vsub.f32 1.0, %v610_v4  ;;  %v990_v28 = vmul.f32 %v2397_v12, %v607_v3 }
 0x1b4   : > { %1964 = vst.msk [vmem:[%s2349_s15 + $0x98] sm:$0xff] %vm1012_vm1, %v1068_v49  ;;  %v810_v7 = vsub.f32 %v730_v32, %v794_v52  ;;  %2148 = vrcp.f32 %v2878_v9  ;;  %v844_v32 = vmul.f32 %v2373_v57, %v778_v8  ;;  %v715_v53 = vadd.s32 %v2329_v20, %v698_v2 }
 0x1b5   : > { %1961 = vst.msk [vmem:[%s2349_s15 + $0x80] sm:$0xff] %vm1012_vm1, %v1062_v14  ;;  %v2880_v33 = vadd.f32 %v989_v60, %v972_v30  ;;  %v1955_v23 = vadd.f32 -0.5, %v875_v58  ;;  %v940_v35 = vmul.f32 %v875_v58, %v875_v58  ;;  %v612_v36 = vmul.f32 %v2143_v34, %v611_v21 }
 0x1b6   : > { %v827_v15 = vmul.f32 %v2370_v56, %v810_v7  ;;  %v699_v3 = vadd.s32 104, %v2327_v19  ;;  %v635_v54 = vand.u32 2147483648, %v2878_v9  ;;  %vm629_vm5 = vweird.f32 %v2878_v9 }
 0x1b7   : > { %1038 = vst.msk [vmem:[%s2490_s7 + $0x48] sm:$0xff] %vm1012_vm1, %v2880_v33  ;;  %v907_v45 = vadd.f32 %v1955_v23, %v859_v61  ;;  %v957_v39 = vmul.f32 %v2405_v24, %v940_v35  ;;  %v613_v43 = vadd.f32 %v2143_v34, %v612_v36  ;;  %v731_v61 = vcvt.s32.f32 %v715_v53 }
 0x1b8   : > { %v2147_v50 = vpop.eup %2146  ;;  %v716_v21 = vadd.s32 %v2329_v20, %v699_v3  ;;  %v633_v36 = vand.u32 2147483647, %v2878_v9  ;;  %v636_v7 = vor.u32 1.1754944e-38, %v635_v54 }
 0x1b9   : > { %1280 = vrot.lane.b32.xlu2 %v2652_v55, %s2216_s5  ;;  %1152 = vrot.lane.b32.xlu1 %v2697_v18, %s2217_s6  ;;  %v924_v31 = vmul.f32 %v2402_v22, %v907_v45  ;;  %v617_v10 = vsel %vm2895_vm3, %v2143_v34, %v613_v43  ;;  %v860_v55 = vadd.f32 %v844_v32, %v827_v15  ;;  %v2915_v29 = vadd.f32 1.0, %v2147_v50 }
 0x1ba   : > { %v622_v37 = vsel %vm619_vm4, %v621_v6, %v617_v10  ;;  %v2149_v25 = vpop.eup %2148  ;;  %v747_v5 = vadd.f32 0.5, %v731_v61  ;;  %v732_v52 = vcvt.s32.f32 %v716_v21  ;;  %v374_v6 = vpop.f32.mrf.mxu3  ;;  %vm634_vm8 = vcmp.eq.f32.partialorder %v633_v36, 8.507059e+37 }
 0x1bb   : > { %v1064_v17 = vpop.permute.xlu1 %1063  ;;  %v1070_v47 = vpop.permute.xlu2 %1069  ;;  %v973_v16 = vadd.f32 %v957_v39, %v924_v31  ;;  %v876_v51 = vmul.f32 2.0, %v622_v37  ;;  %2150 = vrcp.f32 %v2915_v29  ;;  %v625_v0 = vmul.f32 %v2149_v25, %v2878_v9 }
 0x1bc   : > { %1962 = vst.msk [vmem:[%s2349_s15 + $0x88] sm:$0xff] %vm1012_vm1, %v1064_v17  ;;  %v991_v4 = vmul.f32 %v2397_v12, %v622_v37  ;;  %v763_v14 = vmul.f32 0.0625, %v747_v5  ;;  %vm630_vm6 = vweird.f32 %v2149_v25  ;;  %v748_v42 = vadd.f32 0.5, %v732_v52 }
 0x1bd   : > { %1965 = vst.msk [vmem:[%s2349_s15 + $0xa0] sm:$0xff] %vm1012_vm1, %v1070_v47  ;;  %v2917_v59 = vadd.f32 %v990_v28, %v973_v16  ;;  %v1956_v34 = vadd.f32 -0.5, %v876_v51  ;;  %v941_v60 = vmul.f32 %v876_v51, %v876_v51  ;;  %v626_v49 = vsub.f32 1.0, %v625_v0  ;;  %vm631_vm7 = vmor %vm629_vm5, %vm630_vm6 }
 0x1be   : > { %v779_v41 = vfloor.f32 %v763_v14  ;;  %v2951_v15 = vadd.f32 %v374_v6, %v2344_v27  ;;  %v764_v31 = vmul.f32 0.0625, %v748_v42  ;;  %vm644_vm9 = vweird.f32 %v2915_v29 }
 0x1bf   : > { %1039 = vst.msk [vmem:[%s2490_s7 + $0x50] sm:$0xff] %vm1012_vm1, %v2917_v59  ;;  %v908_v62 = vadd.f32 %v1956_v34, %v860_v55  ;;  %v958_v48 = vmul.f32 %v2405_v24, %v941_v60  ;;  %v650_v55 = vand.u32 2147483648, %v2915_v29  ;;  %v648_v34 = vand.u32 2147483647, %v2915_v29 }
 0x1c0   : > { %v795_v45 = vmul.f32 16.0, %v779_v41  ;;  %v1942_v16 = vmul.f32 -1.442695, %v2951_v15  ;;  %v780_v50 = vfloor.f32 %v764_v31  ;;  %1027 = vst.msk [vmem:[%s2349_s15 + $0x70] sm:$0xff] %vm1012_vm1, %v2951_v15  ;;  %v700_v6 = vadd.s32 112, %v2327_v19 }
 0x1c1   : > { %1282 = vrot.lane.b32.xlu1 %v2697_v18, %s2216_s5  ;;  %1081 = vrot.lane.b32.xlu2 %v2727_v38, %s2217_s6  ;;  %v925_v8 = vmul.f32 %v2402_v22, %v908_v62  ;;  %v627_v18 = vmul.f32 %v2149_v25, %v626_v49  ;;  %v2151_v44 = vpop.eup %2150  ;;  %v651_v60 = vor.u32 1.1754944e-38, %v650_v55  ;;  %vm649_vm12 = vcmp.eq.f32.partialorder %v648_v34, 8.507059e+37 }
 0x1c2   : > { %v640_v39 = vmul.f32 %v2151_v44, %v2915_v29  ;;  %v811_v9 = vsub.f32 %v731_v61, %v795_v45  ;;  %2152 = vpow2.f32 %v1942_v16  ;;  %vm645_vm10 = vweird.f32 %v2151_v44  ;;  %v377_v5 = vpop.f32.mrf.mxu3 }
 0x1c3   : > { %v1210_v30 = vpop.permute.xlu1 %1209  ;;  %v1216_v58 = vpop.permute.xlu2 %1215  ;;  %v974_v26 = vadd.f32 %v958_v48, %v925_v8  ;;  %v628_v35 = vadd.f32 %v2149_v25, %v627_v18  ;;  %vm646_vm11 = vmor %vm644_vm9, %vm645_vm10  ;;  %v796_v61 = vmul.f32 16.0, %v780_v50  ;;  %v2972_v29 = vadd.f32 %v377_v5, %v2344_v27 }
 0x1c4   : > { %1994 = vst.msk [vmem:[%s2349_s15 + $0x108] sm:$0xff] %vm1012_vm1, %v1210_v30  ;;  %v641_v32 = vsub.f32 1.0, %v640_v39  ;;  %v828_v17 = vmul.f32 %v2370_v56, %v811_v9  ;;  %v846_v49 = vmul.f32 %v2373_v57, %v780_v50  ;;  %v701_v50 = vadd.s32 120, %v2327_v19 }
 0x1c5   : > { %1997 = vst.msk [vmem:[%s2349_s15 + $0x120] sm:$0xff] %vm1012_vm1, %v1216_v58  ;;  %v2938_v23 = vadd.f32 %v991_v4, %v974_v26  ;;  %v632_v43 = vsel %vm631_vm7, %v2149_v25, %v628_v35  ;;  %v812_v4 = vsub.f32 %v732_v52, %v796_v61  ;;  %v1943_v27 = vmul.f32 -1.442695, %v2972_v29 }
 0x1c6   : > { %v637_v28 = vsel %vm634_vm8, %v636_v7, %v632_v43  ;;  %v642_v37 = vmul.f32 %v2151_v44, %v641_v32  ;;  %1028 = vst.msk [vmem:[%s2349_s15 + $0x78] sm:$0xff] %vm1012_vm1, %v2972_v29  ;;  %v718_v34 = vadd.s32 %v2329_v20, %v701_v50 }
 0x1c7   : > { %1040 = vst.msk [vmem:[%s2490_s7 + $0x58] sm:$0xff] %vm1012_vm1, %v2938_v23  ;;  %v877_v47 = vmul.f32 2.0, %v637_v28  ;;  %v829_v21 = vmul.f32 %v2370_v56, %v812_v4  ;;  %v992_v26 = vmul.f32 %v2397_v12, %v637_v28  ;;  %2154 = vpow2.f32 %v1943_v27 }
 0x1c8   : > { %v643_v25 = vadd.f32 %v2151_v44, %v642_v37  ;;  %v2153_v18 = vpop.eup %2152  ;;  %v717_v28 = vadd.s32 %v2329_v20, %v700_v6  ;;  %v734_v19 = vcvt.s32.f32 %v718_v34 }
 0x1c9   : > { %1227 = vrot.lane.b32.xlu2 %v2727_v38, %s2216_s5  ;;  %1083 = vrot.lane.b32.xlu1 %v2759_v1, %s2217_s6  ;;  %v845_v38 = vmul.f32 %v2373_v57, %v779_v41  ;;  %v1957_v53 = vadd.f32 -0.5, %v877_v47  ;;  %v942_v0 = vmul.f32 %v877_v47, %v877_v47  ;;  %v862_v54 = vadd.f32 %v846_v49, %v829_v21 }
 0x1ca   : > { %v647_v48 = vsel %vm646_vm11, %v2151_v44, %v643_v25  ;;  %v442_v44 = vadd.f32 1.0, %v2153_v18 }
 0x1cb   : > { %v1066_v10 = vpop.permute.xlu1 %1065  ;;  %v1143_v2 = vpop.permute.xlu2 %1142  ;;  %v861_v51 = vadd.f32 %v845_v38, %v828_v17  ;;  %v652_v8 = vsel %vm649_vm12, %v651_v60, %v647_v48  ;;  %v959_v14 = vmul.f32 %v2405_v24, %v942_v0  ;;  %v733_v17 = vcvt.s32.f32 %v717_v28 }
 0x1cc   : > { %1963 = vst.msk [vmem:[%s2349_s15 + $0x90] sm:$0xff] %vm1012_vm1, %v1066_v10  ;;  %2156 = vrcp.f32 %v442_v44  ;;  %v993_v42 = vmul.f32 %v2397_v12, %v652_v8  ;;  %v665_v61 = vand.u32 2147483648, %v442_v44  ;;  %vm659_vm13 = vweird.f32 %v442_v44 }
 0x1cd   : > { %1977 = vst.msk [vmem:[%s2490_s7 + $0x80] sm:$0xff] %vm1012_vm1, %v1143_v2  ;;  %v909_v62 = vadd.f32 %v1957_v53, %v861_v51  ;;  %v2155_v31 = vpop.eup %2154  ;;  %v749_v47 = vadd.f32 0.5, %v733_v17 }
 0x1ce   : > { %v666_v48 = vor.u32 1.1754944e-38, %v665_v61 }
 0x1cf   : > { %v926_v3 = vmul.f32 %v2402_v22, %v909_v62  ;;  %v765_v37 = vmul.f32 0.0625, %v749_v47  ;;  %v663_v62 = vand.u32 2147483647, %v442_v44 }
 0x1d1   : > { %1154 = vrot.lane.b32.xlu2 %v2737_v13, %s2217_s6  ;;  %1229 = vrot.lane.b32.xlu1 %v2759_v1, %s2216_s5  ;;  %v878_v1 = vmul.f32 2.0, %v652_v8  ;;  %v975_v41 = vadd.f32 %v959_v14, %v926_v3  ;;  %v781_v25 = vfloor.f32 %v765_v37  ;;  %vm664_vm0 = vcmp.eq.f32.partialorder %v663_v62, 8.507059e+37 }
 0x1d2   : > { %v2157_v10 = vpop.eup %2156  ;;  %v750_v8 = vadd.f32 0.5, %v734_v19 }
 0x1d3   : > { %v1214_v30 = vpop.permute.xlu1 %1213  ;;  %v1273_v58 = vpop.permute.xlu2 %1272  ;;  %v1958_v52 = vadd.f32 -0.5, %v878_v1  ;;  %v943_v35 = vmul.f32 %v878_v1, %v878_v1  ;;  %v2986_v36 = vadd.f32 %v992_v26, %v975_v41  ;;  %v655_v38 = vmul.f32 %v2157_v10, %v442_v44 }
 0x1d4   : > { %1996 = vst.msk [vmem:[%s2349_s15 + $0x118] sm:$0xff] %vm1012_vm1, %v1214_v30  ;;  %vm660_vm14 = vweird.f32 %v2157_v10  ;;  %v797_v0 = vmul.f32 16.0, %v781_v25  ;;  %v847_v49 = vmul.f32 %v2373_v57, %v781_v25  ;;  %v766_v26 = vmul.f32 0.0625, %v750_v8 }
 0x1d5   : > { %2009 = vst.msk [vmem:[%s2490_s7 + $0x100] sm:$0xff] %vm1012_vm1, %v1273_v58  ;;  %v910_v7 = vadd.f32 %v1958_v52, %v862_v54  ;;  %v960_v45 = vmul.f32 %v2405_v24, %v943_v35  ;;  %v656_v16 = vsub.f32 1.0, %v655_v38  ;;  %vm661_vm15 = vmor %vm659_vm13, %vm660_vm14 }
 0x1d6   : > { %1041 = vst.msk [vmem:[%s2490_s7 + $0x60] sm:$0xff] %vm1012_vm1, %v2986_v36  ;;  %v813_v3 = vsub.f32 %v733_v17, %v797_v0  ;;  %v782_v44 = vfloor.f32 %v766_v26 }
 0x1d7   : > { %v927_v39 = vmul.f32 %v2402_v22, %v910_v7  ;;  %v657_v53 = vmul.f32 %v2157_v10, %v656_v16 }
 0x1d8   : > { %v830_v1 = vmul.f32 %v2370_v56, %v813_v3  ;;  %v848_v28 = vmul.f32 %v2373_v57, %v782_v44 }
 0x1d9   : > { %1284 = vrot.lane.b32.xlu2 %v2737_v13, %s2216_s5  ;;  %1156 = vrot.lane.b32.xlu1 %v2779_v11, %s2217_s6  ;;  %v976_v32 = vadd.f32 %v960_v45, %v927_v39  ;;  %v3004_v13 = vadd.f32 1.0, %v2155_v31  ;;  %v798_v39 = vmul.f32 16.0, %v782_v44 }
 0x1db   : > { %v1072_v43 = vpop.permute.xlu1 %1071  ;;  %v1074_v9 = vpop.permute.xlu2 %1073  ;;  %v3006_v2 = vadd.f32 %v993_v42, %v976_v32  ;;  %2158 = vrcp.f32 %v3004_v13  ;;  %v680_v41 = vand.u32 2147483648, %v3004_v13  ;;  %vm674_vm2 = vweird.f32 %v3004_v13 }
 0x1dc   : > { %1966 = vst.msk [vmem:[%s2349_s15 + $0xa8] sm:$0xff] %vm1012_vm1, %v1072_v43  ;;  %v678_v7 = vand.u32 2147483647, %v3004_v13 }
 0x1dd   : > { %1967 = vst.msk [vmem:[%s2349_s15 + $0xb0] sm:$0xff] %vm1012_vm1, %v1074_v9  ;;  %1298 = vrot.lane.b32.xlu0 %v3006_v2, %s2216_s5  ;;  %v681_v45 = vor.u32 1.1754944e-38, %v680_v41  ;;  %v814_v9 = vsub.f32 %v734_v19, %v798_v39 }
 0x1de   : > { %1042 = vst.msk [vmem:[%s2490_s7 + $0x68] sm:$0xff] %vm1012_vm1, %v3006_v2  ;;  %vm679_vm5 = vcmp.eq.f32.partialorder %v678_v7, 8.507059e+37 }
 0x1df   : > { %v831_v38 = vmul.f32 %v2370_v56, %v814_v9  ;;  %v1477_v9 = vld [vmem:[%s2349_s15 + $0x8] sm:$0xff] (%p2289_p5) }
 0x1e0   : > { %1478 = vst [vmem:[%s3187_s14 + $0x8] sm:$0xff] (%p2289_p5), %v1477_v9 }
 0x1e1   : > { %1286 = vrot.lane.b32.xlu1 %v2779_v11, %s2216_s5  ;;  %1085 = vrot.lane.b32.xlu2 %v2832_v63, %s2217_s6  ;;  %v2159_v60 = vpop.eup %2158  ;;  %v658_v11 = vadd.f32 %v2157_v10, %v657_v53  ;;  %v864_v16 = vadd.f32 %v848_v28, %v831_v38  ;;  %v1483_v28 = vld [vmem:[%s2349_s15 + $0x20] sm:$0xff] (%p2289_p5) }
 0x1e2   : > { %v670_v4 = vmul.f32 %v2159_v60, %v3004_v13  ;;  %vm675_vm3 = vweird.f32 %v2159_v60  ;;  %1484 = vst [vmem:[%s3187_s14 + $0x20] sm:$0xff] (%p2289_p5), %v1483_v28  ;;  %v1491_v38 = vld [vmem:[%s2349_s15 + $0x40] sm:$0xff] (%p2289_p5) }
 0x1e3   : > { %v1218_v55 = vpop.permute.xlu1 %1217  ;;  %v1220_v51 = vpop.permute.xlu2 %1219  ;;  %v662_v5 = vsel %vm661_vm15, %v2157_v10, %v658_v11  ;;  %vm676_vm4 = vmor %vm674_vm2, %vm675_vm3  ;;  %1492 = vst [vmem:[%s3187_s14 + $0x40] sm:$0xff] (%p2289_p5), %v1491_v38 }
 0x1e4   : > { %1998 = vst.msk [vmem:[%s2349_s15 + $0x128] sm:$0xff] %vm1012_vm1, %v1218_v55  ;;  %v667_v20 = vsel %vm664_vm0, %v666_v48, %v662_v5  ;;  %v671_v30 = vsub.f32 1.0, %v670_v4 }
 0x1e5   : > { %1999 = vst.msk [vmem:[%s2349_s15 + $0x130] sm:$0xff] %vm1012_vm1, %v1220_v51  ;;  %v879_v14 = vmul.f32 2.0, %v667_v20  ;;  %v994_v32 = vmul.f32 %v2397_v12, %v667_v20 }
 0x1e6   : > { %v672_v27 = vmul.f32 %v2159_v60, %v671_v30 }
 0x1e7   : > { %v1959_v18 = vadd.f32 -0.5, %v879_v14  ;;  %v944_v54 = vmul.f32 %v879_v14, %v879_v14 }
 0x1e8   : > { %v673_v52 = vadd.f32 %v2159_v60, %v672_v27 }
 0x1e9   : > { %1231 = vrot.lane.b32.xlu2 %v2832_v63, %s2216_s5  ;;  %1087 = vrot.lane.b32.xlu1 %v2868_v46, %s2217_s6  ;;  %v863_v63 = vadd.f32 %v847_v49, %v830_v1  ;;  %v961_v42 = vmul.f32 %v2405_v24, %v944_v54 }
 0x1ea   : > { %v677_v6 = vsel %vm676_vm4, %v2159_v60, %v673_v52 }
 0x1eb   : > { %v1145_v58 = vpop.permute.xlu1 %1144  ;;  %v1147_v21 = vpop.permute.xlu2 %1146  ;;  %v911_v35 = vadd.f32 %v1959_v18, %v863_v63  ;;  %v682_v31 = vsel %vm679_vm5, %v681_v45, %v677_v6 }
 0x1ec   : > { %1978 = vst.msk [vmem:[%s2490_s7 + $0x88] sm:$0xff] %vm1012_vm1, %v1145_v58  ;;  %v880_v47 = vmul.f32 2.0, %v682_v31  ;;  %v995_v51 = vmul.f32 %v2397_v12, %v682_v31  ;;  %v1481_v31 = vld [vmem:[%s2349_s15 + $0x18] sm:$0xff] (%p2289_p5) }
 0x1ed   : > { %1979 = vst.msk [vmem:[%s2490_s7 + $0x90] sm:$0xff] %vm1012_vm1, %v1147_v21  ;;  %v928_v43 = vmul.f32 %v2402_v22, %v911_v35 }
 0x1ee   : > { %v1960_v37 = vadd.f32 -0.5, %v880_v47  ;;  %v945_v50 = vmul.f32 %v880_v47, %v880_v47  ;;  %1482 = vst [vmem:[%s3187_s14 + $0x18] sm:$0xff] (%p2289_p5), %v1481_v31  ;;  %v1493_v47 = vld [vmem:[%s2349_s15 + $0x48] sm:$0xff] (%p2289_p5) }
 0x1ef   : > { %v977_v17 = vadd.f32 %v961_v42, %v928_v43  ;;  %v1475_v43 = vld [vmem:[%s2349_s15] sm:$0xff] (%p2289_p5)  ;;  %1494 = vst [vmem:[%s3187_s14 + $0x48] sm:$0xff] (%p2289_p5), %v1493_v47 }
 0x1f0   : > { %v912_v57 = vadd.f32 %v1960_v37, %v864_v16  ;;  %v962_v55 = vmul.f32 %v2405_v24, %v945_v50  ;;  %1476 = vst [vmem:[%s3187_s14] sm:$0xff] (%p2289_p5), %v1475_v43  ;;  %v1497_v16 = vld [vmem:[%s2349_s15 + $0x58] sm:$0xff] (%p2289_p5)  ;;  %v1499_v37 = vld [vmem:[%s2349_s15 + $0x60] sm:$0xff] (%p2289_p5)  ;;  %v1501_v50 = vld [vmem:[%s2349_s15 + $0x68] sm:$0xff] (%p2289_p5) }
 0x1f1   : > { %1158 = vrot.lane.b32.xlu2 %v2846_v40, %s2217_s6  ;;  %1233 = vrot.lane.b32.xlu1 %v2868_v46, %s2216_s5  ;;  %v1010_v46 = vadd.f32 %v994_v32, %v977_v17  ;;  %v1479_v32 = vld [vmem:[%s2349_s15 + $0x10] sm:$0xff] (%p2289_p5)  ;;  %v1489_v17 = vld [vmem:[%s2349_s15 + $0x38] sm:$0xff] (%p2289_p5) }
 0x1f2   : > { %v929_v56 = vmul.f32 %v2402_v22, %v912_v57  ;;  %1480 = vst [vmem:[%s3187_s14 + $0x10] sm:$0xff] (%p2289_p5), %v1479_v32  ;;  %v1503_v57 = vld [vmem:[%s2349_s15 + $0x70] sm:$0xff] (%p2289_p5) }
 0x1f3   : > { %v1275_v10 = vpop.permute.xlu1 %1274  ;;  %v1277_v13 = vpop.permute.xlu2 %1276  ;;  %1043 = vst.msk [vmem:[%s2490_s7 + $0x70] sm:$0xff] %vm1012_vm1, %v1010_v46 }
 0x1f4   : > { %2010 = vst.msk [vmem:[%s2490_s7 + $0x108] sm:$0xff] %vm1012_vm1, %v1275_v10  ;;  %v978_v34 = vadd.f32 %v962_v55, %v929_v56  ;;  %v1485_v10 = vld [vmem:[%s2349_s15 + $0x28] sm:$0xff] (%p2289_p5)  ;;  %v1505_v55 = vld [vmem:[%s2349_s15 + $0x78] sm:$0xff] (%p2289_p5)  ;;  %v1507_v56 = vld [vmem:[%s2349_s15 + $0x80] sm:$0xff] (%p2289_p5) }
 0x1f5   : > { %2011 = vst.msk [vmem:[%s2490_s7 + $0x110] sm:$0xff] %vm1012_vm1, %v1277_v13  ;;  %v1487_v13 = vld [vmem:[%s2349_s15 + $0x30] sm:$0xff] (%p2289_p5) }
 0x1f6   : > { %v1011_v24 = vadd.f32 %v995_v51, %v978_v34  ;;  %1486 = vst [vmem:[%s3187_s14 + $0x28] sm:$0xff] (%p2289_p5), %v1485_v10  ;;  %v1509_v51 = vld [vmem:[%s2349_s15 + $0x88] sm:$0xff] (%p2289_p5)  ;;  %v1515_v34 = vld [vmem:[%s2349_s15 + $0xa0] sm:$0xff] (%p2289_p5) }
 0x1f7   : > { %1488 = vst [vmem:[%s3187_s14 + $0x30] sm:$0xff] (%p2289_p5), %v1487_v13 }
 0x1f8   : > { %1044 = vst.msk [vmem:[%s2490_s7 + $0x78] sm:$0xff] %vm1012_vm1, %v1011_v24 }
 0x1f9   : > { %1288 = vrot.lane.b32.xlu2 %v2846_v40, %s2216_s5  ;;  %1160 = vrot.lane.b32.xlu1 %v2880_v33, %s2217_s6  ;;  %1490 = vst [vmem:[%s3187_s14 + $0x38] sm:$0xff] (%p2289_p5), %v1489_v17 }
 0x1fa   : > { %1498 = vst [vmem:[%s3187_s14 + $0x58] sm:$0xff] (%p2289_p5), %v1497_v16 }
 0x1fb   : > { %v1076_v53 = vpop.permute.xlu1 %1075  ;;  %v1078_v25 = vpop.permute.xlu2 %1077  ;;  %1500 = vst [vmem:[%s3187_s14 + $0x60] sm:$0xff] (%p2289_p5), %v1499_v37 }
 0x1fc   : > { %1968 = vst.msk [vmem:[%s2349_s15 + $0xb8] sm:$0xff] %vm1012_vm1, %v1076_v53  ;;  %v1511_v53 = vld [vmem:[%s2349_s15 + $0x90] sm:$0xff] (%p2289_p5) }
 0x1fd   : > { %1969 = vst.msk [vmem:[%s2349_s15 + $0xc0] sm:$0xff] %vm1012_vm1, %v1078_v25  ;;  %v1513_v25 = vld [vmem:[%s2349_s15 + $0x98] sm:$0xff] (%p2289_p5) }
 0x1fe   : > { %1502 = vst [vmem:[%s3187_s14 + $0x68] sm:$0xff] (%p2289_p5), %v1501_v50 }
 0x1ff   : > { %1504 = vst [vmem:[%s3187_s14 + $0x70] sm:$0xff] (%p2289_p5), %v1503_v57 }
 0x200   : > { %1506 = vst [vmem:[%s3187_s14 + $0x78] sm:$0xff] (%p2289_p5), %v1505_v55 }
 0x201   : > { %1290 = vrot.lane.b32.xlu1 %v2880_v33, %s2216_s5  ;;  %1089 = vrot.lane.b32.xlu2 %v2951_v15, %s2217_s6  ;;  %1508 = vst [vmem:[%s3187_s14 + $0x100] sm:$0xff] (%p2289_p5), %v1507_v56 }
 0x202   : > { %1510 = vst [vmem:[%s3187_s14 + $0x108] sm:$0xff] (%p2289_p5), %v1509_v51 }
 0x203   : > { %v1222_v12 = vpop.permute.xlu1 %1221  ;;  %v1224_v22 = vpop.permute.xlu2 %1223  ;;  %1512 = vst [vmem:[%s3187_s14 + $0x110] sm:$0xff] (%p2289_p5), %v1511_v53 }
 0x204   : > { %2000 = vst.msk [vmem:[%s2349_s15 + $0x138] sm:$0xff] %vm1012_vm1, %v1222_v12  ;;  %v1519_v12 = vld [vmem:[%s2349_s15 + $0xb0] sm:$0xff] (%p2289_p5) }
 0x205   : > { %2001 = vst.msk [vmem:[%s2349_s15 + $0x140] sm:$0xff] %vm1012_vm1, %v1224_v22  ;;  %v1521_v22 = vld [vmem:[%s2349_s15 + $0xb8] sm:$0xff] (%p2289_p5) }
 0x206   : > { %1514 = vst [vmem:[%s3187_s14 + $0x118] sm:$0xff] (%p2289_p5), %v1513_v25 }
 0x207   : > { %1516 = vst [vmem:[%s3187_s14 + $0x120] sm:$0xff] (%p2289_p5), %v1515_v34 }
 0x208   : > { %1520 = vst [vmem:[%s3187_s14 + $0x130] sm:$0xff] (%p2289_p5), %v1519_v12 }
 0x209   : > { %1235 = vrot.lane.b32.xlu2 %v2951_v15, %s2216_s5  ;;  %1091 = vrot.lane.b32.xlu1 %v2972_v29, %s2217_s6  ;;  %1522 = vst [vmem:[%s3187_s14 + $0x138] sm:$0xff] (%p2289_p5), %v1521_v22 }
 0x20b   : > { %v1149_v40 = vpop.permute.xlu1 %1148  ;;  %v1151_v33 = vpop.permute.xlu2 %1150 }
 0x20c   : > { %1980 = vst.msk [vmem:[%s2490_s7 + $0x98] sm:$0xff] %vm1012_vm1, %v1149_v40  ;;  %v1523_v40 = vld [vmem:[%s2349_s15 + $0xc0] sm:$0xff] (%p2289_p5) }
 0x20d   : > { %1981 = vst.msk [vmem:[%s2490_s7 + $0xa0] sm:$0xff] %vm1012_vm1, %v1151_v33 }
 0x20e   : > { %1524 = vst [vmem:[%s3187_s14 + $0x140] sm:$0xff] (%p2289_p5), %v1523_v40 }
 0x211   : > { %1162 = vrot.lane.b32.xlu2 %v2917_v59, %s2217_s6  ;;  %1237 = vrot.lane.b32.xlu1 %v2972_v29, %s2216_s5 }
 0x213   : > { %v1279_v15 = vpop.permute.xlu1 %1278  ;;  %v1281_v60 = vpop.permute.xlu2 %1280 }
 0x214   : > { %2012 = vst.msk [vmem:[%s2490_s7 + $0x118] sm:$0xff] %vm1012_vm1, %v1279_v15 }
 0x215   : > { %2013 = vst.msk [vmem:[%s2490_s7 + $0x120] sm:$0xff] %vm1012_vm1, %v1281_v60 }
 0x219   : > { %1292 = vrot.lane.b32.xlu2 %v2917_v59, %s2216_s5  ;;  %1164 = vrot.lane.b32.xlu1 %v2938_v23, %s2217_s6 }
 0x21b   : > { %v1080_v61 = vpop.permute.xlu1 %1079  ;;  %v1082_v11 = vpop.permute.xlu2 %1081 }
 0x21c   : > { %1970 = vst.msk [vmem:[%s2349_s15 + $0xc8] sm:$0xff] %vm1012_vm1, %v1080_v61 }
 0x21d   : > { %1971 = vst.msk [vmem:[%s2349_s15 + $0xd0] sm:$0xff] %vm1012_vm1, %v1082_v11 }
 0x221   : > { %1166 = vrot.lane.b32.xlu2 %v2986_v36, %s2217_s6  ;;  %1294 = vrot.lane.b32.xlu1 %v2938_v23, %s2216_s5 }
 0x223   : > { %v1226_v59 = vpop.permute.xlu1 %1225  ;;  %v1228_v29 = vpop.permute.xlu2 %1227  ;;  %v1525_v33 = vld [vmem:[%s2349_s15 + $0xc8] sm:$0xff] (%p2289_p5) }
 0x224   : > { %2002 = vst.msk [vmem:[%s2349_s15 + $0x148] sm:$0xff] %vm1012_vm1, %v1226_v59  ;;  %v1527_v15 = vld [vmem:[%s2349_s15 + $0xd0] sm:$0xff] (%p2289_p5) }
 0x225   : > { %2003 = vst.msk [vmem:[%s2349_s15 + $0x150] sm:$0xff] %vm1012_vm1, %v1228_v29 }
 0x226   : > { %1526 = vst [vmem:[%s3187_s14 + $0x148] sm:$0xff] (%p2289_p5), %v1525_v33 }
 0x227   : > { %1528 = vst [vmem:[%s3187_s14 + $0x150] sm:$0xff] (%p2289_p5), %v1527_v15 }
 0x229   : > { %1296 = vrot.lane.b32.xlu2 %v2986_v36, %s2216_s5  ;;  %1168 = vrot.lane.b32.xlu1 %v3006_v2, %s2217_s6 }
 0x22b   : > { %v1153_v62 = vpop.permute.xlu1 %1152  ;;  %v1155_v48 = vpop.permute.xlu2 %1154 }
 0x22c   : > { %1982 = vst.msk [vmem:[%s2490_s7 + $0xa8] sm:$0xff] %vm1012_vm1, %v1153_v62  ;;  %v1539_v62 = vld [vmem:[%s2349_s15 + $0x100] sm:$0xff] (%p2289_p5) }
 0x22d   : > { %1983 = vst.msk [vmem:[%s2490_s7 + $0xb0] sm:$0xff] %vm1012_vm1, %v1155_v48  ;;  %v1541_v48 = vld [vmem:[%s2349_s15 + $0x108] sm:$0xff] (%p2289_p5) }
 0x22e   : > { %1540 = vst [vmem:[%s3187_s14 + $0x200] sm:$0xff] (%p2289_p5), %v1539_v62 }
 0x22f   : > { %1542 = vst [vmem:[%s3187_s14 + $0x208] sm:$0xff] (%p2289_p5), %v1541_v48 }
 0x231   : > { %1170 = vrot.lane.b32.xlu2 %v1010_v46, %s2217_s6  ;;  %1172 = vrot.lane.b32.xlu1 %v1011_v24, %s2217_s6 }
 0x233   : > { %v1283_v23 = vpop.permute.xlu1 %1282  ;;  %v1285_v36 = vpop.permute.xlu2 %1284 }
 0x234   : > { %2014 = vst.msk [vmem:[%s2490_s7 + $0x128] sm:$0xff] %vm1012_vm1, %v1283_v23  ;;  %v1543_v23 = vld [vmem:[%s2349_s15 + $0x110] sm:$0xff] (%p2289_p5) }
 0x235   : > { %2015 = vst.msk [vmem:[%s2490_s7 + $0x130] sm:$0xff] %vm1012_vm1, %v1285_v36  ;;  %v1545_v36 = vld [vmem:[%s2349_s15 + $0x118] sm:$0xff] (%p2289_p5) }
 0x236   : > { %1544 = vst [vmem:[%s3187_s14 + $0x210] sm:$0xff] (%p2289_p5), %v1543_v23 }
 0x237   : > { %1546 = vst [vmem:[%s3187_s14 + $0x218] sm:$0xff] (%p2289_p5), %v1545_v36 }
 0x239   : > { %1302 = vrot.lane.b32.xlu2 %v1011_v24, %s2216_s5  ;;  %1300 = vrot.lane.b32.xlu1 %v1010_v46, %s2216_s5  ;;  %v1495_v46 = vld [vmem:[%s2349_s15 + $0x50] sm:$0xff] (%p2289_p5)  ;;  %v1517_v24 = vld [vmem:[%s2349_s15 + $0xa8] sm:$0xff] (%p2289_p5) }
 0x23a   : > { %1496 = vst [vmem:[%s3187_s14 + $0x50] sm:$0xff] (%p2289_p5), %v1495_v46 }
 0x23b   : > { %v1084_v2 = vpop.permute.xlu1 %1083  ;;  %v1086_v0 = vpop.permute.xlu2 %1085  ;;  %1518 = vst [vmem:[%s3187_s14 + $0x128] sm:$0xff] (%p2289_p5), %v1517_v24 }
 0x23c   : > { %1972 = vst.msk [vmem:[%s2349_s15 + $0xd8] sm:$0xff] %vm1012_vm1, %v1084_v2  ;;  %v1547_v2 = vld [vmem:[%s2349_s15 + $0x120] sm:$0xff] (%p2289_p5) }
 0x23d   : > { %1973 = vst.msk [vmem:[%s2349_s15 + $0xe0] sm:$0xff] %vm1012_vm1, %v1086_v0  ;;  %v1549_v0 = vld [vmem:[%s2349_s15 + $0x128] sm:$0xff] (%p2289_p5) }
 0x23e   : > { %1548 = vst [vmem:[%s3187_s14 + $0x220] sm:$0xff] (%p2289_p5), %v1547_v2 }
 0x23f   : > { %1550 = vst [vmem:[%s3187_s14 + $0x228] sm:$0xff] (%p2289_p5), %v1549_v0 }
 0x243   : > { %v1230_v19 = vpop.permute.xlu1 %1229  ;;  %v1232_v5 = vpop.permute.xlu2 %1231  ;;  %v1529_v60 = vld [vmem:[%s2349_s15 + $0xd8] sm:$0xff] (%p2289_p5) }
 0x244   : > { %2004 = vst.msk [vmem:[%s2349_s15 + $0x158] sm:$0xff] %vm1012_vm1, %v1230_v19  ;;  %v1531_v61 = vld [vmem:[%s2349_s15 + $0xe0] sm:$0xff] (%p2289_p5)  ;;  %v1551_v19 = vld [vmem:[%s2349_s15 + $0x130] sm:$0xff] (%p2289_p5) }
 0x245   : > { %2005 = vst.msk [vmem:[%s2349_s15 + $0x160] sm:$0xff] %vm1012_vm1, %v1232_v5  ;;  %v1553_v5 = vld [vmem:[%s2349_s15 + $0x138] sm:$0xff] (%p2289_p5) }
 0x246   : > { %1530 = vst [vmem:[%s3187_s14 + $0x158] sm:$0xff] (%p2289_p5), %v1529_v60 }
 0x247   : > { %1532 = vst [vmem:[%s3187_s14 + $0x160] sm:$0xff] (%p2289_p5), %v1531_v61 }
 0x248   : > { %1552 = vst [vmem:[%s3187_s14 + $0x230] sm:$0xff] (%p2289_p5), %v1551_v19 }
 0x249   : > { %1554 = vst [vmem:[%s3187_s14 + $0x238] sm:$0xff] (%p2289_p5), %v1553_v5 }
 0x24b   : > { %v1157_v4 = vpop.permute.xlu1 %1156  ;;  %v1159_v20 = vpop.permute.xlu2 %1158 }
 0x24c   : > { %1984 = vst.msk [vmem:[%s2490_s7 + $0xb8] sm:$0xff] %vm1012_vm1, %v1157_v4  ;;  %v1555_v4 = vld [vmem:[%s2349_s15 + $0x140] sm:$0xff] (%p2289_p5) }
 0x24d   : > { %1985 = vst.msk [vmem:[%s2490_s7 + $0xc0] sm:$0xff] %vm1012_vm1, %v1159_v20  ;;  %v1557_v20 = vld [vmem:[%s2349_s15 + $0x148] sm:$0xff] (%p2289_p5) }
 0x24e   : > { %1556 = vst [vmem:[%s3187_s14 + $0x240] sm:$0xff] (%p2289_p5), %v1555_v4 }
 0x24f   : > { %v1299_v3 = vpop.permute.xlu0 %1298  ;;  %1558 = vst [vmem:[%s3187_s14 + $0x248] sm:$0xff] (%p2289_p5), %v1557_v20 }
 0x250   : > { %2022 = vst.msk [vmem:[%s2490_s7 + $0x168] sm:$0xff] %vm1012_vm1, %v1299_v3  ;;  %v1559_v3 = vld [vmem:[%s2349_s15 + $0x150] sm:$0xff] (%p2289_p5) }
 0x251   : > { %1560 = vst [vmem:[%s3187_s14 + $0x250] sm:$0xff] (%p2289_p5), %v1559_v3 }
 0x253   : > { %v1287_v8 = vpop.permute.xlu1 %1286  ;;  %v1289_v49 = vpop.permute.xlu2 %1288 }
 0x254   : > { %2016 = vst.msk [vmem:[%s2490_s7 + $0x138] sm:$0xff] %vm1012_vm1, %v1287_v8  ;;  %v1561_v8 = vld [vmem:[%s2349_s15 + $0x158] sm:$0xff] (%p2289_p5) }
 0x255   : > { %2017 = vst.msk [vmem:[%s2490_s7 + $0x140] sm:$0xff] %vm1012_vm1, %v1289_v49  ;;  %v1563_v49 = vld [vmem:[%s2349_s15 + $0x160] sm:$0xff] (%p2289_p5) }
 0x256   : > { %1562 = vst [vmem:[%s3187_s14 + $0x258] sm:$0xff] (%p2289_p5), %v1561_v8 }
 0x257   : > { %1564 = vst [vmem:[%s3187_s14 + $0x260] sm:$0xff] (%p2289_p5), %v1563_v49 }
 0x25b   : > { %v1088_v14 = vpop.permute.xlu1 %1087  ;;  %v1090_v30 = vpop.permute.xlu2 %1089 }
 0x25c   : > { %1974 = vst.msk [vmem:[%s2349_s15 + $0xe8] sm:$0xff] %vm1012_vm1, %v1088_v14 }
 0x25d   : > { %1975 = vst.msk [vmem:[%s2349_s15 + $0xf0] sm:$0xff] %vm1012_vm1, %v1090_v30 }
 0x263   : > { %v1234_v58 = vpop.permute.xlu1 %1233  ;;  %v1236_v21 = vpop.permute.xlu2 %1235  ;;  %v1533_v11 = vld [vmem:[%s2349_s15 + $0xe8] sm:$0xff] (%p2289_p5) }
 0x264   : > { %2006 = vst.msk [vmem:[%s2349_s15 + $0x168] sm:$0xff] %vm1012_vm1, %v1234_v58  ;;  %v1535_v59 = vld [vmem:[%s2349_s15 + $0xf0] sm:$0xff] (%p2289_p5) }
 0x265   : > { %2007 = vst.msk [vmem:[%s2349_s15 + $0x170] sm:$0xff] %vm1012_vm1, %v1236_v21 }
 0x266   : > { %1534 = vst [vmem:[%s3187_s14 + $0x168] sm:$0xff] (%p2289_p5), %v1533_v11 }
 0x267   : > { %1536 = vst [vmem:[%s3187_s14 + $0x170] sm:$0xff] (%p2289_p5), %v1535_v59 }
 0x26b   : > { %v1161_v1 = vpop.permute.xlu1 %1160  ;;  %v1163_v26 = vpop.permute.xlu2 %1162  ;;  %v1565_v14 = vld [vmem:[%s2349_s15 + $0x168] sm:$0xff] (%p2289_p5) }
 0x26c   : > { %1986 = vst.msk [vmem:[%s2490_s7 + $0xc8] sm:$0xff] %vm1012_vm1, %v1161_v1  ;;  %v1567_v30 = vld [vmem:[%s2349_s15 + $0x170] sm:$0xff] (%p2289_p5) }
 0x26d   : > { %1987 = vst.msk [vmem:[%s2490_s7 + $0xd0] sm:$0xff] %vm1012_vm1, %v1163_v26 }
 0x26e   : > { %1566 = vst [vmem:[%s3187_s14 + $0x268] sm:$0xff] (%p2289_p5), %v1565_v14 }
 0x26f   : > { %1568 = vst [vmem:[%s3187_s14 + $0x270] sm:$0xff] (%p2289_p5), %v1567_v30 }
 0x273   : > { %v1291_v18 = vpop.permute.xlu1 %1290  ;;  %v1293_v27 = vpop.permute.xlu2 %1292 }
 0x274   : > { %2018 = vst.msk [vmem:[%s2490_s7 + $0x148] sm:$0xff] %vm1012_vm1, %v1291_v18 }
 0x275   : > { %2019 = vst.msk [vmem:[%s2490_s7 + $0x150] sm:$0xff] %vm1012_vm1, %v1293_v27 }
 0x27b   : > { %v1167_v63 = vpop.permute.xlu2 %1166  ;;  %v1092_v41 = vpop.permute.xlu1 %1091 }
 0x27c   : > { %1989 = vst.msk [vmem:[%s2490_s7 + $0xe0] sm:$0xff] %vm1012_vm1, %v1167_v63 }
 0x27d   : > { %1976 = vst.msk [vmem:[%s2349_s15 + $0xf8] sm:$0xff] %vm1012_vm1, %v1092_v41 }
 0x283   : > { %v1297_v44 = vpop.permute.xlu2 %1296  ;;  %v1238_v54 = vpop.permute.xlu1 %1237 }
 0x284   : > { %2021 = vst.msk [vmem:[%s2490_s7 + $0x160] sm:$0xff] %vm1012_vm1, %v1297_v44  ;;  %v1537_v29 = vld [vmem:[%s2349_s15 + $0xf8] sm:$0xff] (%p2289_p5) }
 0x285   : > { %2008 = vst.msk [vmem:[%s2349_s15 + $0x178] sm:$0xff] %vm1012_vm1, %v1238_v54 }
 0x286   : > { %1538 = vst [vmem:[%s3187_s14 + $0x178] sm:$0xff] (%p2289_p5), %v1537_v29 }
 0x28b   : > { %v1171_v52 = vpop.permute.xlu2 %1170  ;;  %v1165_v35 = vpop.permute.xlu1 %1164 }
 0x28c   : > { %1991 = vst.msk [vmem:[%s2490_s7 + $0xf0] sm:$0xff] %vm1012_vm1, %v1171_v52  ;;  %v1569_v58 = vld [vmem:[%s2349_s15 + $0x178] sm:$0xff] (%p2289_p5) }
 0x28d   : > { %1988 = vst.msk [vmem:[%s2490_s7 + $0xd8] sm:$0xff] %vm1012_vm1, %v1165_v35 }
 0x28e   : > { %1570 = vst [vmem:[%s3187_s14 + $0x278] sm:$0xff] (%p2289_p5), %v1569_v58 }
 0x293   : > { %v1295_v7 = vpop.permute.xlu1 %1294  ;;  %v1303_v45 = vpop.permute.xlu2 %1302 }
 0x294   : > { %2020 = vst.msk [vmem:[%s2490_s7 + $0x158] sm:$0xff] %vm1012_vm1, %v1295_v7 }
 0x295   : > { %2024 = vst.msk [vmem:[%s2490_s7 + $0x178] sm:$0xff] %vm1012_vm1, %v1303_v45 }
 0x29b   : > { %v1169_v39 = vpop.permute.xlu1 %1168 }
 0x29c   : > { %1990 = vst.msk [vmem:[%s2490_s7 + $0xe8] sm:$0xff] %vm1012_vm1, %v1169_v39 }
 0x2a3   : > { %v1173_v42 = vpop.permute.xlu1 %1172 }
 0x2a4   : > { %1992 = vst.msk [vmem:[%s2490_s7 + $0xf8] sm:$0xff] %vm1012_vm1, %v1173_v42 }
 0x2a8   : > { %1347 = sbr.rel (!%p2289_p5) target bundleno = 685 (0x2ad), region = 36 }
 0x2ab   : > { %v1301_v6 = vpop.permute.xlu1 %1300 }
 0x2ac   : > { %2023 = vst.msk [vmem:[%s2490_s7 + $0x170] sm:$0xff] %vm1012_vm1, %v1301_v6 }
 0x2ad PF: > { %1576 = sbr.rel (!%p2289_p5) target bundleno = 739 (0x2e3), region = 74  ;;  %s2027_s24 = sshll.u32 (%p2289_p5), %s2198_s17, 4  ;;  %v1704_v21 = vld [vmem:[%s2490_s7] sm:$0xff] (%p2289_p5)  ;;  %v1706_v1 = vld [vmem:[%s2490_s7 + $0x8] sm:$0xff] (%p2289_p5)  ;;  %v1708_v26 = vld [vmem:[%s2490_s7 + $0x10] sm:$0xff] (%p2289_p5) }
 0x2ae   : > { %s2036_s25 = smul.u32 (%p2289_p5), 96, %s2202_s18  ;;  %v1710_v18 = vld [vmem:[%s2490_s7 + $0x18] sm:$0xff] (%p2289_p5)  ;;  %v1712_v27 = vld [vmem:[%s2490_s7 + $0x20] sm:$0xff] (%p2289_p5)  ;;  %v1714_v63 = vld [vmem:[%s2490_s7 + $0x28] sm:$0xff] (%p2289_p5) }
 0x2af   : > { %v1716_v41 = vld [vmem:[%s2490_s7 + $0x30] sm:$0xff] (%p2289_p5)  ;;  %v1718_v44 = vld [vmem:[%s2490_s7 + $0x38] sm:$0xff] (%p2289_p5)  ;;  %v1720_v54 = vld [vmem:[%s2490_s7 + $0x40] sm:$0xff] (%p2289_p5) }
 0x2b0   : > { %s1579_s27 = sadd.s32 (%p2289_p5), %s2036_s25, %s2027_s24  ;;  %v1722_v52 = vld [vmem:[%s2490_s7 + $0x48] sm:$0xff] (%p2289_p5)  ;;  %v1724_v35 = vld [vmem:[%s2490_s7 + $0x50] sm:$0xff] (%p2289_p5)  ;;  %v1726_v7 = vld [vmem:[%s2490_s7 + $0x58] sm:$0xff] (%p2289_p5) }
 0x2b1   : > { %s2028_s28 = sshll.u32 (%p2289_p5), %s1579_s27, 3  ;;  %v1728_v45 = vld [vmem:[%s2490_s7 + $0x60] sm:$0xff] (%p2289_p5)  ;;  %v1730_v39 = vld [vmem:[%s2490_s7 + $0x68] sm:$0xff] (%p2289_p5)  ;;  %v1732_v42 = vld [vmem:[%s2490_s7 + $0x70] sm:$0xff] (%p2289_p5) }
 0x2b2   : > { %s3292_s15 = scalar_lea.vmem %s3413_s4, %s2028_s28  ;;  %v1734_v6 = vld [vmem:[%s2490_s7 + $0x78] sm:$0xff]  ;;  %v1736_v43 = vld [vmem:[%s2490_s7 + $0x80] sm:$0xff]  ;;  %v1738_v9 = vld [vmem:[%s2490_s7 + $0x88] sm:$0xff] }
 0x2b3   : > { %1705 = vst [vmem:[%s3292_s15] sm:$0xff] %v1704_v21  ;;  %v1740_v32 = vld [vmem:[%s2490_s7 + $0x90] sm:$0xff]  ;;  %v1742_v31 = vld [vmem:[%s2490_s7 + $0x98] sm:$0xff]  ;;  %v1744_v28 = vld [vmem:[%s2490_s7 + $0xa0] sm:$0xff] }
 0x2b4   : > { %1707 = vst [vmem:[%s3292_s15 + $0x8] sm:$0xff] %v1706_v1  ;;  %v1746_v10 = vld [vmem:[%s2490_s7 + $0xa8] sm:$0xff]  ;;  %v1748_v13 = vld [vmem:[%s2490_s7 + $0xb0] sm:$0xff]  ;;  %v1750_v17 = vld [vmem:[%s2490_s7 + $0xb8] sm:$0xff] }
 0x2b5   : > { %1709 = vst [vmem:[%s3292_s15 + $0x10] sm:$0xff] %v1708_v26  ;;  %v1752_v38 = vld [vmem:[%s2490_s7 + $0xc0] sm:$0xff]  ;;  %v1754_v47 = vld [vmem:[%s2490_s7 + $0xc8] sm:$0xff]  ;;  %v1756_v46 = vld [vmem:[%s2490_s7 + $0xd0] sm:$0xff] }
 0x2b6   : > { %1711 = vst [vmem:[%s3292_s15 + $0x18] sm:$0xff] %v1710_v18  ;;  %v1758_v16 = vld [vmem:[%s2490_s7 + $0xd8] sm:$0xff]  ;;  %v1760_v37 = vld [vmem:[%s2490_s7 + $0xe0] sm:$0xff]  ;;  %v1762_v50 = vld [vmem:[%s2490_s7 + $0xe8] sm:$0xff] }
 0x2b7   : > { %1713 = vst [vmem:[%s3292_s15 + $0x20] sm:$0xff] %v1712_v27  ;;  %v1764_v57 = vld [vmem:[%s2490_s7 + $0xf0] sm:$0xff]  ;;  %v1766_v55 = vld [vmem:[%s2490_s7 + $0xf8] sm:$0xff]  ;;  %v1768_v56 = vld [vmem:[%s2490_s7 + $0x100] sm:$0xff] }
 0x2b8   : > { %1715 = vst [vmem:[%s3292_s15 + $0x28] sm:$0xff] %v1714_v63  ;;  %v1770_v51 = vld [vmem:[%s2490_s7 + $0x108] sm:$0xff]  ;;  %v1772_v53 = vld [vmem:[%s2490_s7 + $0x110] sm:$0xff]  ;;  %v1774_v25 = vld [vmem:[%s2490_s7 + $0x118] sm:$0xff] }
 0x2b9   : > { %1717 = vst [vmem:[%s3292_s15 + $0x30] sm:$0xff] %v1716_v41  ;;  %v1776_v34 = vld [vmem:[%s2490_s7 + $0x120] sm:$0xff]  ;;  %v1778_v24 = vld [vmem:[%s2490_s7 + $0x128] sm:$0xff]  ;;  %v1780_v12 = vld [vmem:[%s2490_s7 + $0x130] sm:$0xff] }
 0x2ba   : > { %1719 = vst [vmem:[%s3292_s15 + $0x38] sm:$0xff] %v1718_v44  ;;  %v1782_v22 = vld [vmem:[%s2490_s7 + $0x138] sm:$0xff]  ;;  %v1784_v40 = vld [vmem:[%s2490_s7 + $0x140] sm:$0xff]  ;;  %v1786_v33 = vld [vmem:[%s2490_s7 + $0x148] sm:$0xff] }
 0x2bb   : > { %1721 = vst [vmem:[%s3292_s15 + $0x40] sm:$0xff] %v1720_v54  ;;  %v1788_v15 = vld [vmem:[%s2490_s7 + $0x150] sm:$0xff]  ;;  %v1790_v60 = vld [vmem:[%s2490_s7 + $0x158] sm:$0xff]  ;;  %v1792_v61 = vld [vmem:[%s2490_s7 + $0x160] sm:$0xff] }
 0x2bc   : > { %1723 = vst [vmem:[%s3292_s15 + $0x48] sm:$0xff] %v1722_v52  ;;  %v1794_v11 = vld [vmem:[%s2490_s7 + $0x168] sm:$0xff]  ;;  %v1796_v59 = vld [vmem:[%s2490_s7 + $0x170] sm:$0xff]  ;;  %v1798_v29 = vld [vmem:[%s2490_s7 + $0x178] sm:$0xff] }
 0x2bd   : > { %1725 = vst [vmem:[%s3292_s15 + $0x50] sm:$0xff] %v1724_v35 }
 0x2be   : > { %1727 = vst [vmem:[%s3292_s15 + $0x58] sm:$0xff] %v1726_v7 }
 0x2bf   : > { %1729 = vst [vmem:[%s3292_s15 + $0x60] sm:$0xff] %v1728_v45 }
 0x2c0   : > { %1731 = vst [vmem:[%s3292_s15 + $0x68] sm:$0xff] %v1730_v39 }
 0x2c1   : > { %1733 = vst [vmem:[%s3292_s15 + $0x70] sm:$0xff] %v1732_v42 }
 0x2c2   : > { %1735 = vst [vmem:[%s3292_s15 + $0x78] sm:$0xff] %v1734_v6 }
 0x2c3   : > { %1737 = vst [vmem:[%s3292_s15 + $0x100] sm:$0xff] %v1736_v43 }
 0x2c4   : > { %1739 = vst [vmem:[%s3292_s15 + $0x108] sm:$0xff] %v1738_v9 }
 0x2c5   : > { %1741 = vst [vmem:[%s3292_s15 + $0x110] sm:$0xff] %v1740_v32 }
 0x2c6   : > { %1743 = vst [vmem:[%s3292_s15 + $0x118] sm:$0xff] %v1742_v31 }
 0x2c7   : > { %1745 = vst [vmem:[%s3292_s15 + $0x120] sm:$0xff] %v1744_v28 }
 0x2c8   : > { %1747 = vst [vmem:[%s3292_s15 + $0x128] sm:$0xff] %v1746_v10 }
 0x2c9   : > { %1749 = vst [vmem:[%s3292_s15 + $0x130] sm:$0xff] %v1748_v13 }
 0x2ca   : > { %1751 = vst [vmem:[%s3292_s15 + $0x138] sm:$0xff] %v1750_v17 }
 0x2cb   : > { %1753 = vst [vmem:[%s3292_s15 + $0x140] sm:$0xff] %v1752_v38 }
 0x2cc   : > { %1755 = vst [vmem:[%s3292_s15 + $0x148] sm:$0xff] %v1754_v47 }
 0x2cd   : > { %1757 = vst [vmem:[%s3292_s15 + $0x150] sm:$0xff] %v1756_v46 }
 0x2ce   : > { %1759 = vst [vmem:[%s3292_s15 + $0x158] sm:$0xff] %v1758_v16 }
 0x2cf   : > { %1761 = vst [vmem:[%s3292_s15 + $0x160] sm:$0xff] %v1760_v37 }
 0x2d0   : > { %1763 = vst [vmem:[%s3292_s15 + $0x168] sm:$0xff] %v1762_v50 }
 0x2d1   : > { %1765 = vst [vmem:[%s3292_s15 + $0x170] sm:$0xff] %v1764_v57 }
 0x2d2   : > { %1767 = vst [vmem:[%s3292_s15 + $0x178] sm:$0xff] %v1766_v55 }
 0x2d3   : > { %1769 = vst [vmem:[%s3292_s15 + $0x200] sm:$0xff] %v1768_v56 }
 0x2d4   : > { %1771 = vst [vmem:[%s3292_s15 + $0x208] sm:$0xff] %v1770_v51 }
 0x2d5   : > { %1773 = vst [vmem:[%s3292_s15 + $0x210] sm:$0xff] %v1772_v53 }
 0x2d6   : > { %1775 = vst [vmem:[%s3292_s15 + $0x218] sm:$0xff] %v1774_v25 }
 0x2d7   : > { %1777 = vst [vmem:[%s3292_s15 + $0x220] sm:$0xff] %v1776_v34 }
 0x2d8   : > { %1779 = vst [vmem:[%s3292_s15 + $0x228] sm:$0xff] %v1778_v24 }
 0x2d9   : > { %1781 = vst [vmem:[%s3292_s15 + $0x230] sm:$0xff] %v1780_v12 }
 0x2da   : > { %1783 = vst [vmem:[%s3292_s15 + $0x238] sm:$0xff] %v1782_v22 }
 0x2db   : > { %1785 = vst [vmem:[%s3292_s15 + $0x240] sm:$0xff] %v1784_v40 }
 0x2dc   : > { %1787 = vst [vmem:[%s3292_s15 + $0x248] sm:$0xff] %v1786_v33 }
 0x2dd   : > { %1789 = vst [vmem:[%s3292_s15 + $0x250] sm:$0xff] %v1788_v15 }
 0x2de   : > { %1791 = vst [vmem:[%s3292_s15 + $0x258] sm:$0xff] %v1790_v60 }
 0x2df   : > { %1793 = vst [vmem:[%s3292_s15 + $0x260] sm:$0xff] %v1792_v61 }
 0x2e0   : > { %1795 = vst [vmem:[%s3292_s15 + $0x268] sm:$0xff] %v1794_v11 }
 0x2e1   : > { %1797 = vst [vmem:[%s3292_s15 + $0x270] sm:$0xff] %v1796_v59 }
 0x2e2   : > { %1799 = vst [vmem:[%s3292_s15 + $0x278] sm:$0xff] %v1798_v29 }
 0x2e3 PF: > { %s15_s21 = sadd.s32 1, %s2214_s21   ;;  %s3445_s15 = smov %s2194_s16 }
 0x2e4   : > { %p12_p11 = scmp.ge.s32.totalorder %s15_s21, 6   ;;  %s3446_s16 = smov %s2300_s30 }
 0x2e5   : > { %s3447_s17 = smov %s2206_s19  ;;  %s3448_s18 = smov %s2210_s20 }
 0x2e6   : > { %s3449_s19 = smov %s3452_s22  ;;  %s3450_s20 = smov %s3456_s23 }
 0x2e7   :  { %14 = sbr.rel (!%p12_p11) target bundleno = 4 (0x4), region = 154 }

// kernel: yolov7_head_forward.5
= control target key start
LH: loop header
LB: loop body
LE: loop exit
PB: predicated region body
PF: predicated region fallthrough
CT: control target
= control target key end

     0   :  { %10 = vsyncpa [#allocation3], 0  ;;  %s994_s0 = inlined_call_operand.vmem [shape: bf16[2,32,16], index: 0, kind: input, shape index: {}]   ;;  %s995_s1 = inlined_call_operand.vmem [shape: bf16[32,39], index: 1, kind: input, shape index: {}]   ;;  %s996_s2 = inlined_call_operand.vmem [shape: f32[6,39], index: 2, kind: input, shape index: {}]   ;;  %s997_s3 = inlined_call_operand.hbm [shape: f32[2,3,16,13], index: 3, kind: output, shape index: {0}]   ;;  %s998_s4 = inlined_call_operand.vmem [shape: f32[2,3,16,13], index: 4, kind: output, shape index: {1}]  }
   0x1   :  { %12 = vsyncpa [#allocation3 + $0x1], 0  ;;  %s832_s15 = smov 0   ;;  %s834_s16 = smov 0  }
   0x2   :  { %s836_s17 = smov 0   ;;  %s838_s18 = smov 0  }
   0x3   :  { %s840_s19 = smov 0   ;;  %s842_s20 = smov 0  }
   0x4 LB: > { %s604_s21 = sadd.s32 4294967295, %s801_s20   ;;  %s605_s22 = sadd.s32 4294967294, %s801_s20   ;;  %s801_s20 = sphi %s842_s20, %s18_s20   ;;  %s797_s19 = sphi %s840_s19, %s1005_s19   ;;  %s793_s18 = sphi %s838_s18, %s1004_s18   ;;  %s789_s17 = sphi %s836_s17, %s1003_s17   ;;  %s785_s16 = sphi %s834_s16, %s1002_s16   ;;  %s781_s15 = sphi %s832_s15, %s1001_s15  }
   0x5   : > { %s30_s23 = sadd.s32 1, %s797_s19  ;;  %s109_s24 = sadd.s32 1, %s789_s17 }
   0x6   : > { %p32_p0 = scmp.ge.s32.totalorder %s30_s23, 2  ;;  %p119_p1 = scmp.ne.s32.totalorder %s789_s17, %s785_s16 }
   0x7   : > { %p120_p2 = scmp.eq.s32.totalorder %s604_s21, 1  ;;  %p125_p3 = scmp.ne.s32.totalorder %s785_s16, %s781_s15 }
   0x8   : > { %s1007_s23 = smov (%p32_p0, %s30_s23), 0  ;;  %p126_p5 = scmp.eq.s32.totalorder %s605_s22, 1 }
   0x9   : > { %p872_p4 = por %p120_p2, %p119_p1  ;;  %s104_s26 = ssub.s32 %s797_s19, %s1007_s23 }
   0xa   : > { %p608_p6 = scmp.ge.s32.totalorder %s801_s20, 1  ;;  %p107_p7 = scmp.eq.s32.totalorder %s104_s26, 0 }
   0xb   : > { %p879_p8 = por %p126_p5, %p125_p3  ;;  %p189_p9 = scmp.lt.s32.totalorder %s801_s20, 3 }
   0xc   : > { %s885_s28 = scalar_select %p107_p7, %s789_s17, %s109_s24  }
   0xd   : > { %p190_p10 = pnand %p608_p6, %p189_p9 }
   0xe   : > { %p227_p11 = scmp.lt.s32.totalorder (!%p190_p10), %s793_s18, 1  ;;  %s213_s12 = sand.u32 (!%p190_p10), 1, %s785_s16  }
   0xf   : > { %193 = sbr.rel (%p190_p10) target bundleno = 485 (0x1e5), region = 32  ;;  %s803_s24 = smov (!%p190_p10), 102  }
  0x10   : > { %s652_s21 = smul.u32 (!%p190_p10), 48, %s213_s12  ;;  %s804_s26 = smov (!%p190_p10), 115  }
  0x11   : > { %s458_s14 = scalar_lea.sflag (!%p190_p10), [#allocation3], %s213_s12 }
  0x12   : > { %s910_s22 = scalar_lea.vmem (!%p190_p10), [#allocation2], %s652_s21 }
  0x14   : > { %v647_v0 = vld [vmem:[%s995_s1 + $0x8] sm:$0xff]   ;;  %v639_v1 = vld [vmem:[%s995_s1] sm:$0xff]   ;;  %s895_s7 = scalar_select %p227_p11, %s793_s18, 1  ;;  %vm296_vm0 = vcmask 261120   ;;  %v365_v14 = vlaneseq  ;;  %vm412_vm1 = vcmask 105472  }
  0x15   : > { %v645_v2 = vunpack.c.h.bf16 %v647_v0  ;;  %v644_v3 = vunpack.c.l.bf16 %v647_v0  ;;  %v641_v4 = vunpack.c.h.bf16 %v639_v1  ;;  %v640_v6 = vunpack.c.l.bf16 %v639_v1  ;;  %v905_v15 = vld [vmem:[%s996_s2] sm:$0x3f] }
  0x16   : > { %s629_s8 = sshll.u32 %s895_s7, 4  ;;  %v366_v16 = vshrl.u32 %v365_v14, 7  ;;  %v295_v17 = vperm.slane %v905_v15, 0  ;;  %v383_v39 = vperm.slane %v905_v15, 4  ;;  %v386_v41 = vperm.slane %v905_v15, 5  ;;  %s653_s29 = smul.u32 48, %s895_s7 }
  0x17   : > { %315 = vmatpush.msra.mxu0 %v645_v2  ;;  %648 = vmatpush.msra.mxu1 %v645_v2  ;;  %s234_s11 = scalar_lea.vmem %s994_s0, %s629_s8  ;;  %v402_v62 = vperm.slane %v905_v15, 2  ;;  %v397_v0 = vperm.slane %v905_v15, 1  ;;  %s654_s7 = smul.u32 48, %s793_s18 }
  0x18   : > { %v631_v5 = vld [vmem:[%s234_s11] sm:$0xff]   ;;  %v646_v9 = vld [vmem:[%s234_s11 + $0x8] sm:$0xff]   ;;  %v371_v19 = vcvt.s32.f32 %v366_v16  ;;  %v367_v23 = vadd.s32 8, %v366_v16  ;;  %s929_s6 = scalar_lea.vmem %s998_s4, %s653_s29  ;;  %s481_s11 = sshll.u32 %s910_s22, 4  ;;  %s482_s11 = int_to_ptr.vmem [resolvable:$true] %s481_s11 }
  0x19   : > { %316 = vmatpush.msra.mxu0 %v644_v3  ;;  %649 = vmatpush.msra.mxu1 %v644_v3  ;;  %v632_v7 = vunpack.c.l.bf16 %v631_v5  ;;  %v633_v8 = vunpack.c.h.bf16 %v631_v5  ;;  %v636_v10 = vunpack.c.l.bf16 %v646_v9  ;;  %v637_v11 = vunpack.c.h.bf16 %v646_v9  ;;  %s480_s10 = scalar_lea.hbm %s997_s3, %s654_s7  ;;  %s743_s29 = scalar_lea.hbm %s997_s3, 96 }
  0x1a   : > { %v373_v22 = vadd.f32 0.5, %v371_v19  ;;  %v372_v27 = vcvt.s32.f32 %v367_v23  ;;  %v407_v3 = vperm.slane %v905_v15, 3  ;;  %s483_s13 = sshll.u32 %s480_s10, 4  ;;  %s484_s13 = int_to_ptr.hbm [resolvable:$true] %s483_s13 }
  0x1b   : > { %317 = vmatpush.msra.mxu0 %v641_v4  ;;  %650 = vmatpush.msra.mxu1 %v641_v4  ;;  %s737_s21 = sshra.s32 %s484_s13, 4  ;;  %s738_s21 = int_to_ptr.hbm [resolvable:$true] %s737_s21 }
  0x1c   : > { %254 = vxpose.xlu0.b32.start [1/4] (short) (narrow) %v632_v7, 16  ;;  %v375_v25 = vmul.f32 0.25, %v373_v22  ;;  %v374_v32 = vadd.f32 0.5, %v372_v27  ;;  %p744_p1 = scmp.lt.s32.totalorder %s738_s21, %s997_s3 }
  0x1d   : > { %318 = vmatpush.msra.mxu0 %v640_v6  ;;  %651 = vmatpush.msra.mxu1 %v640_v6 }
  0x1e   : > { %v377_v31 = vfloor.f32 %v375_v25  ;;  %v376_v34 = vmul.f32 0.25, %v374_v32 }
  0x20   : > { %v379_v33 = vmul.f32 4.0, %v377_v31  ;;  %v378_v42 = vfloor.f32 %v376_v34  ;;  %v387_v48 = vmul.f32 %v386_v41, %v377_v31 }
  0x22   : > { %v381_v38 = vsub.f32 %v371_v19, %v379_v33  ;;  %v380_v49 = vmul.f32 4.0, %v378_v42  ;;  %v388_v5 = vmul.f32 %v386_v41, %v378_v42 }
  0x24   : > { %255 = vxpose.xlu0.b32.cont [2/4] (short) (narrow) %v633_v8, 16  ;;  %v384_v45 = vmul.f32 %v383_v39, %v381_v38  ;;  %v382_v58 = vsub.f32 %v372_v27, %v380_v49 }
  0x26   : > { %v389_v54 = vadd.f32 %v387_v48, %v384_v45  ;;  %v385_v8 = vmul.f32 %v383_v39, %v382_v58 }
  0x28   : > { %v390_v16 = vadd.f32 %v388_v5, %v385_v8 }
  0x2c   : > { %256 = vxpose.xlu0.b32.cont [3/4] (short) (narrow) %v636_v10, 16 }
  0x34   : > { %257 = vxpose.xlu0.b32.end [4/4] (short) (narrow) %v637_v11, 16 }
  0xc0   : > { %v270_v12 = vpop.trf.xlu0 }
  0xc1   : > { %612 = vmatmul.msk.f32.vlgmr.msra.gmra.mxu0 %vm296_vm0, %v270_v12 }
  0xc8   : > { %v271_v13 = vpop.trf.xlu0 }
  0xc9   : > { %613 = vmatmul.msk.f32.vlgmr.msra.gmra.mxu1 %vm296_vm0, %v271_v13 }
 0x13e   : > { %v320_v18 = vpop.f32.mrf.mxu0 }
 0x13f   : > { %v321_v20 = vadd.f32 %v320_v18, %v295_v17 }
 0x141   : > { %v614_v21 = vmul.f32 -1.442695, %v321_v20  ;;  %413 = vst.msk [vmem:[%s910_s22] sm:$0xff] %vm412_vm1, %v321_v20  ;;  %439 = vrot.lane.b32.xlu2 %v321_v20, %s803_s24  ;;  %419 = vrot.lane.b32.xlu1 %v321_v20, %s804_s26 }
 0x143   : > { %715 = vpow2.f32 %v614_v21 }
 0x146   : > { %v323_v24 = vpop.f32.mrf.mxu1 }
 0x147   : > { %v324_v26 = vadd.f32 %v323_v24, %v295_v17 }
 0x149   : > { %v716_v28 = vpop.eup %715  ;;  %v615_v29 = vmul.f32 -1.442695, %v324_v26  ;;  %414 = vst.msk [vmem:[%s910_s22 + $0x8] sm:$0xff] %vm412_vm1, %v324_v26  ;;  %441 = vrot.lane.b32.xlu2 %v324_v26, %s803_s24  ;;  %421 = vrot.lane.b32.xlu1 %v324_v26, %s804_s26 }
 0x14a   : > { %v332_v30 = vadd.f32 1.0, %v716_v28 }
 0x14b   : > { %717 = vpow2.f32 %v615_v29 }
 0x14c   : > { %719 = vrcp.f32 %v332_v30  ;;  %v345_v44 = vand.u32 2147483648, %v332_v30  ;;  %v343_v47 = vand.u32 2147483647, %v332_v30  ;;  %vm339_vm3 = vweird.f32 %v332_v30 }
 0x14e   : > { %v346_v52 = vor.u32 1.1754944e-38, %v345_v44  ;;  %vm344_vm5 = vcmp.eq.f32.partialorder %v343_v47, 8.507059e+37 }
 0x151   : > { %v718_v35 = vpop.eup %717 }
 0x152   : > { %v720_v36 = vpop.eup %719  ;;  %v333_v37 = vadd.f32 1.0, %v718_v35 }
 0x153   : > { %v335_v40 = vmul.f32 %v720_v36, %v332_v30  ;;  %vm340_vm2 = vweird.f32 %v720_v36 }
 0x154   : > { %721 = vrcp.f32 %v333_v37  ;;  %vm341_vm4 = vmor %vm339_vm3, %vm340_vm2  ;;  %vm354_vm6 = vweird.f32 %v333_v37  ;;  %v360_v57 = vand.u32 2147483648, %v333_v37  ;;  %v358_v61 = vand.u32 2147483647, %v333_v37 }
 0x155   : > { %v336_v43 = vsub.f32 1.0, %v335_v40 }
 0x156   : > { %v361_v4 = vor.u32 1.1754944e-38, %v360_v57  ;;  %vm359_vm9 = vcmp.eq.f32.partialorder %v358_v61, 8.507059e+37 }
 0x157   : > { %v337_v46 = vmul.f32 %v720_v36, %v336_v43 }
 0x159   : > { %v338_v50 = vadd.f32 %v720_v36, %v337_v46 }
 0x15a   : > { %v722_v51 = vpop.eup %721 }
 0x15b   : > { %v342_v53 = vsel %vm341_vm4, %v720_v36, %v338_v50  ;;  %v350_v55 = vmul.f32 %v722_v51, %v333_v37  ;;  %vm355_vm7 = vweird.f32 %v722_v51 }
 0x15c   : > { %v347_v56 = vsel %vm344_vm5, %v346_v52, %v342_v53  ;;  %vm356_vm8 = vmor %vm354_vm6, %vm355_vm7 }
 0x15d   : > { %v391_v59 = vmul.f32 2.0, %v347_v56  ;;  %v351_v60 = vsub.f32 1.0, %v350_v55  ;;  %v408_v14 = vmul.f32 %v407_v3, %v347_v56 }
 0x15f   : > { %v616_v63 = vadd.f32 -0.5, %v391_v59  ;;  %v400_v1 = vmul.f32 %v391_v59, %v391_v59  ;;  %v352_v2 = vmul.f32 %v722_v51, %v351_v60 }
 0x161   : > { %v395_v6 = vadd.f32 %v616_v63, %v389_v54  ;;  %v353_v7 = vadd.f32 %v722_v51, %v352_v2  ;;  %v403_v10 = vmul.f32 %v402_v62, %v400_v1 }
 0x163   : > { %v398_v9 = vmul.f32 %v397_v0, %v395_v6  ;;  %v357_v11 = vsel %vm356_vm8, %v722_v51, %v353_v7 }
 0x164   : > { %v362_v12 = vsel %vm359_vm9, %v361_v4, %v357_v11 }
 0x165   : > { %v405_v13 = vadd.f32 %v403_v10, %v398_v9  ;;  %v392_v17 = vmul.f32 2.0, %v362_v12  ;;  %v409_v24 = vmul.f32 %v407_v3, %v362_v12 }
 0x167   : > { %v410_v15 = vadd.f32 %v408_v14, %v405_v13  ;;  %v617_v18 = vadd.f32 -0.5, %v392_v17  ;;  %v401_v19 = vmul.f32 %v392_v17, %v392_v17 }
 0x169   : > { %415 = vst.msk [vmem:[%s929_s6] sm:$0xff] %vm412_vm1, %v410_v15  ;;  %430 = vrot.lane.b32.xlu1 %v410_v15, %s804_s26  ;;  %v396_v20 = vadd.f32 %v617_v18, %v390_v16  ;;  %v404_v21 = vmul.f32 %v402_v62, %v401_v19 }
 0x16b   : > { %v399_v22 = vmul.f32 %v397_v0, %v396_v20 }
 0x16d   : > { %v406_v23 = vadd.f32 %v404_v21, %v399_v22 }
 0x16f   : > { %v411_v25 = vadd.f32 %v409_v24, %v406_v23 }
 0x171   : > { %448 = vrot.lane.b32.xlu1 %v410_v15, %s803_s24  ;;  %432 = vrot.lane.b32.xlu2 %v411_v25, %s804_s26  ;;  %416 = vst.msk [vmem:[%s929_s6 + $0x8] sm:$0xff] %vm412_vm1, %v411_v25 }
 0x179   : > { %450 = vrot.lane.b32.xlu2 %v411_v25, %s803_s24  ;;  %s739_s24 = scalar_lea.hbm %s738_s21, 48 }
 0x17a   : > { %p740_p12 = scmp.ne.s32.totalorder %s738_s21, %s739_s24  ;;  %p745_p2 = scmp.lt.s32.totalorder %s743_s29, %s739_s24 }
 0x17c   : > { %p741_p13 = pnand %p740_p12, %p872_p4  ;;  %p746_p3 = por %p745_p2, %p744_p1 }
 0x17e   : > { %p742_p0 = pneg %p741_p13 }
 0x180   : > { %p747_p5 = pnand %p746_p3, %p742_p0 }
 0x19b   : > { %v440_v26 = vpop.permute.xlu2 %439 }
 0x19c   : > { %622 = vst.msk [vmem:[%s910_s22 + $0x20] sm:$0xff] %vm412_vm1, %v440_v26 }
 0x1a3   : > { %v442_v27 = vpop.permute.xlu2 %441 }
 0x1a4   : > { %623 = vst.msk [vmem:[%s910_s22 + $0x28] sm:$0xff] %vm412_vm1, %v442_v27 }
 0x1b3   : > { %v420_v28 = vpop.permute.xlu1 %419 }
 0x1b4   : > { %618 = vst.msk [vmem:[%s910_s22 + $0x10] sm:$0xff] %vm412_vm1, %v420_v28 }
 0x1bb   : > { %v422_v29 = vpop.permute.xlu1 %421 }
 0x1bc   : > { %619 = vst.msk [vmem:[%s910_s22 + $0x18] sm:$0xff] %vm412_vm1, %v422_v29 }
 0x1bd   : > { %750 = shalt.err (!%p747_p5)
}
 0x1be   : > { %s805_s12 = smov 128   ;;  %s806_s22 = smov 8  }
 0x1bf   : > { %655 = dma.vmem_to_hbm [thread:$0]  (%p872_p4), %s482_s11, 768, %s484_s13, %s458_s14, %s805_s12, %s805_s12, %s806_s22  }
 0x1cb   : > { %v433_v30 = vpop.permute.xlu2 %432 }
 0x1cc   : > { %621 = vst.msk [vmem:[%s929_s6 + $0x18] sm:$0xff] %vm412_vm1, %v433_v30 }
 0x1d3   : > { %v451_v31 = vpop.permute.xlu2 %450 }
 0x1d4   : > { %625 = vst.msk [vmem:[%s929_s6 + $0x28] sm:$0xff] %vm412_vm1, %v451_v31 }
 0x1db   : > { %v431_v32 = vpop.permute.xlu1 %430 }
 0x1dc   : > { %620 = vst.msk [vmem:[%s929_s6 + $0x10] sm:$0xff] %vm412_vm1, %v431_v32 }
 0x1e3   : > { %v449_v33 = vpop.permute.xlu1 %448 }
 0x1e4   : > { %624 = vst.msk [vmem:[%s929_s6 + $0x20] sm:$0xff] %vm412_vm1, %v449_v33 }
 0x1e5 PF: > { %p661_p6 = scmp.ge.s32.totalorder %s801_s20, 2  ;;  %s502_s7 = sand.u32 1, %s781_s15  }
 0x1e6   : > { %s503_s25 = scalar_lea.sflag [#allocation3], %s502_s7 }
 0x1e7   : > { %p658_p4 = pnand %p661_p6, %p879_p8 }
 0x1e9   : > { %p659_p7 = pneg %p658_p4 }
 0x1eb   : > { %776 = dma.done.wait (%p659_p7), %s503_s25, 768  }
 0x1ec   : > { %778 = vsyncadd (%p659_p7), %s503_s25, 4294966528  ;;  %s18_s20 = sadd.s32 1, %s801_s20   ;;  %s1001_s15 = smov %s785_s16 }
 0x1ed   : > { %p15_p9 = scmp.ge.s32.totalorder %s18_s20, 4   ;;  %s1002_s16 = smov %s789_s17 }
 0x1ee   : > { %s1003_s17 = smov %s885_s28  ;;  %s1004_s18 = smov %s797_s19 }
 0x1ef   : > { %s1005_s19 = smov %s1007_s23  ;;  %17 = sbr.rel (!%p15_p9) target bundleno = 4 (0x4), region = 83 }
 0x1f4   :  { %521 = vsyncpa [#allocation3], 1 }
 0x1f5   :  { %523 = vsyncpa [#allocation3 + $0x1], 1 }

</bundles_post_ra>
